<compile_context>
chip_gen: v6e
topology: v6e:2x2x1
jax: 0.10.0
libtpu: 0.0.40
codegen_flags: <defaults>
</compile_context>

<pallas_src>
import functools

import jax
import jax.numpy as jnp
from jax import lax
from jax.experimental import pallas as pl
from jax.experimental.pallas import tpu as pltpu


MATMUL_DTYPE = jnp.bfloat16   # MXU operand / HBM activation dtype; accum is f32.
NEG_INF = -1e30               # finite "-inf": masked rows can never produce NaN.


# ------------------------- in-kernel math helpers -------------------------

def _layer_norm(x, gamma, beta, eps=1e-5):
    # x: (N, C) f32, gamma/beta: (1, C) f32. Matches torch.nn.LayerNorm.
    mu = jnp.mean(x, axis=-1, keepdims=True)
    var = jnp.mean((x - mu) ** 2, axis=-1, keepdims=True)
    return (x - mu) * lax.rsqrt(var + eps) * gamma + beta


def _softmax_lastdim(s):
    # f32 softmax over last axis; divide -> EUP reciprocal (free slot).
    s = s - jnp.max(s, axis=-1, keepdims=True)
    p = jnp.exp(s)
    denom = jnp.sum(p, axis=-1, keepdims=True)
    return p * pl.reciprocal(denom, approx=True)


def _split_heads(z, n_heads, head_size):
    # (N, C) -> (H, N, hs): single reshape + transpose relayout
    # (no per-head lane slicing / stack).
    n = z.shape[0]
    return jnp.transpose(z.reshape(n, n_heads, head_size), (1, 0, 2))


def _merge_heads(o):
    # (H, N, hs) -> (N, C): single transpose + reshape relayout.
    h, n, d = o.shape
    return jnp.transpose(o, (1, 0, 2)).reshape(n, h * d)


def _gelu(x):
    # torch.nn.GELU() default = exact (erf-based) gelu, in f32.
    return 0.5 * x * (1.0 + lax.erf(x * (2.0 ** -0.5)))


# ------------------------------- kernel ------------------------------------

def gpt2_block_kernel(
    x_ref, enc_ref,
    ln1_g, ln1_b, cattn_w, cattn_b, aproj_w, aproj_b,
    ln2_g, ln2_b, q_w, q_b, k_w, k_b, v_w, v_b, xproj_w, xproj_b,
    ln3_g, ln3_b, fc_w, fc_b, mproj_w, mproj_b,
    out_ref,
    k_sc, v_sc, ke_sc, ve_sc, m_sc, l_sc, acc_sc,
    *, n_heads, head_size, q_tile, n_q_tiles,
):
    C = n_heads * head_size
    TQ = q_tile
    scale = head_size ** -0.5
    qi = pl.program_id(1)

    # ---- once per batch element: projections that do not depend on the q tile ----
    @pl.when(qi == 0)
    def _():
        # self-attn K/V from ln_1(x) over the FULL sequence (K/V columns only).
        x_full = x_ref[...].astype(jnp.float32)
        h = _layer_norm(x_full, ln1_g[...], ln1_b[...]).astype(MATMUL_DTYPE)
        kv = (jnp.dot(h, cattn_w[:, C:], preferred_element_type=jnp.float32)
              + cattn_b[:, C:])
        k_sc[...] = _split_heads(kv[:, :C], n_heads, head_size).astype(MATMUL_DTYPE)
        v_sc[...] = _split_heads(kv[:, C:], n_heads, head_size).astype(MATMUL_DTYPE)
        # cross-attn K/V from enc_out (hoisted: computed once, not per q tile).
        enc = enc_ref[...]   # bf16, only ever an MXU operand
        ke = jnp.dot(enc, k_w[...], preferred_element_type=jnp.float32) + k_b[...]
        ve = jnp.dot(enc, v_w[...], preferred_element_type=jnp.float32) + v_b[...]
        ke_sc[...] = _split_heads(ke, n_heads, head_size).astype(MATMUL_DTYPE)
        ve_sc[...] = _split_heads(ve, n_heads, head_size).astype(MATMUL_DTYPE)

    row0 = pl.multiple_of(qi * TQ, TQ)
    x_t = x_ref[pl.ds(row0, TQ), :].astype(jnp.float32)   # residual stream stays f32

    # ---- self attention: x = x + attn(ln_1(x)) ----
    h1 = _layer_norm(x_t, ln1_g[...], ln1_b[...]).astype(MATMUL_DTYPE)
    # 1/sqrt(hs) folded into q (after the bias), not into the (H,TQ,TK) scores.
    q = (jnp.dot(h1, cattn_w[:, :C], preferred_element_type=jnp.float32)
         + cattn_b[:, :C]) * scale
    q_h = _split_heads(q, n_heads, head_size).astype(MATMUL_DTYPE)   # (H, TQ, hs)

    m_sc[...] = jnp.full_like(m_sc, NEG_INF)
    l_sc[...] = jnp.zeros_like(l_sc)
    acc_sc[...] = jnp.zeros_like(acc_sc)

    def online_softmax_step(k_t, v_t, mask=None):
        # NOTE: keep these einsums batched over the head axis (one vmatmul
        # stream); verify in the lowered MLIR that they do not unroll per head.
        s = jnp.einsum("hqd,hkd->hqk", q_h, k_t,
                       preferred_element_type=jnp.float32)
        if mask is not None:
            s = jnp.where(mask, s, NEG_INF)
        m_prev = m_sc[...]
        m_new = jnp.maximum(m_prev, jnp.max(s, axis=-1, keepdims=True))
        alpha = jnp.exp(m_prev - m_new)
        p = jnp.exp(s - m_new)
        l_sc[...] = alpha * l_sc[...] + jnp.sum(p, axis=-1, keepdims=True)
        acc_sc[...] = alpha * acc_sc[...] + jnp.einsum(
            "hqk,hkd->hqd", p.astype(MATMUL_DTYPE), v_t,
            preferred_element_type=jnp.float32)
        m_sc[...] = m_new

    # KV tiles strictly below the diagonal: no mask.  Static slices; pl.when
    # skips them at runtime => ~2x causal FLOP saving and no mask/select work.
    for kv_i in range(n_q_tiles - 1):
        @pl.when(qi > kv_i)
        def _():
            online_softmax_step(k_sc[:, kv_i * TQ:(kv_i + 1) * TQ, :],
                                v_sc[:, kv_i * TQ:(kv_i + 1) * TQ, :])

    # The single diagonal KV tile: the only one that needs the causal mask.
    r = lax.broadcasted_iota(jnp.int32, (TQ, TQ), 0)
    c = lax.broadcasted_iota(jnp.int32, (TQ, TQ), 1)
    diag_mask = (c <= r)[None]   # built once, broadcast over heads
    for kv_i in range(n_q_tiles):
        @pl.when(qi == kv_i)
        def _():
            online_softmax_step(k_sc[:, kv_i * TQ:(kv_i + 1) * TQ, :],
                                v_sc[:, kv_i * TQ:(kv_i + 1) * TQ, :],
                                mask=diag_mask)

    attn = acc_sc[...] * pl.reciprocal(l_sc[...], approx=True)      # (H,TQ,hs) f32
    attn = _merge_heads(attn)                                       # (TQ, C)
    attn = jnp.dot(attn.astype(MATMUL_DTYPE), aproj_w[...],
                   preferred_element_type=jnp.float32) + aproj_b[...]
    x_t = x_t + attn

    # ---- cross attention: x = x + cross_attn(ln_2(x), enc, enc) ----
    # TODO(synk): for very long encoder sequences, tile the Te axis here too.
    h2 = _layer_norm(x_t, ln2_g[...], ln2_b[...]).astype(MATMUL_DTYPE)
    qc = (jnp.dot(h2, q_w[...], preferred_element_type=jnp.float32)
          + q_b[...]) * scale
    qc_h = _split_heads(qc, n_heads, head_size).astype(MATMUL_DTYPE)  # (H,TQ,hs)
    s = jnp.einsum("hqd,hkd->hqk", qc_h, ke_sc[...],
                   preferred_element_type=jnp.float32)                # (H,TQ,Te)
    p = _softmax_lastdim(s)
    o = jnp.einsum("hqk,hkd->hqd", p.astype(MATMUL_DTYPE), ve_sc[...],
                   preferred_element_type=jnp.float32)
    xattn = _merge_heads(o)
    xattn = jnp.dot(xattn.astype(MATMUL_DTYPE), xproj_w[...],
                    preferred_element_type=jnp.float32) + xproj_b[...]
    x_t = x_t + xattn

    # ---- MLP: x = x + mlp(ln_3(x)) ----
    h3 = _layer_norm(x_t, ln3_g[...], ln3_b[...]).astype(MATMUL_DTYPE)
    hmid = jnp.dot(h3, fc_w[...], preferred_element_type=jnp.float32) + fc_b[...]
    hmid = _gelu(hmid)                                   # exact erf gelu in f32
    x_t = x_t + (jnp.dot(hmid.astype(MATMUL_DTYPE), mproj_w[...],
                         preferred_element_type=jnp.float32) + mproj_b[...])

    out_ref[...] = x_t.astype(out_ref.dtype)


# ------------------------------- wrapper ------------------------------------

def _pick_q_tile(T):
    # Prefer 256-multiples (matches the 2x256x256 MXU on v6e/v7x); 128 is a good
    # fit for v5e's 4x128x128.  Fall back to the full (tiny) sequence.
    for t in (256, 128, 64, 32, 16, 8):
        if T % t == 0:
            return t
    return T


def _pick_vmem_limit():
    # ~48 MiB on v7x (64 MiB VMEM), ~96 MiB on v5e/v6e (128 MiB VMEM).
    try:
        cap = pltpu.get_tpu_info().vmem_capacity_bytes
    except Exception:
        cap = 64 * 1024 * 1024
    return min(100 * 1024 * 1024, int(cap) * 3 // 4)


def gpt2_block(x, enc_out, params, *, n_heads, q_tile=None):
    B, T, C = x.shape
    _, Te, _ = enc_out.shape
    assert C % n_heads == 0
    head_size = C // n_heads

    if q_tile is None:
        q_tile = _pick_q_tile(T)
    assert T % q_tile == 0, "seq_len must be divisible by the q tile"
    n_q = T // q_tile

    param_order = [
        "ln1_g", "ln1_b", "cattn_w", "cattn_b", "aproj_w", "aproj_b",
        "ln2_g", "ln2_b", "q_w", "q_b", "k_w", "k_b", "v_w", "v_b",
        "xproj_w", "xproj_b", "ln3_g", "ln3_b", "fc_w", "fc_b",
        "mproj_w", "mproj_b",
    ]
    matmul_weights = {"cattn_w", "aproj_w", "q_w", "k_w", "v_w",
                      "xproj_w", "fc_w", "mproj_w"}
    # Cast MXU weight operands to bf16 once here; biases / LN params stay f32.
    param_vals = [
        params[name].astype(MATMUL_DTYPE) if name in matmul_weights
        else params[name]
        for name in param_order
    ]

    # Parameters: whole-array VMEM residents (loaded once, not double-buffered).
    # TODO(synk): on v7x (64 MiB VMEM), if weights + tiles no longer fit, demote
    # fc_w / mproj_w to BlockSpec-streamed inputs tiled over their large dim.
    weight_specs = [pl.BlockSpec(memory_space=pltpu.MemorySpace.VMEM)
                    for _ in param_vals]

    in_specs = (
        [pl.BlockSpec((None, T, C), lambda b, qi: (b, 0, 0)),    # x   -> (T, C), resident per b
         pl.BlockSpec((None, Te, C), lambda b, qi: (b, 0, 0))]   # enc -> (Te, C), resident per b
        + weight_specs
    )
    # Lane-dense output tile (last dim = C).
    out_specs = pl.BlockSpec((None, q_tile, C), lambda b, qi: (b, qi, 0))

    scratch_shapes = [
        pltpu.VMEM((n_heads, T, head_size), MATMUL_DTYPE),      # self-attn K (head-split)
        pltpu.VMEM((n_heads, T, head_size), MATMUL_DTYPE),      # self-attn V
        pltpu.VMEM((n_heads, Te, head_size), MATMUL_DTYPE),     # cross-attn K (from enc)
        pltpu.VMEM((n_heads, Te, head_size), MATMUL_DTYPE),     # cross-attn V
        pltpu.VMEM((n_heads, q_tile, 1), jnp.float32),          # online-softmax m
        pltpu.VMEM((n_heads, q_tile, 1), jnp.float32),          # online-softmax l
        pltpu.VMEM((n_heads, q_tile, head_size), jnp.float32),  # online-softmax acc
    ]

    kernel = functools.partial(gpt2_block_kernel, n_heads=n_heads,
                               head_size=head_size, q_tile=q_tile,
                               n_q_tiles=n_q)

    out = pl.pallas_call(
        kernel,
        # bf16 activations in HBM: halves x / out DMA per grid step.
        out_shape=jax.ShapeDtypeStruct((B, T, C), MATMUL_DTYPE),
        grid_spec=pltpu.PrefetchScalarGridSpec(
            num_scalar_prefetch=0,
            grid=(B, n_q),
            in_specs=in_specs,
            out_specs=out_specs,
            scratch_shapes=scratch_shapes,
        ),
        compiler_params=pltpu.CompilerParams(
            # The q-tile axis carries the per-batch K/V scratch, so it must stay
            # "arbitrary".
            # TODO(synk): make the q-tile axis "parallel" for v7x's 2 TCs (needs
            # per-core K/V recompute or a separate K/V precompute kernel).
            dimension_semantics=("parallel", "arbitrary"),
            vmem_limit_bytes=_pick_vmem_limit(),
        ),
    )(x.astype(MATMUL_DTYPE), enc_out.astype(MATMUL_DTYPE), *param_vals)

    # Keep the module's external dtype; in a real bf16 pipeline skip this cast.
    return out.astype(x.dtype)


# ---------------------- pure-JAX reference (for check) ----------------------

def gpt2_block_ref(x, enc, p, *, n_heads):
    B, T, C = x.shape
    hs = C // n_heads
    scale = hs ** -0.5

    def ln(x, g, b):
        mu = x.mean(-1, keepdims=True)
        var = ((x - mu) ** 2).mean(-1, keepdims=True)
        return (x - mu) / jnp.sqrt(var + 1e-5) * g + b

    def heads(z, t):
        return z.reshape(B, t, n_heads, hs).transpose(0, 2, 1, 3)

    # self-attn
    h = ln(x, p["ln1_g"], p["ln1_b"])
    qkv = h @ p["cattn_w"] + p["cattn_b"]
    q, k, v = jnp.split(qkv, 3, axis=-1)
    q, k, v = heads(q, T), heads(k, T), heads(v, T)
    s = (q @ k.transpose(0, 1, 3, 2)) * scale
    mask = jnp.tril(jnp.ones((T, T), bool))
    s = jnp.where(mask[None, None], s, -jnp.inf)
    a = jax.nn.softmax(s, axis=-1) @ v
    a = a.transpose(0, 2, 1, 3).reshape(B, T, C)
    x = x + (a @ p["aproj_w"] + p["aproj_b"])

    # cross-attn
    h = ln(x, p["ln2_g"], p["ln2_b"])
    Te = enc.shape[1]
    q = heads(h @ p["q_w"] + p["q_b"], T)
    k = heads(enc @ p["k_w"] + p["k_b"], Te)
    v = heads(enc @ p["v_w"] + p["v_b"], Te)
    s = (q @ k.transpose(0, 1, 3, 2)) * scale
    a = jax.nn.softmax(s, axis=-1) @ v
    a = a.transpose(0, 2, 1, 3).reshape(B, T, C)
    x = x + (a @ p["xproj_w"] + p["xproj_b"])

    # mlp
    h = ln(x, p["ln3_g"], p["ln3_b"])
    h = jax.nn.gelu(h @ p["fc_w"] + p["fc_b"], approximate=False)
    x = x + (h @ p["mproj_w"] + p["mproj_b"])
    return x


# --------------------------------- main --------------------------------------

if __name__ == "__main__":
    B, T, Te, C, H, MLP_RATIO = 2, 16, 16, 32, 4, 4
    Dmlp = C * MLP_RATIO

    key = jax.random.PRNGKey(0)
    keys = jax.random.split(key, 16)

    def w(k, shape):
        return (0.02 * jax.random.normal(k, shape)).astype(jnp.float32)

    # Linear weights stored as (in, out) == torch_weight.T ; biases zero;
    # LayerNorm gamma=1, beta=0.  (Deterministic synthetic init.)
    params = {
        "ln1_g": jnp.ones((1, C), jnp.float32), "ln1_b": jnp.zeros((1, C), jnp.float32),
        "cattn_w": w(keys[0], (C, 3 * C)),      "cattn_b": jnp.zeros((1, 3 * C), jnp.float32),
        "aproj_w": w(keys[1], (C, C)),          "aproj_b": jnp.zeros((1, C), jnp.float32),
        "ln2_g": jnp.ones((1, C), jnp.float32), "ln2_b": jnp.zeros((1, C), jnp.float32),
        "q_w": w(keys[2], (C, C)),              "q_b": jnp.zeros((1, C), jnp.float32),
        "k_w": w(keys[3], (C, C)),              "k_b": jnp.zeros((1, C), jnp.float32),
        "v_w": w(keys[4], (C, C)),              "v_b": jnp.zeros((1, C), jnp.float32),
        "xproj_w": w(keys[5], (C, C)),          "xproj_b": jnp.zeros((1, C), jnp.float32),
        "ln3_g": jnp.ones((1, C), jnp.float32), "ln3_b": jnp.zeros((1, C), jnp.float32),
        "fc_w": w(keys[6], (C, Dmlp)),          "fc_b": jnp.zeros((1, Dmlp), jnp.float32),
        "mproj_w": w(keys[7], (Dmlp, C)),       "mproj_b": jnp.zeros((1, C), jnp.float32),
    }

    x = jax.random.normal(keys[8], (B, T, C), jnp.float32)
    enc_out = jax.random.normal(keys[9], (B, Te, C), jnp.float32)

    # q_tile=8 -> 2 query tiles: exercises both the below-diagonal (unmasked)
    # KV path and the masked diagonal tile.
    out = jax.block_until_ready(gpt2_block(x, enc_out, params, n_heads=H, q_tile=8))

    # Reference on the bf16-rounded activations (the kernel's HBM activation dtype).
    x_bf = x.astype(jnp.bfloat16).astype(jnp.float32)
    enc_bf = enc_out.astype(jnp.bfloat16).astype(jnp.float32)
    ref = gpt2_block_ref(x_bf, enc_bf, params, n_heads=H)

    assert out.shape == (B, T, C)
    assert out.dtype == x.dtype
    # Tolerance loosened vs the f32 reference: bf16 MXU operands (f32 accum),
    # bf16 activation I/O, and the approx EUP reciprocal in the softmaxes.
    assert jnp.allclose(out, ref, atol=5e-2, rtol=5e-2), "mismatch vs reference"
    # TODO(synk): dropouts (attn/resid/mlp) are identity (eval-mode semantics).
    print("KERNEL_OK")
</pallas_src>

<mosaic_0001>
module attributes {stable_mosaic.version = 11 : i64} {
  func.func @gpt2_block_kernel(%arg0: i32, %arg1: i32, %arg2: memref<1x16x32xbf16, #tpu.memory_space<vmem>>, %arg3: memref<1x16x32xbf16, #tpu.memory_space<vmem>>, %arg4: memref<1x32xf32, #tpu.memory_space<vmem>>, %arg5: memref<1x32xf32, #tpu.memory_space<vmem>>, %arg6: memref<32x96xbf16, #tpu.memory_space<vmem>>, %arg7: memref<1x96xf32, #tpu.memory_space<vmem>>, %arg8: memref<32x32xbf16, #tpu.memory_space<vmem>>, %arg9: memref<1x32xf32, #tpu.memory_space<vmem>>, %arg10: memref<1x32xf32, #tpu.memory_space<vmem>>, %arg11: memref<1x32xf32, #tpu.memory_space<vmem>>, %arg12: memref<32x32xbf16, #tpu.memory_space<vmem>>, %arg13: memref<1x32xf32, #tpu.memory_space<vmem>>, %arg14: memref<32x32xbf16, #tpu.memory_space<vmem>>, %arg15: memref<1x32xf32, #tpu.memory_space<vmem>>, %arg16: memref<32x32xbf16, #tpu.memory_space<vmem>>, %arg17: memref<1x32xf32, #tpu.memory_space<vmem>>, %arg18: memref<32x32xbf16, #tpu.memory_space<vmem>>, %arg19: memref<1x32xf32, #tpu.memory_space<vmem>>, %arg20: memref<1x32xf32, #tpu.memory_space<vmem>>, %arg21: memref<1x32xf32, #tpu.memory_space<vmem>>, %arg22: memref<32x128xbf16, #tpu.memory_space<vmem>>, %arg23: memref<1x128xf32, #tpu.memory_space<vmem>>, %arg24: memref<128x32xbf16, #tpu.memory_space<vmem>>, %arg25: memref<1x32xf32, #tpu.memory_space<vmem>>, %arg26: memref<1x8x32xbf16, #tpu.memory_space<vmem>>, %arg27: memref<4x16x8xbf16, #tpu.memory_space<vmem>>, %arg28: memref<4x16x8xbf16, #tpu.memory_space<vmem>>, %arg29: memref<4x16x8xbf16, #tpu.memory_space<vmem>>, %arg30: memref<4x16x8xbf16, #tpu.memory_space<vmem>>, %arg31: memref<4x8x1xf32, #tpu.memory_space<vmem>>, %arg32: memref<4x8x1xf32, #tpu.memory_space<vmem>>, %arg33: memref<4x8x8xf32, #tpu.memory_space<vmem>>) attributes {dimension_semantics = [#tpu.dimension_semantics<parallel>, #tpu.dimension_semantics<arbitrary>], iteration_bounds = array<i64: 2, 2>, scalar_prefetch = 0 : i64, scratch_operands = 7 : i64, tpu.core_type = #tpu.core_type<tc>, window_params = [{transform_indices = @transform_0, window_bounds = array<i64: 1, 16, 32>}, {transform_indices = @transform_1, window_bounds = array<i64: 1, 16, 32>}, {pipeline_mode = #tpu.pipeline_mode<synchronous>, transform_indices = @transform_2, window_bounds = array<i64: 1, 32>}, {pipeline_mode = #tpu.pipeline_mode<synchronous>, transform_indices = @transform_3, window_bounds = array<i64: 1, 32>}, {pipeline_mode = #tpu.pipeline_mode<synchronous>, transform_indices = @transform_4, window_bounds = array<i64: 32, 96>}, {pipeline_mode = #tpu.pipeline_mode<synchronous>, transform_indices = @transform_5, window_bounds = array<i64: 1, 96>}, {pipeline_mode = #tpu.pipeline_mode<synchronous>, transform_indices = @transform_6, window_bounds = array<i64: 32, 32>}, {pipeline_mode = #tpu.pipeline_mode<synchronous>, transform_indices = @transform_7, window_bounds = array<i64: 1, 32>}, {pipeline_mode = #tpu.pipeline_mode<synchronous>, transform_indices = @transform_8, window_bounds = array<i64: 1, 32>}, {pipeline_mode = #tpu.pipeline_mode<synchronous>, transform_indices = @transform_9, window_bounds = array<i64: 1, 32>}, {pipeline_mode = #tpu.pipeline_mode<synchronous>, transform_indices = @transform_10, window_bounds = array<i64: 32, 32>}, {pipeline_mode = #tpu.pipeline_mode<synchronous>, transform_indices = @transform_11, window_bounds = array<i64: 1, 32>}, {pipeline_mode = #tpu.pipeline_mode<synchronous>, transform_indices = @transform_12, window_bounds = array<i64: 32, 32>}, {pipeline_mode = #tpu.pipeline_mode<synchronous>, transform_indices = @transform_13, window_bounds = array<i64: 1, 32>}, {pipeline_mode = #tpu.pipeline_mode<synchronous>, transform_indices = @transform_14, window_bounds = array<i64: 32, 32>}, {pipeline_mode = #tpu.pipeline_mode<synchronous>, transform_indices = @transform_15, window_bounds = array<i64: 1, 32>}, {pipeline_mode = #tpu.pipeline_mode<synchronous>, transform_indices = @transform_16, window_bounds = array<i64: 32, 32>}, {pipeline_mode = #tpu.pipeline_mode<synchronous>, transform_indices = @transform_17, window_bounds = array<i64: 1, 32>}, {pipeline_mode = #tpu.pipeline_mode<synchronous>, transform_indices = @transform_18, window_bounds = array<i64: 1, 32>}, {pipeline_mode = #tpu.pipeline_mode<synchronous>, transform_indices = @transform_19, window_bounds = array<i64: 1, 32>}, {pipeline_mode = #tpu.pipeline_mode<synchronous>, transform_indices = @transform_20, window_bounds = array<i64: 32, 128>}, {pipeline_mode = #tpu.pipeline_mode<synchronous>, transform_indices = @transform_21, window_bounds = array<i64: 1, 128>}, {pipeline_mode = #tpu.pipeline_mode<synchronous>, transform_indices = @transform_22, window_bounds = array<i64: 128, 32>}, {pipeline_mode = #tpu.pipeline_mode<synchronous>, transform_indices = @transform_23, window_bounds = array<i64: 1, 32>}, {transform_indices = @transform_24, window_bounds = array<i64: 1, 8, 32>}]} {
    %c0_i32 = arith.constant 0 : i32
    %0 = arith.cmpi eq, %arg1, %c0_i32 : i32
    %1 = arith.extui %0 : i1 to i32
    %c0_i32_0 = arith.constant 0 : i32
    %2 = arith.cmpi ne, %1, %c0_i32_0 : i32
    scf.if %2 {
      %c0_99 = arith.constant 0 : index
      %c0_100 = arith.constant 0 : index
      %c0_101 = arith.constant 0 : index
      %185 = vector.load %arg2[%c0_99, %c0_100, %c0_101] : memref<1x16x32xbf16, #tpu.memory_space<vmem>>, vector<1x16x32xbf16>
      %186 = vector.shape_cast %185 : vector<1x16x32xbf16> to vector<16x32xbf16>
      %187 = arith.extf %186 : vector<16x32xbf16> to vector<16x32xf32>
      %c0_102 = arith.constant 0 : index
      %c0_103 = arith.constant 0 : index
      %188 = vector.load %arg4[%c0_102, %c0_103] : memref<1x32xf32, #tpu.memory_space<vmem>>, vector<1x32xf32>
      %c0_104 = arith.constant 0 : index
      %c0_105 = arith.constant 0 : index
      %189 = vector.load %arg5[%c0_104, %c0_105] : memref<1x32xf32, #tpu.memory_space<vmem>>, vector<1x32xf32>
      %cst_106 = arith.constant dense<0.000000e+00> : vector<16xf32>
      %190 = vector.multi_reduction <add>, %187, %cst_106 [1] : vector<16x32xf32> to vector<16xf32>
      %191 = vector.shape_cast %190 : vector<16xf32> to vector<16x1xf32>
      %cst_107 = arith.constant 3.200000e+01 : f32
      %192 = vector.broadcast %cst_107 : f32 to vector<16x1xf32>
      %193 = arith.divf %191, %192 : vector<16x1xf32>
      %194 = vector.broadcast %193 : vector<16x1xf32> to vector<16x32xf32>
      %195 = arith.subf %187, %194 : vector<16x32xf32>
      %196 = arith.mulf %195, %195 : vector<16x32xf32>
      %cst_108 = arith.constant dense<0.000000e+00> : vector<16xf32>
      %197 = vector.multi_reduction <add>, %196, %cst_108 [1] : vector<16x32xf32> to vector<16xf32>
      %198 = vector.shape_cast %197 : vector<16xf32> to vector<16x1xf32>
      %cst_109 = arith.constant 3.200000e+01 : f32
      %199 = vector.broadcast %cst_109 : f32 to vector<16x1xf32>
      %200 = arith.divf %198, %199 : vector<16x1xf32>
      %201 = vector.broadcast %193 : vector<16x1xf32> to vector<16x32xf32>
      %202 = arith.subf %187, %201 : vector<16x32xf32>
      %cst_110 = arith.constant 9.99999974E-6 : f32
      %203 = vector.broadcast %cst_110 : f32 to vector<16x1xf32>
      %204 = arith.addf %200, %203 : vector<16x1xf32>
      %205 = math.rsqrt %204 : vector<16x1xf32>
      %206 = vector.broadcast %205 : vector<16x1xf32> to vector<16x32xf32>
      %207 = arith.mulf %202, %206 : vector<16x32xf32>
      %208 = vector.broadcast %188 : vector<1x32xf32> to vector<16x32xf32>
      %209 = arith.mulf %207, %208 : vector<16x32xf32>
      %210 = vector.broadcast %189 : vector<1x32xf32> to vector<16x32xf32>
      %211 = arith.addf %209, %210 : vector<16x32xf32>
      %212 = arith.truncf %211 : vector<16x32xf32> to vector<16x32xbf16>
      %c0_111 = arith.constant 0 : index
      %c32 = arith.constant 32 : index
      %213 = vector.load %arg6[%c0_111, %c32] : memref<32x96xbf16, #tpu.memory_space<vmem>>, vector<32x64xbf16>
      %cst_112 = arith.constant dense<0.000000e+00> : vector<16x64xf32>
      %214 = tpu.matmul %212, %213, %cst_112 {dimension_numbers = #tpu.dot_dimension_numbers<[1], [0], [0], [1], [0, 0, 1, 1], [], []>} : vector<16x32xbf16>, vector<32x64xbf16>, vector<16x64xf32> -> vector<16x64xf32>
      %c0_113 = arith.constant 0 : index
      %c32_114 = arith.constant 32 : index
      %215 = vector.load %arg7[%c0_113, %c32_114] : memref<1x96xf32, #tpu.memory_space<vmem>>, vector<1x64xf32>
      %216 = vector.broadcast %215 : vector<1x64xf32> to vector<16x64xf32>
      %217 = arith.addf %214, %216 : vector<16x64xf32>
      %218 = vector.extract_strided_slice %217 {offsets = [0, 0], sizes = [16, 32], strides = [1, 1]} : vector<16x64xf32> to vector<16x32xf32>
      %219 = vector.shape_cast %218 : vector<16x32xf32> to vector<16x4x8xf32>
      %220 = tpu.transpose %219, [1, 0, 2] : vector<16x4x8xf32> -> vector<4x16x8xf32>
      %221 = arith.truncf %220 : vector<4x16x8xf32> to vector<4x16x8xbf16>
      %c0_115 = arith.constant 0 : index
      %c0_116 = arith.constant 0 : index
      %c0_117 = arith.constant 0 : index
      %222 = vector.load %arg27[%c0_115, %c0_116, %c0_117] : memref<4x16x8xbf16, #tpu.memory_space<vmem>>, vector<4x16x8xbf16>
      tpu.vector_store %arg27[%c0_115, %c0_116, %c0_117], %221 {strides = array<i32>} : memref<4x16x8xbf16, #tpu.memory_space<vmem>>, vector<4x16x8xbf16>,
      %223 = vector.extract_strided_slice %217 {offsets = [0, 32], sizes = [16, 32], strides = [1, 1]} : vector<16x64xf32> to vector<16x32xf32>
      %224 = vector.shape_cast %223 : vector<16x32xf32> to vector<16x4x8xf32>
      %225 = tpu.transpose %224, [1, 0, 2] : vector<16x4x8xf32> -> vector<4x16x8xf32>
      %226 = arith.truncf %225 : vector<4x16x8xf32> to vector<4x16x8xbf16>
      %c0_118 = arith.constant 0 : index
      %c0_119 = arith.constant 0 : index
      %c0_120 = arith.constant 0 : index
      %227 = vector.load %arg28[%c0_118, %c0_119, %c0_120] : memref<4x16x8xbf16, #tpu.memory_space<vmem>>, vector<4x16x8xbf16>
      tpu.vector_store %arg28[%c0_118, %c0_119, %c0_120], %226 {strides = array<i32>} : memref<4x16x8xbf16, #tpu.memory_space<vmem>>, vector<4x16x8xbf16>,
      %c0_121 = arith.constant 0 : index
      %c0_122 = arith.constant 0 : index
      %c0_123 = arith.constant 0 : index
      %228 = vector.load %arg3[%c0_121, %c0_122, %c0_123] : memref<1x16x32xbf16, #tpu.memory_space<vmem>>, vector<1x16x32xbf16>
      %229 = vector.shape_cast %228 : vector<1x16x32xbf16> to vector<16x32xbf16>
      %c0_124 = arith.constant 0 : index
      %c0_125 = arith.constant 0 : index
      %230 = vector.load %arg14[%c0_124, %c0_125] : memref<32x32xbf16, #tpu.memory_space<vmem>>, vector<32x32xbf16>
      %cst_126 = arith.constant dense<0.000000e+00> : vector<16x32xf32>
      %231 = tpu.matmul %229, %230, %cst_126 {dimension_numbers = #tpu.dot_dimension_numbers<[1], [0], [0], [1], [0, 0, 1, 1], [], []>} : vector<16x32xbf16>, vector<32x32xbf16>, vector<16x32xf32> -> vector<16x32xf32>
      %c0_127 = arith.constant 0 : index
      %c0_128 = arith.constant 0 : index
      %232 = vector.load %arg15[%c0_127, %c0_128] : memref<1x32xf32, #tpu.memory_space<vmem>>, vector<1x32xf32>
      %233 = vector.broadcast %232 : vector<1x32xf32> to vector<16x32xf32>
      %234 = arith.addf %231, %233 : vector<16x32xf32>
      %c0_129 = arith.constant 0 : index
      %c0_130 = arith.constant 0 : index
      %235 = vector.load %arg16[%c0_129, %c0_130] : memref<32x32xbf16, #tpu.memory_space<vmem>>, vector<32x32xbf16>
      %cst_131 = arith.constant dense<0.000000e+00> : vector<16x32xf32>
      %236 = tpu.matmul %229, %235, %cst_131 {dimension_numbers = #tpu.dot_dimension_numbers<[1], [0], [0], [1], [0, 0, 1, 1], [], []>} : vector<16x32xbf16>, vector<32x32xbf16>, vector<16x32xf32> -> vector<16x32xf32>
      %c0_132 = arith.constant 0 : index
      %c0_133 = arith.constant 0 : index
      %237 = vector.load %arg17[%c0_132, %c0_133] : memref<1x32xf32, #tpu.memory_space<vmem>>, vector<1x32xf32>
      %238 = vector.broadcast %237 : vector<1x32xf32> to vector<16x32xf32>
      %239 = arith.addf %236, %238 : vector<16x32xf32>
      %240 = vector.shape_cast %234 : vector<16x32xf32> to vector<16x4x8xf32>
      %241 = tpu.transpose %240, [1, 0, 2] : vector<16x4x8xf32> -> vector<4x16x8xf32>
      %242 = arith.truncf %241 : vector<4x16x8xf32> to vector<4x16x8xbf16>
      %c0_134 = arith.constant 0 : index
      %c0_135 = arith.constant 0 : index
      %c0_136 = arith.constant 0 : index
      %243 = vector.load %arg29[%c0_134, %c0_135, %c0_136] : memref<4x16x8xbf16, #tpu.memory_space<vmem>>, vector<4x16x8xbf16>
      tpu.vector_store %arg29[%c0_134, %c0_135, %c0_136], %242 {strides = array<i32>} : memref<4x16x8xbf16, #tpu.memory_space<vmem>>, vector<4x16x8xbf16>,
      %244 = vector.shape_cast %239 : vector<16x32xf32> to vector<16x4x8xf32>
      %245 = tpu.transpose %244, [1, 0, 2] : vector<16x4x8xf32> -> vector<4x16x8xf32>
      %246 = arith.truncf %245 : vector<4x16x8xf32> to vector<4x16x8xbf16>
      %c0_137 = arith.constant 0 : index
      %c0_138 = arith.constant 0 : index
      %c0_139 = arith.constant 0 : index
      %247 = vector.load %arg30[%c0_137, %c0_138, %c0_139] : memref<4x16x8xbf16, #tpu.memory_space<vmem>>, vector<4x16x8xbf16>
      tpu.vector_store %arg30[%c0_137, %c0_138, %c0_139], %246 {strides = array<i32>} : memref<4x16x8xbf16, #tpu.memory_space<vmem>>, vector<4x16x8xbf16>,
    } else {
    }
    %c8_i32 = arith.constant 8 : i32
    %3 = arith.muli %arg1, %c8_i32 : i32
    %4 = tpu.assume_multiple %3, 8 : i32
    %c0 = arith.constant 0 : index
    %5 = arith.index_cast %4 : i32 to index
    %c0_1 = arith.constant 0 : index
    %6 = vector.load %arg2[%c0, %5, %c0_1] : memref<1x16x32xbf16, #tpu.memory_space<vmem>>, vector<1x8x32xbf16>
    %7 = vector.shape_cast %6 : vector<1x8x32xbf16> to vector<8x32xbf16>
    %8 = arith.extf %7 : vector<8x32xbf16> to vector<8x32xf32>
    %c0_2 = arith.constant 0 : index
    %c0_3 = arith.constant 0 : index
    %9 = vector.load %arg4[%c0_2, %c0_3] : memref<1x32xf32, #tpu.memory_space<vmem>>, vector<1x32xf32>
    %c0_4 = arith.constant 0 : index
    %c0_5 = arith.constant 0 : index
    %10 = vector.load %arg5[%c0_4, %c0_5] : memref<1x32xf32, #tpu.memory_space<vmem>>, vector<1x32xf32>
    %cst = arith.constant dense<0.000000e+00> : vector<8xf32>
    %11 = vector.multi_reduction <add>, %8, %cst [1] : vector<8x32xf32> to vector<8xf32>
    %12 = vector.shape_cast %11 : vector<8xf32> to vector<8x1xf32>
    %cst_6 = arith.constant 3.200000e+01 : f32
    %13 = vector.broadcast %cst_6 : f32 to vector<8x1xf32>
    %14 = arith.divf %12, %13 : vector<8x1xf32>
    %15 = vector.broadcast %14 : vector<8x1xf32> to vector<8x32xf32>
    %16 = arith.subf %8, %15 : vector<8x32xf32>
    %17 = arith.mulf %16, %16 : vector<8x32xf32>
    %cst_7 = arith.constant dense<0.000000e+00> : vector<8xf32>
    %18 = vector.multi_reduction <add>, %17, %cst_7 [1] : vector<8x32xf32> to vector<8xf32>
    %19 = vector.shape_cast %18 : vector<8xf32> to vector<8x1xf32>
    %cst_8 = arith.constant 3.200000e+01 : f32
    %20 = vector.broadcast %cst_8 : f32 to vector<8x1xf32>
    %21 = arith.divf %19, %20 : vector<8x1xf32>
    %22 = vector.broadcast %14 : vector<8x1xf32> to vector<8x32xf32>
    %23 = arith.subf %8, %22 : vector<8x32xf32>
    %cst_9 = arith.constant 9.99999974E-6 : f32
    %24 = vector.broadcast %cst_9 : f32 to vector<8x1xf32>
    %25 = arith.addf %21, %24 : vector<8x1xf32>
    %26 = math.rsqrt %25 : vector<8x1xf32>
    %27 = vector.broadcast %26 : vector<8x1xf32> to vector<8x32xf32>
    %28 = arith.mulf %23, %27 : vector<8x32xf32>
    %29 = vector.broadcast %9 : vector<1x32xf32> to vector<8x32xf32>
    %30 = arith.mulf %28, %29 : vector<8x32xf32>
    %31 = vector.broadcast %10 : vector<1x32xf32> to vector<8x32xf32>
    %32 = arith.addf %30, %31 : vector<8x32xf32>
    %33 = arith.truncf %32 : vector<8x32xf32> to vector<8x32xbf16>
    %c0_10 = arith.constant 0 : index
    %c0_11 = arith.constant 0 : index
    %34 = vector.load %arg6[%c0_10, %c0_11] : memref<32x96xbf16, #tpu.memory_space<vmem>>, vector<32x32xbf16>
    %cst_12 = arith.constant dense<0.000000e+00> : vector<8x32xf32>
    %35 = tpu.matmul %33, %34, %cst_12 {dimension_numbers = #tpu.dot_dimension_numbers<[1], [0], [0], [1], [0, 0, 1, 1], [], []>} : vector<8x32xbf16>, vector<32x32xbf16>, vector<8x32xf32> -> vector<8x32xf32>
    %c0_13 = arith.constant 0 : index
    %c0_14 = arith.constant 0 : index
    %36 = vector.load %arg7[%c0_13, %c0_14] : memref<1x96xf32, #tpu.memory_space<vmem>>, vector<1x32xf32>
    %37 = vector.broadcast %36 : vector<1x32xf32> to vector<8x32xf32>
    %38 = arith.addf %35, %37 : vector<8x32xf32>
    %cst_15 = arith.constant 0.353553385 : f32
    %39 = vector.broadcast %cst_15 : f32 to vector<8x32xf32>
    %40 = arith.mulf %38, %39 : vector<8x32xf32>
    %41 = vector.shape_cast %40 : vector<8x32xf32> to vector<8x4x8xf32>
    %42 = tpu.transpose %41, [1, 0, 2] : vector<8x4x8xf32> -> vector<4x8x8xf32>
    %43 = arith.truncf %42 : vector<4x8x8xf32> to vector<4x8x8xbf16>
    %cst_16 = arith.constant -1.000000e+30 : f32
    %44 = vector.broadcast %cst_16 : f32 to vector<4x8x1xf32>
    %c0_17 = arith.constant 0 : index
    %c0_18 = arith.constant 0 : index
    %c0_19 = arith.constant 0 : index
    %45 = vector.load %arg31[%c0_17, %c0_18, %c0_19] : memref<4x8x1xf32, #tpu.memory_space<vmem>>, vector<4x8x1xf32>
    tpu.vector_store %arg31[%c0_17, %c0_18, %c0_19], %44 {strides = array<i32>} : memref<4x8x1xf32, #tpu.memory_space<vmem>>, vector<4x8x1xf32>,
    %cst_20 = arith.constant 0.000000e+00 : f32
    %46 = vector.broadcast %cst_20 : f32 to vector<4x8x1xf32>
    %c0_21 = arith.constant 0 : index
    %c0_22 = arith.constant 0 : index
    %c0_23 = arith.constant 0 : index
    %47 = vector.load %arg32[%c0_21, %c0_22, %c0_23] : memref<4x8x1xf32, #tpu.memory_space<vmem>>, vector<4x8x1xf32>
    tpu.vector_store %arg32[%c0_21, %c0_22, %c0_23], %46 {strides = array<i32>} : memref<4x8x1xf32, #tpu.memory_space<vmem>>, vector<4x8x1xf32>,
    %cst_24 = arith.constant 0.000000e+00 : f32
    %48 = vector.broadcast %cst_24 : f32 to vector<4x8x8xf32>
    %c0_25 = arith.constant 0 : index
    %c0_26 = arith.constant 0 : index
    %c0_27 = arith.constant 0 : index
    %49 = vector.load %arg33[%c0_25, %c0_26, %c0_27] : memref<4x8x8xf32, #tpu.memory_space<vmem>>, vector<4x8x8xf32>
    tpu.vector_store %arg33[%c0_25, %c0_26, %c0_27], %48 {strides = array<i32>} : memref<4x8x8xf32, #tpu.memory_space<vmem>>, vector<4x8x8xf32>,
    %c0_i32_28 = arith.constant 0 : i32
    %50 = arith.cmpi sgt, %arg1, %c0_i32_28 : i32
    %51 = arith.extui %50 : i1 to i32
    %c0_i32_29 = arith.constant 0 : i32
    %52 = arith.cmpi ne, %51, %c0_i32_29 : i32
    scf.if %52 {
      %c0_99 = arith.constant 0 : index
      %c0_100 = arith.constant 0 : index
      %c0_101 = arith.constant 0 : index
      %185 = vector.load %arg27[%c0_99, %c0_100, %c0_101] : memref<4x16x8xbf16, #tpu.memory_space<vmem>>, vector<4x8x8xbf16>
      %c0_102 = arith.constant 0 : index
      %c0_103 = arith.constant 0 : index
      %c0_104 = arith.constant 0 : index
      %186 = vector.load %arg28[%c0_102, %c0_103, %c0_104] : memref<4x16x8xbf16, #tpu.memory_space<vmem>>, vector<4x8x8xbf16>
      "tpu.trace_start"() <{level = 10 : i32, message = "hqd,hkd->hqk"}> : () -> ()
      %cst_105 = arith.constant dense<0.000000e+00> : vector<4x8x8xf32>
      %187 = tpu.matmul %43, %185, %cst_105 {dimension_numbers = #tpu.dot_dimension_numbers<[2], [2], [1], [1], [0, 0, 0, 1, 1, 1], [0], [0]>} : vector<4x8x8xbf16>, vector<4x8x8xbf16>, vector<4x8x8xf32> -> vector<4x8x8xf32>
      "tpu.trace_stop"() : () -> ()
      %c0_106 = arith.constant 0 : index
      %c0_107 = arith.constant 0 : index
      %c0_108 = arith.constant 0 : index
      %188 = vector.load %arg31[%c0_106, %c0_107, %c0_108] : memref<4x8x1xf32, #tpu.memory_space<vmem>>, vector<4x8x1xf32>
      %cst_109 = arith.constant dense<0xFF800000> : vector<4x8xf32>
      %189 = vector.multi_reduction <maximumf>, %187, %cst_109 [2] : vector<4x8x8xf32> to vector<4x8xf32>
      %190 = vector.shape_cast %189 : vector<4x8xf32> to vector<4x8x1xf32>
      %191 = arith.maximumf %188, %190 : vector<4x8x1xf32>
      %192 = arith.subf %188, %191 : vector<4x8x1xf32>
      %193 = math.exp %192 : vector<4x8x1xf32>
      %194 = vector.broadcast %191 : vector<4x8x1xf32> to vector<4x8x8xf32>
      %195 = arith.subf %187, %194 : vector<4x8x8xf32>
      %196 = math.exp %195 : vector<4x8x8xf32>
      %c0_110 = arith.constant 0 : index
      %c0_111 = arith.constant 0 : index
      %c0_112 = arith.constant 0 : index
      %197 = vector.load %arg32[%c0_110, %c0_111, %c0_112] : memref<4x8x1xf32, #tpu.memory_space<vmem>>, vector<4x8x1xf32>
      %198 = arith.mulf %193, %197 : vector<4x8x1xf32>
      %cst_113 = arith.constant dense<0.000000e+00> : vector<4x8xf32>
      %199 = vector.multi_reduction <add>, %196, %cst_113 [2] : vector<4x8x8xf32> to vector<4x8xf32>
      %200 = vector.shape_cast %199 : vector<4x8xf32> to vector<4x8x1xf32>
      %201 = arith.addf %198, %200 : vector<4x8x1xf32>
      %c0_114 = arith.constant 0 : index
      %c0_115 = arith.constant 0 : index
      %c0_116 = arith.constant 0 : index
      %202 = vector.load %arg32[%c0_114, %c0_115, %c0_116] : memref<4x8x1xf32, #tpu.memory_space<vmem>>, vector<4x8x1xf32>
      tpu.vector_store %arg32[%c0_114, %c0_115, %c0_116], %201 {strides = array<i32>} : memref<4x8x1xf32, #tpu.memory_space<vmem>>, vector<4x8x1xf32>,
      %c0_117 = arith.constant 0 : index
      %c0_118 = arith.constant 0 : index
      %c0_119 = arith.constant 0 : index
      %203 = vector.load %arg33[%c0_117, %c0_118, %c0_119] : memref<4x8x8xf32, #tpu.memory_space<vmem>>, vector<4x8x8xf32>
      %204 = vector.broadcast %193 : vector<4x8x1xf32> to vector<4x8x8xf32>
      %205 = arith.mulf %204, %203 : vector<4x8x8xf32>
      %206 = arith.truncf %196 : vector<4x8x8xf32> to vector<4x8x8xbf16>
      "tpu.trace_start"() <{level = 10 : i32, message = "hqk,hkd->hqd"}> : () -> ()
      %cst_120 = arith.constant dense<0.000000e+00> : vector<4x8x8xf32>
      %207 = tpu.matmul %206, %186, %cst_120 {dimension_numbers = #tpu.dot_dimension_numbers<[2], [1], [1], [2], [0, 0, 0, 1, 1, 2], [0], [0]>} : vector<4x8x8xbf16>, vector<4x8x8xbf16>, vector<4x8x8xf32> -> vector<4x8x8xf32>
      "tpu.trace_stop"() : () -> ()
      %208 = arith.addf %205, %207 : vector<4x8x8xf32>
      %c0_121 = arith.constant 0 : index
      %c0_122 = arith.constant 0 : index
      %c0_123 = arith.constant 0 : index
      %209 = vector.load %arg33[%c0_121, %c0_122, %c0_123] : memref<4x8x8xf32, #tpu.memory_space<vmem>>, vector<4x8x8xf32>
      tpu.vector_store %arg33[%c0_121, %c0_122, %c0_123], %208 {strides = array<i32>} : memref<4x8x8xf32, #tpu.memory_space<vmem>>, vector<4x8x8xf32>,
      %c0_124 = arith.constant 0 : index
      %c0_125 = arith.constant 0 : index
      %c0_126 = arith.constant 0 : index
      %210 = vector.load %arg31[%c0_124, %c0_125, %c0_126] : memref<4x8x1xf32, #tpu.memory_space<vmem>>, vector<4x8x1xf32>
      tpu.vector_store %arg31[%c0_124, %c0_125, %c0_126], %191 {strides = array<i32>} : memref<4x8x1xf32, #tpu.memory_space<vmem>>, vector<4x8x1xf32>,
    } else {
    }
    %53 = tpu.iota {dimensions = array<i32: 0>} : vector<8x8xi32>
    %54 = tpu.iota {dimensions = array<i32: 1>} : vector<8x8xi32>
    %55 = arith.cmpi sle, %54, %53 : vector<8x8xi32>
    %56 = vector.shape_cast %55 : vector<8x8xi1> to vector<1x8x8xi1>
    %c0_i32_30 = arith.constant 0 : i32
    %57 = arith.cmpi eq, %arg1, %c0_i32_30 : i32
    %58 = arith.extui %57 : i1 to i32
    %c0_i32_31 = arith.constant 0 : i32
    %59 = arith.cmpi ne, %58, %c0_i32_31 : i32
    scf.if %59 {
      %c0_99 = arith.constant 0 : index
      %c0_100 = arith.constant 0 : index
      %c0_101 = arith.constant 0 : index
      %185 = vector.load %arg27[%c0_99, %c0_100, %c0_101] : memref<4x16x8xbf16, #tpu.memory_space<vmem>>, vector<4x8x8xbf16>
      %c0_102 = arith.constant 0 : index
      %c0_103 = arith.constant 0 : index
      %c0_104 = arith.constant 0 : index
      %186 = vector.load %arg28[%c0_102, %c0_103, %c0_104] : memref<4x16x8xbf16, #tpu.memory_space<vmem>>, vector<4x8x8xbf16>
      "tpu.trace_start"() <{level = 10 : i32, message = "hqd,hkd->hqk"}> : () -> ()
      %cst_105 = arith.constant dense<0.000000e+00> : vector<4x8x8xf32>
      %187 = tpu.matmul %43, %185, %cst_105 {dimension_numbers = #tpu.dot_dimension_numbers<[2], [2], [1], [1], [0, 0, 0, 1, 1, 1], [0], [0]>} : vector<4x8x8xbf16>, vector<4x8x8xbf16>, vector<4x8x8xf32> -> vector<4x8x8xf32>
      %cst_106 = arith.constant -1.000000e+30 : f32
      "tpu.trace_stop"() : () -> ()
      %188 = vector.shape_cast %56 : vector<1x8x8xi1> to vector<1x8x8xi1>
      %189 = vector.broadcast %188 : vector<1x8x8xi1> to vector<4x8x8xi1>
      %190 = vector.broadcast %cst_106 : f32 to vector<4x8x8xf32>
      %191 = arith.select %189, %187, %190 : vector<4x8x8xi1>, vector<4x8x8xf32>
      %c0_107 = arith.constant 0 : index
      %c0_108 = arith.constant 0 : index
      %c0_109 = arith.constant 0 : index
      %192 = vector.load %arg31[%c0_107, %c0_108, %c0_109] : memref<4x8x1xf32, #tpu.memory_space<vmem>>, vector<4x8x1xf32>
      %cst_110 = arith.constant dense<0xFF800000> : vector<4x8xf32>
      %193 = vector.multi_reduction <maximumf>, %191, %cst_110 [2] : vector<4x8x8xf32> to vector<4x8xf32>
      %194 = vector.shape_cast %193 : vector<4x8xf32> to vector<4x8x1xf32>
      %195 = arith.maximumf %192, %194 : vector<4x8x1xf32>
      %196 = arith.subf %192, %195 : vector<4x8x1xf32>
      %197 = math.exp %196 : vector<4x8x1xf32>
      %198 = vector.broadcast %195 : vector<4x8x1xf32> to vector<4x8x8xf32>
      %199 = arith.subf %191, %198 : vector<4x8x8xf32>
      %200 = math.exp %199 : vector<4x8x8xf32>
      %c0_111 = arith.constant 0 : index
      %c0_112 = arith.constant 0 : index
      %c0_113 = arith.constant 0 : index
      %201 = vector.load %arg32[%c0_111, %c0_112, %c0_113] : memref<4x8x1xf32, #tpu.memory_space<vmem>>, vector<4x8x1xf32>
      %202 = arith.mulf %197, %201 : vector<4x8x1xf32>
      %cst_114 = arith.constant dense<0.000000e+00> : vector<4x8xf32>
      %203 = vector.multi_reduction <add>, %200, %cst_114 [2] : vector<4x8x8xf32> to vector<4x8xf32>
      %204 = vector.shape_cast %203 : vector<4x8xf32> to vector<4x8x1xf32>
      %205 = arith.addf %202, %204 : vector<4x8x1xf32>
      %c0_115 = arith.constant 0 : index
      %c0_116 = arith.constant 0 : index
      %c0_117 = arith.constant 0 : index
      %206 = vector.load %arg32[%c0_115, %c0_116, %c0_117] : memref<4x8x1xf32, #tpu.memory_space<vmem>>, vector<4x8x1xf32>
      tpu.vector_store %arg32[%c0_115, %c0_116, %c0_117], %205 {strides = array<i32>} : memref<4x8x1xf32, #tpu.memory_space<vmem>>, vector<4x8x1xf32>,
      %c0_118 = arith.constant 0 : index
      %c0_119 = arith.constant 0 : index
      %c0_120 = arith.constant 0 : index
      %207 = vector.load %arg33[%c0_118, %c0_119, %c0_120] : memref<4x8x8xf32, #tpu.memory_space<vmem>>, vector<4x8x8xf32>
      %208 = vector.broadcast %197 : vector<4x8x1xf32> to vector<4x8x8xf32>
      %209 = arith.mulf %208, %207 : vector<4x8x8xf32>
      %210 = arith.truncf %200 : vector<4x8x8xf32> to vector<4x8x8xbf16>
      "tpu.trace_start"() <{level = 10 : i32, message = "hqk,hkd->hqd"}> : () -> ()
      %cst_121 = arith.constant dense<0.000000e+00> : vector<4x8x8xf32>
      %211 = tpu.matmul %210, %186, %cst_121 {dimension_numbers = #tpu.dot_dimension_numbers<[2], [1], [1], [2], [0, 0, 0, 1, 1, 2], [0], [0]>} : vector<4x8x8xbf16>, vector<4x8x8xbf16>, vector<4x8x8xf32> -> vector<4x8x8xf32>
      "tpu.trace_stop"() : () -> ()
      %212 = arith.addf %209, %211 : vector<4x8x8xf32>
      %c0_122 = arith.constant 0 : index
      %c0_123 = arith.constant 0 : index
      %c0_124 = arith.constant 0 : index
      %213 = vector.load %arg33[%c0_122, %c0_123, %c0_124] : memref<4x8x8xf32, #tpu.memory_space<vmem>>, vector<4x8x8xf32>
      tpu.vector_store %arg33[%c0_122, %c0_123, %c0_124], %212 {strides = array<i32>} : memref<4x8x8xf32, #tpu.memory_space<vmem>>, vector<4x8x8xf32>,
      %c0_125 = arith.constant 0 : index
      %c0_126 = arith.constant 0 : index
      %c0_127 = arith.constant 0 : index
      %214 = vector.load %arg31[%c0_125, %c0_126, %c0_127] : memref<4x8x1xf32, #tpu.memory_space<vmem>>, vector<4x8x1xf32>
      tpu.vector_store %arg31[%c0_125, %c0_126, %c0_127], %195 {strides = array<i32>} : memref<4x8x1xf32, #tpu.memory_space<vmem>>, vector<4x8x1xf32>,
    } else {
    }
    %c1_i32 = arith.constant 1 : i32
    %60 = arith.cmpi eq, %arg1, %c1_i32 : i32
    %61 = arith.extui %60 : i1 to i32
    %c0_i32_32 = arith.constant 0 : i32
    %62 = arith.cmpi ne, %61, %c0_i32_32 : i32
    scf.if %62 {
      %c0_99 = arith.constant 0 : index
      %c8 = arith.constant 8 : index
      %c0_100 = arith.constant 0 : index
      %185 = vector.load %arg27[%c0_99, %c8, %c0_100] : memref<4x16x8xbf16, #tpu.memory_space<vmem>>, vector<4x8x8xbf16>
      %c0_101 = arith.constant 0 : index
      %c8_102 = arith.constant 8 : index
      %c0_103 = arith.constant 0 : index
      %186 = vector.load %arg28[%c0_101, %c8_102, %c0_103] : memref<4x16x8xbf16, #tpu.memory_space<vmem>>, vector<4x8x8xbf16>
      "tpu.trace_start"() <{level = 10 : i32, message = "hqd,hkd->hqk"}> : () -> ()
      %cst_104 = arith.constant dense<0.000000e+00> : vector<4x8x8xf32>
      %187 = tpu.matmul %43, %185, %cst_104 {dimension_numbers = #tpu.dot_dimension_numbers<[2], [2], [1], [1], [0, 0, 0, 1, 1, 1], [0], [0]>} : vector<4x8x8xbf16>, vector<4x8x8xbf16>, vector<4x8x8xf32> -> vector<4x8x8xf32>
      %cst_105 = arith.constant -1.000000e+30 : f32
      "tpu.trace_stop"() : () -> ()
      %188 = vector.shape_cast %56 : vector<1x8x8xi1> to vector<1x8x8xi1>
      %189 = vector.broadcast %188 : vector<1x8x8xi1> to vector<4x8x8xi1>
      %190 = vector.broadcast %cst_105 : f32 to vector<4x8x8xf32>
      %191 = arith.select %189, %187, %190 : vector<4x8x8xi1>, vector<4x8x8xf32>
      %c0_106 = arith.constant 0 : index
      %c0_107 = arith.constant 0 : index
      %c0_108 = arith.constant 0 : index
      %192 = vector.load %arg31[%c0_106, %c0_107, %c0_108] : memref<4x8x1xf32, #tpu.memory_space<vmem>>, vector<4x8x1xf32>
      %cst_109 = arith.constant dense<0xFF800000> : vector<4x8xf32>
      %193 = vector.multi_reduction <maximumf>, %191, %cst_109 [2] : vector<4x8x8xf32> to vector<4x8xf32>
      %194 = vector.shape_cast %193 : vector<4x8xf32> to vector<4x8x1xf32>
      %195 = arith.maximumf %192, %194 : vector<4x8x1xf32>
      %196 = arith.subf %192, %195 : vector<4x8x1xf32>
      %197 = math.exp %196 : vector<4x8x1xf32>
      %198 = vector.broadcast %195 : vector<4x8x1xf32> to vector<4x8x8xf32>
      %199 = arith.subf %191, %198 : vector<4x8x8xf32>
      %200 = math.exp %199 : vector<4x8x8xf32>
      %c0_110 = arith.constant 0 : index
      %c0_111 = arith.constant 0 : index
      %c0_112 = arith.constant 0 : index
      %201 = vector.load %arg32[%c0_110, %c0_111, %c0_112] : memref<4x8x1xf32, #tpu.memory_space<vmem>>, vector<4x8x1xf32>
      %202 = arith.mulf %197, %201 : vector<4x8x1xf32>
      %cst_113 = arith.constant dense<0.000000e+00> : vector<4x8xf32>
      %203 = vector.multi_reduction <add>, %200, %cst_113 [2] : vector<4x8x8xf32> to vector<4x8xf32>
      %204 = vector.shape_cast %203 : vector<4x8xf32> to vector<4x8x1xf32>
      %205 = arith.addf %202, %204 : vector<4x8x1xf32>
      %c0_114 = arith.constant 0 : index
      %c0_115 = arith.constant 0 : index
      %c0_116 = arith.constant 0 : index
      %206 = vector.load %arg32[%c0_114, %c0_115, %c0_116] : memref<4x8x1xf32, #tpu.memory_space<vmem>>, vector<4x8x1xf32>
      tpu.vector_store %arg32[%c0_114, %c0_115, %c0_116], %205 {strides = array<i32>} : memref<4x8x1xf32, #tpu.memory_space<vmem>>, vector<4x8x1xf32>,
      %c0_117 = arith.constant 0 : index
      %c0_118 = arith.constant 0 : index
      %c0_119 = arith.constant 0 : index
      %207 = vector.load %arg33[%c0_117, %c0_118, %c0_119] : memref<4x8x8xf32, #tpu.memory_space<vmem>>, vector<4x8x8xf32>
      %208 = vector.broadcast %197 : vector<4x8x1xf32> to vector<4x8x8xf32>
      %209 = arith.mulf %208, %207 : vector<4x8x8xf32>
      %210 = arith.truncf %200 : vector<4x8x8xf32> to vector<4x8x8xbf16>
      "tpu.trace_start"() <{level = 10 : i32, message = "hqk,hkd->hqd"}> : () -> ()
      %cst_120 = arith.constant dense<0.000000e+00> : vector<4x8x8xf32>
      %211 = tpu.matmul %210, %186, %cst_120 {dimension_numbers = #tpu.dot_dimension_numbers<[2], [1], [1], [2], [0, 0, 0, 1, 1, 2], [0], [0]>} : vector<4x8x8xbf16>, vector<4x8x8xbf16>, vector<4x8x8xf32> -> vector<4x8x8xf32>
      "tpu.trace_stop"() : () -> ()
      %212 = arith.addf %209, %211 : vector<4x8x8xf32>
      %c0_121 = arith.constant 0 : index
      %c0_122 = arith.constant 0 : index
      %c0_123 = arith.constant 0 : index
      %213 = vector.load %arg33[%c0_121, %c0_122, %c0_123] : memref<4x8x8xf32, #tpu.memory_space<vmem>>, vector<4x8x8xf32>
      tpu.vector_store %arg33[%c0_121, %c0_122, %c0_123], %212 {strides = array<i32>} : memref<4x8x8xf32, #tpu.memory_space<vmem>>, vector<4x8x8xf32>,
      %c0_124 = arith.constant 0 : index
      %c0_125 = arith.constant 0 : index
      %c0_126 = arith.constant 0 : index
      %214 = vector.load %arg31[%c0_124, %c0_125, %c0_126] : memref<4x8x1xf32, #tpu.memory_space<vmem>>, vector<4x8x1xf32>
      tpu.vector_store %arg31[%c0_124, %c0_125, %c0_126], %195 {strides = array<i32>} : memref<4x8x1xf32, #tpu.memory_space<vmem>>, vector<4x8x1xf32>,
    } else {
    }
    %c0_33 = arith.constant 0 : index
    %c0_34 = arith.constant 0 : index
    %c0_35 = arith.constant 0 : index
    %63 = vector.load %arg33[%c0_33, %c0_34, %c0_35] : memref<4x8x8xf32, #tpu.memory_space<vmem>>, vector<4x8x8xf32>
    %c0_36 = arith.constant 0 : index
    %c0_37 = arith.constant 0 : index
    %c0_38 = arith.constant 0 : index
    %64 = vector.load %arg32[%c0_36, %c0_37, %c0_38] : memref<4x8x1xf32, #tpu.memory_space<vmem>>, vector<4x8x1xf32>
    %65 = tpu.reciprocal %64 {approx = true} : vector<4x8x1xf32> -> vector<4x8x1xf32>
    %66 = vector.broadcast %65 : vector<4x8x1xf32> to vector<4x8x8xf32>
    %67 = arith.mulf %63, %66 : vector<4x8x8xf32>
    %68 = tpu.transpose %67, [1, 0, 2] : vector<4x8x8xf32> -> vector<8x4x8xf32>
    %69 = vector.shape_cast %68 : vector<8x4x8xf32> to vector<8x32xf32>
    %70 = arith.truncf %69 : vector<8x32xf32> to vector<8x32xbf16>
    %c0_39 = arith.constant 0 : index
    %c0_40 = arith.constant 0 : index
    %71 = vector.load %arg8[%c0_39, %c0_40] : memref<32x32xbf16, #tpu.memory_space<vmem>>, vector<32x32xbf16>
    %cst_41 = arith.constant dense<0.000000e+00> : vector<8x32xf32>
    %72 = tpu.matmul %70, %71, %cst_41 {dimension_numbers = #tpu.dot_dimension_numbers<[1], [0], [0], [1], [0, 0, 1, 1], [], []>} : vector<8x32xbf16>, vector<32x32xbf16>, vector<8x32xf32> -> vector<8x32xf32>
    %c0_42 = arith.constant 0 : index
    %c0_43 = arith.constant 0 : index
    %73 = vector.load %arg9[%c0_42, %c0_43] : memref<1x32xf32, #tpu.memory_space<vmem>>, vector<1x32xf32>
    %74 = vector.broadcast %73 : vector<1x32xf32> to vector<8x32xf32>
    %75 = arith.addf %72, %74 : vector<8x32xf32>
    %76 = arith.addf %8, %75 : vector<8x32xf32>
    %c0_44 = arith.constant 0 : index
    %c0_45 = arith.constant 0 : index
    %77 = vector.load %arg10[%c0_44, %c0_45] : memref<1x32xf32, #tpu.memory_space<vmem>>, vector<1x32xf32>
    %c0_46 = arith.constant 0 : index
    %c0_47 = arith.constant 0 : index
    %78 = vector.load %arg11[%c0_46, %c0_47] : memref<1x32xf32, #tpu.memory_space<vmem>>, vector<1x32xf32>
    %cst_48 = arith.constant dense<0.000000e+00> : vector<8xf32>
    %79 = vector.multi_reduction <add>, %76, %cst_48 [1] : vector<8x32xf32> to vector<8xf32>
    %80 = vector.shape_cast %79 : vector<8xf32> to vector<8x1xf32>
    %cst_49 = arith.constant 3.200000e+01 : f32
    %81 = vector.broadcast %cst_49 : f32 to vector<8x1xf32>
    %82 = arith.divf %80, %81 : vector<8x1xf32>
    %83 = vector.broadcast %82 : vector<8x1xf32> to vector<8x32xf32>
    %84 = arith.subf %76, %83 : vector<8x32xf32>
    %85 = arith.mulf %84, %84 : vector<8x32xf32>
    %cst_50 = arith.constant dense<0.000000e+00> : vector<8xf32>
    %86 = vector.multi_reduction <add>, %85, %cst_50 [1] : vector<8x32xf32> to vector<8xf32>
    %87 = vector.shape_cast %86 : vector<8xf32> to vector<8x1xf32>
    %cst_51 = arith.constant 3.200000e+01 : f32
    %88 = vector.broadcast %cst_51 : f32 to vector<8x1xf32>
    %89 = arith.divf %87, %88 : vector<8x1xf32>
    %90 = vector.broadcast %82 : vector<8x1xf32> to vector<8x32xf32>
    %91 = arith.subf %76, %90 : vector<8x32xf32>
    %cst_52 = arith.constant 9.99999974E-6 : f32
    %92 = vector.broadcast %cst_52 : f32 to vector<8x1xf32>
    %93 = arith.addf %89, %92 : vector<8x1xf32>
    %94 = math.rsqrt %93 : vector<8x1xf32>
    %95 = vector.broadcast %94 : vector<8x1xf32> to vector<8x32xf32>
    %96 = arith.mulf %91, %95 : vector<8x32xf32>
    %97 = vector.broadcast %77 : vector<1x32xf32> to vector<8x32xf32>
    %98 = arith.mulf %96, %97 : vector<8x32xf32>
    %99 = vector.broadcast %78 : vector<1x32xf32> to vector<8x32xf32>
    %100 = arith.addf %98, %99 : vector<8x32xf32>
    %101 = arith.truncf %100 : vector<8x32xf32> to vector<8x32xbf16>
    %c0_53 = arith.constant 0 : index
    %c0_54 = arith.constant 0 : index
    %102 = vector.load %arg12[%c0_53, %c0_54] : memref<32x32xbf16, #tpu.memory_space<vmem>>, vector<32x32xbf16>
    %cst_55 = arith.constant dense<0.000000e+00> : vector<8x32xf32>
    %103 = tpu.matmul %101, %102, %cst_55 {dimension_numbers = #tpu.dot_dimension_numbers<[1], [0], [0], [1], [0, 0, 1, 1], [], []>} : vector<8x32xbf16>, vector<32x32xbf16>, vector<8x32xf32> -> vector<8x32xf32>
    %c0_56 = arith.constant 0 : index
    %c0_57 = arith.constant 0 : index
    %104 = vector.load %arg13[%c0_56, %c0_57] : memref<1x32xf32, #tpu.memory_space<vmem>>, vector<1x32xf32>
    %105 = vector.broadcast %104 : vector<1x32xf32> to vector<8x32xf32>
    %106 = arith.addf %103, %105 : vector<8x32xf32>
    %cst_58 = arith.constant 0.353553385 : f32
    %107 = vector.broadcast %cst_58 : f32 to vector<8x32xf32>
    %108 = arith.mulf %106, %107 : vector<8x32xf32>
    %109 = vector.shape_cast %108 : vector<8x32xf32> to vector<8x4x8xf32>
    %110 = tpu.transpose %109, [1, 0, 2] : vector<8x4x8xf32> -> vector<4x8x8xf32>
    %111 = arith.truncf %110 : vector<4x8x8xf32> to vector<4x8x8xbf16>
    %c0_59 = arith.constant 0 : index
    %c0_60 = arith.constant 0 : index
    %c0_61 = arith.constant 0 : index
    %112 = vector.load %arg29[%c0_59, %c0_60, %c0_61] : memref<4x16x8xbf16, #tpu.memory_space<vmem>>, vector<4x16x8xbf16>
    "tpu.trace_start"() <{level = 10 : i32, message = "hqd,hkd->hqk"}> : () -> ()
    %cst_62 = arith.constant dense<0.000000e+00> : vector<4x8x16xf32>
    %113 = tpu.matmul %111, %112, %cst_62 {dimension_numbers = #tpu.dot_dimension_numbers<[2], [2], [1], [1], [0, 0, 0, 1, 1, 1], [0], [0]>} : vector<4x8x8xbf16>, vector<4x16x8xbf16>, vector<4x8x16xf32> -> vector<4x8x16xf32>
    "tpu.trace_stop"() : () -> ()
    %cst_63 = arith.constant dense<0xFF800000> : vector<4x8xf32>
    %114 = vector.multi_reduction <maximumf>, %113, %cst_63 [2] : vector<4x8x16xf32> to vector<4x8xf32>
    %115 = vector.shape_cast %114 : vector<4x8xf32> to vector<4x8x1xf32>
    %116 = vector.broadcast %115 : vector<4x8x1xf32> to vector<4x8x16xf32>
    %117 = arith.subf %113, %116 : vector<4x8x16xf32>
    %118 = math.exp %117 : vector<4x8x16xf32>
    %cst_64 = arith.constant dense<0.000000e+00> : vector<4x8xf32>
    %119 = vector.multi_reduction <add>, %118, %cst_64 [2] : vector<4x8x16xf32> to vector<4x8xf32>
    %120 = vector.shape_cast %119 : vector<4x8xf32> to vector<4x8x1xf32>
    %121 = tpu.reciprocal %120 {approx = true} : vector<4x8x1xf32> -> vector<4x8x1xf32>
    %122 = vector.broadcast %121 : vector<4x8x1xf32> to vector<4x8x16xf32>
    %123 = arith.mulf %118, %122 : vector<4x8x16xf32>
    %124 = arith.truncf %123 : vector<4x8x16xf32> to vector<4x8x16xbf16>
    %c0_65 = arith.constant 0 : index
    %c0_66 = arith.constant 0 : index
    %c0_67 = arith.constant 0 : index
    %125 = vector.load %arg30[%c0_65, %c0_66, %c0_67] : memref<4x16x8xbf16, #tpu.memory_space<vmem>>, vector<4x16x8xbf16>
    "tpu.trace_start"() <{level = 10 : i32, message = "hqk,hkd->hqd"}> : () -> ()
    %cst_68 = arith.constant dense<0.000000e+00> : vector<4x8x8xf32>
    %126 = tpu.matmul %124, %125, %cst_68 {dimension_numbers = #tpu.dot_dimension_numbers<[2], [1], [1], [2], [0, 0, 0, 1, 1, 2], [0], [0]>} : vector<4x8x16xbf16>, vector<4x16x8xbf16>, vector<4x8x8xf32> -> vector<4x8x8xf32>
    "tpu.trace_stop"() : () -> ()
    %127 = tpu.transpose %126, [1, 0, 2] : vector<4x8x8xf32> -> vector<8x4x8xf32>
    %128 = vector.shape_cast %127 : vector<8x4x8xf32> to vector<8x32xf32>
    %129 = arith.truncf %128 : vector<8x32xf32> to vector<8x32xbf16>
    %c0_69 = arith.constant 0 : index
    %c0_70 = arith.constant 0 : index
    %130 = vector.load %arg18[%c0_69, %c0_70] : memref<32x32xbf16, #tpu.memory_space<vmem>>, vector<32x32xbf16>
    %cst_71 = arith.constant dense<0.000000e+00> : vector<8x32xf32>
    %131 = tpu.matmul %129, %130, %cst_71 {dimension_numbers = #tpu.dot_dimension_numbers<[1], [0], [0], [1], [0, 0, 1, 1], [], []>} : vector<8x32xbf16>, vector<32x32xbf16>, vector<8x32xf32> -> vector<8x32xf32>
    %c0_72 = arith.constant 0 : index
    %c0_73 = arith.constant 0 : index
    %132 = vector.load %arg19[%c0_72, %c0_73] : memref<1x32xf32, #tpu.memory_space<vmem>>, vector<1x32xf32>
    %133 = vector.broadcast %132 : vector<1x32xf32> to vector<8x32xf32>
    %134 = arith.addf %131, %133 : vector<8x32xf32>
    %135 = arith.addf %76, %134 : vector<8x32xf32>
    %c0_74 = arith.constant 0 : index
    %c0_75 = arith.constant 0 : index
    %136 = vector.load %arg20[%c0_74, %c0_75] : memref<1x32xf32, #tpu.memory_space<vmem>>, vector<1x32xf32>
    %c0_76 = arith.constant 0 : index
    %c0_77 = arith.constant 0 : index
    %137 = vector.load %arg21[%c0_76, %c0_77] : memref<1x32xf32, #tpu.memory_space<vmem>>, vector<1x32xf32>
    %cst_78 = arith.constant dense<0.000000e+00> : vector<8xf32>
    %138 = vector.multi_reduction <add>, %135, %cst_78 [1] : vector<8x32xf32> to vector<8xf32>
    %139 = vector.shape_cast %138 : vector<8xf32> to vector<8x1xf32>
    %cst_79 = arith.constant 3.200000e+01 : f32
    %140 = vector.broadcast %cst_79 : f32 to vector<8x1xf32>
    %141 = arith.divf %139, %140 : vector<8x1xf32>
    %142 = vector.broadcast %141 : vector<8x1xf32> to vector<8x32xf32>
    %143 = arith.subf %135, %142 : vector<8x32xf32>
    %144 = arith.mulf %143, %143 : vector<8x32xf32>
    %cst_80 = arith.constant dense<0.000000e+00> : vector<8xf32>
    %145 = vector.multi_reduction <add>, %144, %cst_80 [1] : vector<8x32xf32> to vector<8xf32>
    %146 = vector.shape_cast %145 : vector<8xf32> to vector<8x1xf32>
    %cst_81 = arith.constant 3.200000e+01 : f32
    %147 = vector.broadcast %cst_81 : f32 to vector<8x1xf32>
    %148 = arith.divf %146, %147 : vector<8x1xf32>
    %149 = vector.broadcast %141 : vector<8x1xf32> to vector<8x32xf32>
    %150 = arith.subf %135, %149 : vector<8x32xf32>
    %cst_82 = arith.constant 9.99999974E-6 : f32
    %151 = vector.broadcast %cst_82 : f32 to vector<8x1xf32>
    %152 = arith.addf %148, %151 : vector<8x1xf32>
    %153 = math.rsqrt %152 : vector<8x1xf32>
    %154 = vector.broadcast %153 : vector<8x1xf32> to vector<8x32xf32>
    %155 = arith.mulf %150, %154 : vector<8x32xf32>
    %156 = vector.broadcast %136 : vector<1x32xf32> to vector<8x32xf32>
    %157 = arith.mulf %155, %156 : vector<8x32xf32>
    %158 = vector.broadcast %137 : vector<1x32xf32> to vector<8x32xf32>
    %159 = arith.addf %157, %158 : vector<8x32xf32>
    %160 = arith.truncf %159 : vector<8x32xf32> to vector<8x32xbf16>
    %c0_83 = arith.constant 0 : index
    %c0_84 = arith.constant 0 : index
    %161 = vector.load %arg22[%c0_83, %c0_84] : memref<32x128xbf16, #tpu.memory_space<vmem>>, vector<32x128xbf16>
    %cst_85 = arith.constant dense<0.000000e+00> : vector<8x128xf32>
    %162 = tpu.matmul %160, %161, %cst_85 {dimension_numbers = #tpu.dot_dimension_numbers<[1], [0], [0], [1], [0, 0, 1, 1], [], []>} : vector<8x32xbf16>, vector<32x128xbf16>, vector<8x128xf32> -> vector<8x128xf32>
    %c0_86 = arith.constant 0 : index
    %c0_87 = arith.constant 0 : index
    %163 = vector.load %arg23[%c0_86, %c0_87] : memref<1x128xf32, #tpu.memory_space<vmem>>, vector<1x128xf32>
    %164 = vector.broadcast %163 : vector<1x128xf32> to vector<8x128xf32>
    %165 = arith.addf %162, %164 : vector<8x128xf32>
    %cst_88 = arith.constant 5.000000e-01 : f32
    %166 = vector.broadcast %cst_88 : f32 to vector<8x128xf32>
    %167 = arith.mulf %166, %165 : vector<8x128xf32>
    %cst_89 = arith.constant 0.707106769 : f32
    %168 = vector.broadcast %cst_89 : f32 to vector<8x128xf32>
    %169 = arith.mulf %165, %168 : vector<8x128xf32>
    %170 = math.erf %169 : vector<8x128xf32>
    %cst_90 = arith.constant 1.000000e+00 : f32
    %171 = vector.broadcast %cst_90 : f32 to vector<8x128xf32>
    %172 = arith.addf %171, %170 : vector<8x128xf32>
    %173 = arith.mulf %167, %172 : vector<8x128xf32>
    %174 = arith.truncf %173 : vector<8x128xf32> to vector<8x128xbf16>
    %c0_91 = arith.constant 0 : index
    %c0_92 = arith.constant 0 : index
    %175 = vector.load %arg24[%c0_91, %c0_92] : memref<128x32xbf16, #tpu.memory_space<vmem>>, vector<128x32xbf16>
    %cst_93 = arith.constant dense<0.000000e+00> : vector<8x32xf32>
    %176 = tpu.matmul %174, %175, %cst_93 {dimension_numbers = #tpu.dot_dimension_numbers<[1], [0], [0], [1], [0, 0, 1, 1], [], []>} : vector<8x128xbf16>, vector<128x32xbf16>, vector<8x32xf32> -> vector<8x32xf32>
    %c0_94 = arith.constant 0 : index
    %c0_95 = arith.constant 0 : index
    %177 = vector.load %arg25[%c0_94, %c0_95] : memref<1x32xf32, #tpu.memory_space<vmem>>, vector<1x32xf32>
    %178 = vector.broadcast %177 : vector<1x32xf32> to vector<8x32xf32>
    %179 = arith.addf %176, %178 : vector<8x32xf32>
    %180 = arith.addf %135, %179 : vector<8x32xf32>
    %181 = arith.truncf %180 : vector<8x32xf32> to vector<8x32xbf16>
    %c0_96 = arith.constant 0 : index
    %c0_97 = arith.constant 0 : index
    %c0_98 = arith.constant 0 : index
    %182 = vector.load %arg26[%c0_96, %c0_97, %c0_98] : memref<1x8x32xbf16, #tpu.memory_space<vmem>>, vector<1x8x32xbf16>
    %183 = vector.shape_cast %182 : vector<1x8x32xbf16> to vector<8x32xbf16>
    %184 = vector.shape_cast %181 : vector<8x32xbf16> to vector<1x8x32xbf16>
    tpu.vector_store %arg26[%c0_96, %c0_97, %c0_98], %184 {strides = array<i32>} : memref<1x8x32xbf16, #tpu.memory_space<vmem>>, vector<1x8x32xbf16>,
    return
  }
  func.func @transform_0(%arg0: i32, %arg1: i32) -> (i32, i32, i32) {
    %c0_i32 = arith.constant 0 : i32
    %c0_i32_0 = arith.constant 0 : i32
    %c0_i32_1 = arith.constant 0 : i32
    return %arg0, %c0_i32, %c0_i32_0 : i32, i32, i32
  }
  func.func @transform_1(%arg0: i32, %arg1: i32) -> (i32, i32, i32) {
    %c0_i32 = arith.constant 0 : i32
    %c0_i32_0 = arith.constant 0 : i32
    %c0_i32_1 = arith.constant 0 : i32
    return %arg0, %c0_i32, %c0_i32_0 : i32, i32, i32
  }
  func.func @transform_2(%arg0: i32, %arg1: i32) -> (i32, i32) {
    %c0_i32 = arith.constant 0 : i32
    %c0_i32_0 = arith.constant 0 : i32
    %c0_i32_1 = arith.constant 0 : i32
    return %c0_i32, %c0_i32_0 : i32, i32
  }
  func.func @transform_3(%arg0: i32, %arg1: i32) -> (i32, i32) {
    %c0_i32 = arith.constant 0 : i32
    %c0_i32_0 = arith.constant 0 : i32
    %c0_i32_1 = arith.constant 0 : i32
    return %c0_i32, %c0_i32_0 : i32, i32
  }
  func.func @transform_4(%arg0: i32, %arg1: i32) -> (i32, i32) {
    %c0_i32 = arith.constant 0 : i32
    %c0_i32_0 = arith.constant 0 : i32
    %c0_i32_1 = arith.constant 0 : i32
    return %c0_i32, %c0_i32_0 : i32, i32
  }
  func.func @transform_5(%arg0: i32, %arg1: i32) -> (i32, i32) {
    %c0_i32 = arith.constant 0 : i32
    %c0_i32_0 = arith.constant 0 : i32
    %c0_i32_1 = arith.constant 0 : i32
    return %c0_i32, %c0_i32_0 : i32, i32
  }
  func.func @transform_6(%arg0: i32, %arg1: i32) -> (i32, i32) {
    %c0_i32 = arith.constant 0 : i32
    %c0_i32_0 = arith.constant 0 : i32
    %c0_i32_1 = arith.constant 0 : i32
    return %c0_i32, %c0_i32_0 : i32, i32
  }
  func.func @transform_7(%arg0: i32, %arg1: i32) -> (i32, i32) {
    %c0_i32 = arith.constant 0 : i32
    %c0_i32_0 = arith.constant 0 : i32
    %c0_i32_1 = arith.constant 0 : i32
    return %c0_i32, %c0_i32_0 : i32, i32
  }
  func.func @transform_8(%arg0: i32, %arg1: i32) -> (i32, i32) {
    %c0_i32 = arith.constant 0 : i32
    %c0_i32_0 = arith.constant 0 : i32
    %c0_i32_1 = arith.constant 0 : i32
    return %c0_i32, %c0_i32_0 : i32, i32
  }
  func.func @transform_9(%arg0: i32, %arg1: i32) -> (i32, i32) {
    %c0_i32 = arith.constant 0 : i32
    %c0_i32_0 = arith.constant 0 : i32
    %c0_i32_1 = arith.constant 0 : i32
    return %c0_i32, %c0_i32_0 : i32, i32
  }
  func.func @transform_10(%arg0: i32, %arg1: i32) -> (i32, i32) {
    %c0_i32 = arith.constant 0 : i32
    %c0_i32_0 = arith.constant 0 : i32
    %c0_i32_1 = arith.constant 0 : i32
    return %c0_i32, %c0_i32_0 : i32, i32
  }
  func.func @transform_11(%arg0: i32, %arg1: i32) -> (i32, i32) {
    %c0_i32 = arith.constant 0 : i32
    %c0_i32_0 = arith.constant 0 : i32
    %c0_i32_1 = arith.constant 0 : i32
    return %c0_i32, %c0_i32_0 : i32, i32
  }
  func.func @transform_12(%arg0: i32, %arg1: i32) -> (i32, i32) {
    %c0_i32 = arith.constant 0 : i32
    %c0_i32_0 = arith.constant 0 : i32
    %c0_i32_1 = arith.constant 0 : i32
    return %c0_i32, %c0_i32_0 : i32, i32
  }
  func.func @transform_13(%arg0: i32, %arg1: i32) -> (i32, i32) {
    %c0_i32 = arith.constant 0 : i32
    %c0_i32_0 = arith.constant 0 : i32
    %c0_i32_1 = arith.constant 0 : i32
    return %c0_i32, %c0_i32_0 : i32, i32
  }
  func.func @transform_14(%arg0: i32, %arg1: i32) -> (i32, i32) {
    %c0_i32 = arith.constant 0 : i32
    %c0_i32_0 = arith.constant 0 : i32
    %c0_i32_1 = arith.constant 0 : i32
    return %c0_i32, %c0_i32_0 : i32, i32
  }
  func.func @transform_15(%arg0: i32, %arg1: i32) -> (i32, i32) {
    %c0_i32 = arith.constant 0 : i32
    %c0_i32_0 = arith.constant 0 : i32
    %c0_i32_1 = arith.constant 0 : i32
    return %c0_i32, %c0_i32_0 : i32, i32
  }
  func.func @transform_16(%arg0: i32, %arg1: i32) -> (i32, i32) {
    %c0_i32 = arith.constant 0 : i32
    %c0_i32_0 = arith.constant 0 : i32
    %c0_i32_1 = arith.constant 0 : i32
    return %c0_i32, %c0_i32_0 : i32, i32
  }
  func.func @transform_17(%arg0: i32, %arg1: i32) -> (i32, i32) {
    %c0_i32 = arith.constant 0 : i32
    %c0_i32_0 = arith.constant 0 : i32
    %c0_i32_1 = arith.constant 0 : i32
    return %c0_i32, %c0_i32_0 : i32, i32
  }
  func.func @transform_18(%arg0: i32, %arg1: i32) -> (i32, i32) {
    %c0_i32 = arith.constant 0 : i32
    %c0_i32_0 = arith.constant 0 : i32
    %c0_i32_1 = arith.constant 0 : i32
    return %c0_i32, %c0_i32_0 : i32, i32
  }
  func.func @transform_19(%arg0: i32, %arg1: i32) -> (i32, i32) {
    %c0_i32 = arith.constant 0 : i32
    %c0_i32_0 = arith.constant 0 : i32
    %c0_i32_1 = arith.constant 0 : i32
    return %c0_i32, %c0_i32_0 : i32, i32
  }
  func.func @transform_20(%arg0: i32, %arg1: i32) -> (i32, i32) {
    %c0_i32 = arith.constant 0 : i32
    %c0_i32_0 = arith.constant 0 : i32
    %c0_i32_1 = arith.constant 0 : i32
    return %c0_i32, %c0_i32_0 : i32, i32
  }
  func.func @transform_21(%arg0: i32, %arg1: i32) -> (i32, i32) {
    %c0_i32 = arith.constant 0 : i32
    %c0_i32_0 = arith.constant 0 : i32
    %c0_i32_1 = arith.constant 0 : i32
    return %c0_i32, %c0_i32_0 : i32, i32
  }
  func.func @transform_22(%arg0: i32, %arg1: i32) -> (i32, i32) {
    %c0_i32 = arith.constant 0 : i32
    %c0_i32_0 = arith.constant 0 : i32
    %c0_i32_1 = arith.constant 0 : i32
    return %c0_i32, %c0_i32_0 : i32, i32
  }
  func.func @transform_23(%arg0: i32, %arg1: i32) -> (i32, i32) {
    %c0_i32 = arith.constant 0 : i32
    %c0_i32_0 = arith.constant 0 : i32
    %c0_i32_1 = arith.constant 0 : i32
    return %c0_i32, %c0_i32_0 : i32, i32
  }
  func.func @transform_24(%arg0: i32, %arg1: i32) -> (i32, i32, i32) {
    %c0_i32 = arith.constant 0 : i32
    %c0_i32_0 = arith.constant 0 : i32
    return %arg0, %arg1, %c0_i32 : i32, i32, i32
  }
}

</mosaic_0001>

<bundles_post_ra>
// kernel: tpu_custom_call.1
= control target key start
LH: loop header
LB: loop body
LE: loop exit
PB: predicated region body
PF: predicated region fallthrough
CT: control target
= control target key end

     0   :  { %s8856_s0 = inlined_call_operand.vmem [shape: bf16[2,16,32], index: 0, kind: input, shape index: {}]   ;;  %s8857_s1 = inlined_call_operand.vmem [shape: bf16[2,16,32], index: 1, kind: input, shape index: {}]   ;;  %s8858_s2 = inlined_call_operand.hbm [shape: f32[1,32], index: 2, kind: input, shape index: {}]   ;;  %s8859_s3 = inlined_call_operand.hbm [shape: f32[1,32], index: 3, kind: input, shape index: {}]   ;;  %s8860_s4 = inlined_call_operand.vmem [shape: bf16[32,96], index: 4, kind: input, shape index: {}]   ;;  %s8861_s5 = inlined_call_operand.hbm [shape: f32[1,96], index: 5, kind: input, shape index: {}]   ;;  %s8862_s6 = inlined_call_operand.vmem [shape: bf16[32,32], index: 6, kind: input, shape index: {}]   ;;  %s8863_s7 = inlined_call_operand.hbm [shape: f32[1,32], index: 7, kind: input, shape index: {}]   ;;  %s8864_s8 = inlined_call_operand.hbm [shape: f32[1,32], index: 8, kind: input, shape index: {}]   ;;  %s8865_s9 = inlined_call_operand.hbm [shape: f32[1,32], index: 9, kind: input, shape index: {}]   ;;  %s8866_s10 = inlined_call_operand.vmem [shape: bf16[32,32], index: 10, kind: input, shape index: {}]   ;;  %s8867_s11 = inlined_call_operand.hbm [shape: f32[1,32], index: 11, kind: input, shape index: {}]   ;;  %s8868_s12 = inlined_call_operand.vmem [shape: bf16[32,32], index: 12, kind: input, shape index: {}]   ;;  %s8869_s13 = inlined_call_operand.hbm [shape: f32[1,32], index: 13, kind: input, shape index: {}]   ;;  %s8870_s14 = inlined_call_operand.hbm [shape: bf16[32,32], index: 14, kind: input, shape index: {}]   ;;  %s8871_s15 = inlined_call_operand.hbm [shape: f32[1,32], index: 15, kind: input, shape index: {}]   ;;  %s8872_s16 = inlined_call_operand.hbm [shape: bf16[32,32], index: 16, kind: input, shape index: {}]   ;;  %s8873_s17 = inlined_call_operand.hbm [shape: f32[1,32], index: 17, kind: input, shape index: {}]   ;;  %s8874_s18 = inlined_call_operand.hbm [shape: f32[1,32], index: 18, kind: input, shape index: {}]   ;;  %s8875_s19 = inlined_call_operand.vmem [shape: f32[1,32], index: 19, kind: input, shape index: {}]   ;;  %s8876_s20 = inlined_call_operand.hbm [shape: bf16[32,128], index: 20, kind: input, shape index: {}]   ;;  %s8877_s21 = inlined_call_operand.vmem [shape: f32[1,128], index: 21, kind: input, shape index: {}]   ;;  %s8878_s22 = inlined_call_operand.vmem [shape: bf16[128,32], index: 22, kind: input, shape index: {}]   ;;  %s8879_s23 = inlined_call_operand.vmem [shape: f32[1,32], index: 23, kind: input, shape index: {}]   ;;  %s8880_s24 = inlined_call_operand.hbm [shape: bf16[2,16,32], index: 24, kind: output, shape index: {}]  }
   0x1   :  { %8899 = sst [smem:[#allocation52_spill]] %s8856_s0 }
   0x2   :  { %8900 = sst [smem:[#allocation53_spill]] %s8857_s1 }
   0x3   :  { %8901 = sst [smem:[#allocation54_spill]] %s8858_s2 }
   0x4   :  { %8902 = sst [smem:[#allocation55_spill]] %s8859_s3 }
   0x5   :  { %8903 = sst [smem:[#allocation56_spill]] %s8860_s4 }
   0x6   :  { %8904 = sst [smem:[#allocation57_spill]] %s8861_s5 }
   0x7   :  { %8905 = sst [smem:[#allocation58_spill]] %s8862_s6 }
   0x8   :  { %8906 = sst [smem:[#allocation59_spill]] %s8863_s7 }
   0x9   :  { %8907 = sst [smem:[#allocation60_spill]] %s8864_s8 }
   0xa   :  { %8908 = sst [smem:[#allocation61_spill]] %s8877_s21 }
   0xb   :  { %8909 = sst [smem:[#allocation62_spill]] %s8879_s23 }
   0xc   :  { %8910 = sst [smem:[#allocation63_spill]] %s8880_s24 }
   0xd   :  { %29 = vsyncpa [#allocation10], 0 }
   0xe   :  { %30 = vsyncpa [#allocation13], 0 }
   0xf   :  { %31 = vsyncpa [#allocation16], 0 }
  0x10   :  { %32 = vsyncpa [#allocation19], 0 }
  0x11   :  { %33 = vsyncpa [#allocation22], 0 }
  0x12   :  { %34 = vsyncpa [#allocation25], 0 }
  0x13   :  { %35 = vsyncpa [#allocation28], 0 }
  0x14   :  { %36 = vsyncpa [#allocation31], 0 }
  0x15   :  { %37 = vsyncpa [#allocation11], 0 }
  0x16   :  { %39 = vsyncpa [#allocation11 + $0x1], 0  ;;  %s7666_s5 = smov 0   ;;  %s7668_s26 = smov 0  }
  0x17   :  { %s7670_s27 = smov 0   ;;  %s7672_s28 = smov 0  }
  0x18   :  { %s7674_s6 = smov 0   ;;  %s7676_s2 = smov 0  }
  0x19   :  { %s7678_s29 = smov 0   ;;  %s7680_s0 = smov 0  }
  0x1a LB: > { %8911 = sst [smem:[#allocation42_spill]] %s7465_s5  ;;  %s6031_s7 = sadd.s32 4294967295, %s7493_s0   ;;  %s7493_s0 = sphi %s7680_s0, %s45_s0   ;;  %s7489_s29 = sphi %s7678_s29, %s8955_s29   ;;  %s7485_s2 = sphi %s7676_s2, %s8954_s2   ;;  %s7481_s6 = sphi %s7674_s6, %s8953_s6   ;;  %s7477_s28 = sphi %s7672_s28, %s8952_s28   ;;  %s7473_s27 = sphi %s7670_s27, %s8951_s27   ;;  %s7469_s26 = sphi %s7668_s26, %s8957_s26   ;;  %s7465_s5 = sphi %s7666_s5, %s8956_s5  }
  0x1b   : > { %8912 = sst [smem:[#allocation43_spill]] %s7473_s27  ;;  %s6032_s30 = sadd.s32 4294967294, %s7493_s0  }
  0x1c   : > { %8913 = sst [smem:[#allocation44_spill]] %s7485_s2  ;;  %s54_s3 = sadd.s32 1, %s7485_s2 }
  0x1d   : > { %8914 = sst [smem:[#allocation45_spill]] %s7489_s29  ;;  %s57_s25 = sadd.s32 1, %s7489_s29 }
  0x1e   : > { %8915 = sst [smem:[#allocation46_spill]] %s7493_s0  ;;  %p55_p0 = scmp.ge.s32.totalorder %s54_s3, 2 }
  0x1f   : > { %s580_s8 = sadd.s32 1, %s7473_s27  ;;  %p590_p1 = scmp.ne.s32.totalorder %s7473_s27, %s7469_s26 }
  0x20   : > { %p591_p2 = scmp.eq.s32.totalorder %s6031_s7, 3  ;;  %s8959_s3 = smov (%p55_p0, %s54_s3), 0 }
  0x21   : > { %8916 = sst [smem:[#allocation47_spill]] %s8959_s3  ;;  %s8961_s25 = smov (!%p55_p0, %s57_s25), %s7489_s29 }
  0x22   : > { %s576_s4 = ssub.s32 %s7485_s2, %s8959_s3  ;;  %p7718_p3 = por %p591_p2, %p590_p1 }
  0x23   : > { %p59_p4 = scmp.ge.s32.totalorder %s8961_s25, 2  ;;  %p596_p5 = scmp.ne.s32.totalorder %s7469_s26, %s7465_s5 }
  0x24   : > { %s8917_s1 = scalar_select %p7718_p3, 1, 0 }
  0x25   : > { %p597_p6 = scmp.eq.s32.totalorder %s6032_s30, 3  ;;  %p6033_p7 = scmp.ge.s32.totalorder %s7493_s0, 1 }
  0x26   : > { %8918 = sst [smem:[#allocation48_spill]] %s8917_s1  ;;  %s8963_s25 = smov (%p59_p4, %s8961_s25), 0 }
  0x27   : > { %8919 = sst [smem:[#allocation49_spill]] %s8963_s25  ;;  %p7727_p8 = por %p597_p6, %p596_p5 }
  0x28   : > { %p604_p9 = scmp.lt.s32.totalorder %s7493_s0, 5  ;;  %s575_s23 = ssub.s32 %s7489_s29, %s8963_s25 }
  0x29   : > { %s8920_s24 = scalar_select %p7727_p8, 1, 0 }
  0x2a   : > { %s577_s21 = sor.u32 %s576_s4, %s575_s23  ;;  %p7734_p10 = pnand %p6033_p7, %p604_p9 }
  0x2b   : > { %8921 = sst [smem:[#allocation50_spill]] %s8920_s24  ;;  %p578_p11 = scmp.eq.s32.totalorder %s577_s21, 0 }
  0x2c   : > { %p7738_p12 = scmp.eq.s32.totalorder %s6031_s7, 0  ;;  %p6695_p13 = pneg %p7734_p10 }
  0x2d   : > { %s7745_s30 = scalar_select %p578_p11, %s7473_s27, %s580_s8  }
  0x2e   : > { %s8923_s2 = scalar_select %p7738_p12, 1, 0 }
  0x2f   : > { %8924 = sst [smem:[#allocation51_spill]] %s7745_s30  ;;  %p7749_p0 = pnand %p7738_p12, %p6695_p13 }
  0x30   : > { %s7495_s23 = smov [#allocation12]   ;;  %s7496_s25 = smov [#allocation15]  }
  0x31   : > { %s628_s4 = sshll.u32 %s7495_s23, 4  ;;  %s656_s21 = sshll.u32 %s7496_s25, 4  ;;  %s629_s4 = int_to_ptr.vmem [resolvable:$true] %s628_s4  ;;  %s657_s21 = int_to_ptr.vmem [resolvable:$true] %s656_s21 }
  0x32   : > { %p7755_p1 = pneg %p7749_p0  ;;  %s7016_s29 = scalar_lea.vmem %s629_s4, 16 }
  0x33   : > { %p7017_p2 = scmp.ne.s32.totalorder %s629_s4, %s7016_s29  ;;  %s7023_s8 = scalar_lea.vmem %s629_s4, 32 }
  0x34   : > { %p7024_p6 = scmp.lt.s32.totalorder %s629_s4, %s629_s4  ;;  %p7025_p7 = scmp.lt.s32.totalorder %s7023_s8, %s7016_s29 }
  0x35   : > { %p7019_p4 = pnand %p7017_p2, %p7755_p1 }
  0x36   : > { %p7026_p9 = por %p7025_p7, %p7024_p6 }
  0x37   : > { %p7020_p5 = pneg %p7019_p4 }
  0x39   : > { %p7027_p11 = pnand %p7026_p9, %p7020_p5 }
  0x3b   : > { %7030 = shalt.err (!%p7027_p11)
}
  0x3c   : > { %s8927_s30 = sld [smem:[#allocation55_spill]]  ;;  %s7042_s27 = scalar_lea.vmem %s657_s21, 16 }
  0x3d   : > { %p7043_p13 = scmp.ne.s32.totalorder %s657_s21, %s7042_s27  ;;  %s7049_s5 = scalar_lea.vmem %s657_s21, 32 }
  0x3e   : > { %p7050_p4 = scmp.lt.s32.totalorder %s657_s21, %s657_s21  ;;  %p7051_p3 = scmp.lt.s32.totalorder %s7049_s5, %s7042_s27 }
  0x3f   : > { %p7045_p8 = pnand %p7043_p13, %p7755_p1 }
  0x40   : > { %p7052_p12 = por %p7051_p3, %p7050_p4 }
  0x41   : > { %p7046_p2 = pneg %p7045_p8 }
  0x42   : > { %6701 = dma.hbm_to_vmem [thread:$0]  (!%p7749_p0), %s8927_s30, 16, %s629_s4, [#allocation13]  }
  0x43   : > { %p7053_p6 = pnand %p7052_p12, %p7046_p2 }
  0x45   : > { %7056 = shalt.err (!%p7053_p6)
}
  0x46   : > { %s8928_s0 = sld [smem:[#allocation59_spill]]  ;;  %s7497_s30 = smov [#allocation18]  }
  0x47   : > { %s678_s4 = sshll.u32 %s7497_s30, 4  ;;  %s7498_s25 = smov [#allocation21]   ;;  %s679_s4 = int_to_ptr.vmem [resolvable:$true] %s678_s4 }
  0x48   : > { %s706_s23 = sshll.u32 %s7498_s25, 4  ;;  %s7068_s1 = scalar_lea.vmem %s679_s4, 16  ;;  %s707_s23 = int_to_ptr.vmem [resolvable:$true] %s706_s23 }
  0x49   : > { %p7069_p8 = scmp.ne.s32.totalorder %s679_s4, %s7068_s1  ;;  %s7075_s5 = scalar_lea.vmem %s679_s4, 32 }
  0x4a   : > { %p7076_p3 = scmp.lt.s32.totalorder %s679_s4, %s679_s4  ;;  %p7077_p12 = scmp.lt.s32.totalorder %s7075_s5, %s7068_s1 }
  0x4b   : > { %p7071_p5 = pnand %p7069_p8, %p7755_p1 }
  0x4c   : > { %6707 = dma.hbm_to_vmem [thread:$0]  (!%p7749_p0), %s8928_s0, 16, %s657_s21, [#allocation16]  }
  0x4d   : > { %p7072_p7 = pneg %p7071_p5  ;;  %p7078_p9 = por %p7077_p12, %p7076_p3 }
  0x4f   : > { %p7079_p11 = pnand %p7078_p9, %p7072_p7 }
  0x51   : > { %7082 = shalt.err (!%p7079_p11)
}
  0x52   : > { %6713 = dma.hbm_to_vmem [thread:$0]  (!%p7749_p0), %s8865_s9, 16, %s679_s4, [#allocation19]  }
  0x53   : > { %s7094_s21 = scalar_lea.vmem %s707_s23, 16  ;;  %s7101_s29 = scalar_lea.vmem %s707_s23, 32 }
  0x54   : > { %p7095_p13 = scmp.ne.s32.totalorder %s707_s23, %s7094_s21  ;;  %p7102_p6 = scmp.lt.s32.totalorder %s707_s23, %s707_s23 }
  0x55   : > { %p7103_p8 = scmp.lt.s32.totalorder %s7101_s29, %s7094_s21 }
  0x56   : > { %p7097_p2 = pnand %p7095_p13, %p7755_p1 }
  0x57   : > { %p7104_p5 = por %p7103_p8, %p7102_p6 }
  0x58   : > { %p7098_p4 = pneg %p7097_p2 }
  0x5a   : > { %p7105_p3 = pnand %p7104_p5, %p7098_p4 }
  0x5c   : > { %7108 = shalt.err (!%p7105_p3)
}
  0x5d   : > { %6719 = dma.hbm_to_vmem [thread:$0]  (!%p7749_p0), %s8869_s13, 16, %s707_s23, [#allocation22]  }
  0x5e   : > { %s7499_s30 = smov [#allocation24]   ;;  %s7500_s25 = smov [#allocation27]  }
  0x5f   : > { %s730_s4 = sshll.u32 %s7499_s30, 4  ;;  %s754_s5 = sshll.u32 %s7500_s25, 4  ;;  %s731_s4 = int_to_ptr.vmem [resolvable:$true] %s730_s4  ;;  %s755_s5 = int_to_ptr.vmem [resolvable:$true] %s754_s5 }
  0x60   : > { %s7120_s27 = scalar_lea.vmem %s731_s4, 16  ;;  %s7127_s0 = scalar_lea.vmem %s731_s4, 32 }
  0x61   : > { %p7121_p7 = scmp.ne.s32.totalorder %s731_s4, %s7120_s27  ;;  %p7128_p11 = scmp.lt.s32.totalorder %s731_s4, %s731_s4 }
  0x62   : > { %p7129_p13 = scmp.lt.s32.totalorder %s7127_s0, %s7120_s27 }
  0x63   : > { %p7123_p12 = pnand %p7121_p7, %p7755_p1 }
  0x64   : > { %p7130_p2 = por %p7129_p13, %p7128_p11 }
  0x65   : > { %p7124_p9 = pneg %p7123_p12 }
  0x67   : > { %p7131_p4 = pnand %p7130_p2, %p7124_p9 }
  0x69   : > { %7134 = shalt.err (!%p7131_p4)
}
  0x6a   : > { %6725 = dma.hbm_to_vmem [thread:$0]  (!%p7749_p0), %s8871_s15, 16, %s731_s4, [#allocation25]  }
  0x6b   : > { %s7146_s29 = scalar_lea.vmem %s755_s5, 16  ;;  %s7153_s1 = scalar_lea.vmem %s755_s5, 32 }
  0x6c   : > { %p7147_p6 = scmp.ne.s32.totalorder %s755_s5, %s7146_s29  ;;  %p7154_p3 = scmp.lt.s32.totalorder %s755_s5, %s755_s5 }
  0x6d   : > { %p7155_p7 = scmp.lt.s32.totalorder %s7153_s1, %s7146_s29 }
  0x6e   : > { %p7149_p8 = pnand %p7147_p6, %p7755_p1 }
  0x6f   : > { %p7156_p12 = por %p7155_p7, %p7154_p3 }
  0x70   : > { %p7150_p5 = pneg %p7149_p8 }
  0x72   : > { %p7157_p11 = pnand %p7156_p12, %p7150_p5 }
  0x74   : > { %7160 = shalt.err (!%p7157_p11)
}
  0x75   : > { %6731 = dma.hbm_to_vmem [thread:$0]  (!%p7749_p0), %s8873_s17, 16, %s755_s5, [#allocation28]  }
  0x76   : > { %s7501_s4 = smov [#allocation9]   ;;  %s7502_s27 = smov [#allocation14]  }
  0x77   : > { %s617_s25 = sshll.u32 %s7501_s4, 4  ;;  %s642_s0 = sshll.u32 %s7502_s27, 4  ;;  %s618_s25 = int_to_ptr.vmem [resolvable:$true] %s617_s25  ;;  %s643_s0 = int_to_ptr.vmem [resolvable:$true] %s642_s0 }
  0x78   : > { %s7172_s21 = scalar_lea.vmem %s618_s25, 16  ;;  %s7179_s23 = scalar_lea.vmem %s618_s25, 32 }
  0x79   : > { %p7173_p9 = scmp.ne.s32.totalorder %s618_s25, %s7172_s21  ;;  %p7180_p4 = scmp.lt.s32.totalorder %s618_s25, %s618_s25 }
  0x7a   : > { %p7181_p6 = scmp.lt.s32.totalorder %s7179_s23, %s7172_s21 }
  0x7b   : > { %p7175_p13 = pnand %p7173_p9, %p7755_p1 }
  0x7c   : > { %p7182_p8 = por %p7181_p6, %p7180_p4 }
  0x7d   : > { %p7176_p2 = pneg %p7175_p13 }
  0x7f   : > { %p7183_p5 = pnand %p7182_p8, %p7176_p2 }
  0x81   : > { %7186 = shalt.err (!%p7183_p5)
}
  0x82   : > { %s8929_s1 = sld [smem:[#allocation54_spill]]  ;;  %s7198_s8 = scalar_lea.vmem %s643_s0, 16 }
  0x83   : > { %p7199_p3 = scmp.ne.s32.totalorder %s643_s0, %s7198_s8  ;;  %s7205_s30 = scalar_lea.vmem %s643_s0, 32 }
  0x84   : > { %p7206_p11 = scmp.lt.s32.totalorder %s643_s0, %s643_s0  ;;  %p7207_p9 = scmp.lt.s32.totalorder %s7205_s30, %s7198_s8 }
  0x85   : > { %p7201_p7 = pnand %p7199_p3, %p7755_p1 }
  0x86   : > { %p7208_p13 = por %p7207_p9, %p7206_p11 }
  0x87   : > { %p7202_p12 = pneg %p7201_p7 }
  0x88   : > { %6698 = dma.hbm_to_vmem [thread:$0]  (!%p7749_p0), %s8929_s1, 16, %s618_s25, [#allocation10]  }
  0x89   : > { %p7209_p4 = pnand %p7208_p13, %p7202_p12 }
  0x8b   : > { %7212 = shalt.err (!%p7209_p4)
}
  0x8c   : > { %s8930_s21 = sld [smem:[#allocation57_spill]]  ;;  %s7503_s25 = smov [#allocation17]  }
  0x8d   : > { %s667_s23 = sshll.u32 %s7503_s25, 4  ;;  %s7504_s29 = smov [#allocation20]   ;;  %s668_s23 = int_to_ptr.vmem [resolvable:$true] %s667_s23 }
  0x8e   : > { %s692_s5 = sshll.u32 %s7504_s29, 4  ;;  %s7224_s1 = scalar_lea.vmem %s668_s23, 16  ;;  %s693_s5 = int_to_ptr.vmem [resolvable:$true] %s692_s5 }
  0x8f   : > { %p7225_p2 = scmp.ne.s32.totalorder %s668_s23, %s7224_s1  ;;  %s7231_s8 = scalar_lea.vmem %s668_s23, 32 }
  0x90   : > { %p7232_p5 = scmp.lt.s32.totalorder %s668_s23, %s668_s23  ;;  %p7233_p3 = scmp.lt.s32.totalorder %s7231_s8, %s7224_s1 }
  0x91   : > { %p7227_p6 = pnand %p7225_p2, %p7755_p1 }
  0x92   : > { %6704 = dma.hbm_to_vmem [thread:$0]  (!%p7749_p0), %s8930_s21, 16, %s643_s0, [#allocation13]  }
  0x93   : > { %p7228_p8 = pneg %p7227_p6  ;;  %p7234_p7 = por %p7233_p3, %p7232_p5 }
  0x95   : > { %p7235_p12 = pnand %p7234_p7, %p7228_p8 }
  0x97   : > { %7238 = shalt.err (!%p7235_p12)
}
  0x98   : > { %s8931_s4 = sld [smem:[#allocation60_spill]]  ;;  %s7250_s27 = scalar_lea.vmem %s693_s5, 16 }
  0x99   : > { %p7251_p11 = scmp.ne.s32.totalorder %s693_s5, %s7250_s27  ;;  %s7257_s21 = scalar_lea.vmem %s693_s5, 32 }
  0x9a   : > { %p7258_p4 = scmp.lt.s32.totalorder %s693_s5, %s693_s5  ;;  %p7259_p2 = scmp.lt.s32.totalorder %s7257_s21, %s7250_s27 }
  0x9b   : > { %p7253_p9 = pnand %p7251_p11, %p7755_p1 }
  0x9c   : > { %p7260_p6 = por %p7259_p2, %p7258_p4 }
  0x9d   : > { %p7254_p13 = pneg %p7253_p9 }
  0x9e   : > { %6710 = dma.hbm_to_vmem [thread:$0]  (!%p7749_p0), %s8931_s4, 16, %s668_s23, [#allocation16]  }
  0x9f   : > { %p7261_p5 = pnand %p7260_p6, %p7254_p13 }
  0xa1   : > { %7264 = shalt.err (!%p7261_p5)
}
  0xa2   : > { %6716 = dma.hbm_to_vmem [thread:$0]  (!%p7749_p0), %s8867_s11, 16, %s693_s5, [#allocation19]  }
  0xa3   : > { %s7505_s23 = smov [#allocation23]  }
  0xa4   : > { %s716_s1 = sshll.u32 %s7505_s23, 4  ;;  %s717_s1 = int_to_ptr.vmem [resolvable:$true] %s716_s1 }
  0xa5   : > { %s7276_s8 = scalar_lea.vmem %s717_s1, 256  ;;  %p7284_p12 = scmp.lt.s32.totalorder %s717_s1, %s717_s1 }
  0xa6   : > { %p7277_p8 = scmp.ne.s32.totalorder %s717_s1, %s7276_s8  ;;  %p7285_p11 = scmp.lt.s32.totalorder %s7276_s8, %s7276_s8 }
  0xa8   : > { %p7279_p3 = pnand %p7277_p8, %p7755_p1  ;;  %p7286_p9 = por %p7285_p11, %p7284_p12 }
  0xaa   : > { %p7280_p7 = pneg %p7279_p3 }
  0xac   : > { %p7287_p13 = pnand %p7286_p9, %p7280_p7 }
  0xae   : > { %7290 = shalt.err (!%p7287_p13)
}
  0xaf   : > { %s7506_s30 = smov 64   ;;  %s7507_s0 = smov 4  }
  0xb0   : > { %6722 = dma.hbm_to_vmem [thread:$0]  (!%p7749_p0), %s8870_s14, 256, %s717_s1, [#allocation22], %s7506_s30, %s7506_s30, %s7507_s0  }
  0xb1   : > { %s7508_s27 = smov [#allocation26]   ;;  %s7509_s25 = smov [#allocation29]  }
  0xb2   : > { %s740_s21 = sshll.u32 %s7508_s27, 4  ;;  %s765_s29 = sshll.u32 %s7509_s25, 4  ;;  %s741_s21 = int_to_ptr.vmem [resolvable:$true] %s740_s21  ;;  %s766_s29 = int_to_ptr.vmem [resolvable:$true] %s765_s29 }
  0xb3   : > { %s7302_s23 = scalar_lea.vmem %s741_s21, 256  ;;  %p7310_p5 = scmp.lt.s32.totalorder %s741_s21, %s741_s21 }
  0xb4   : > { %p7303_p4 = scmp.ne.s32.totalorder %s741_s21, %s7302_s23  ;;  %p7311_p8 = scmp.lt.s32.totalorder %s7302_s23, %s7302_s23 }
  0xb6   : > { %p7305_p2 = pnand %p7303_p4, %p7755_p1  ;;  %p7312_p3 = por %p7311_p8, %p7310_p5 }
  0xb8   : > { %p7306_p6 = pneg %p7305_p2 }
  0xba   : > { %p7313_p7 = pnand %p7312_p3, %p7306_p6 }
  0xbc   : > { %7316 = shalt.err (!%p7313_p7)
}
  0xbd   : > { %6728 = dma.hbm_to_vmem [thread:$0]  (!%p7749_p0), %s8872_s16, 256, %s741_s21, [#allocation25], %s7506_s30, %s7506_s30, %s7507_s0  }
  0xbe   : > { %s7328_s5 = scalar_lea.vmem %s766_s29, 16  ;;  %s7335_s4 = scalar_lea.vmem %s766_s29, 32 }
  0xbf   : > { %p7329_p12 = scmp.ne.s32.totalorder %s766_s29, %s7328_s5  ;;  %p7336_p13 = scmp.lt.s32.totalorder %s766_s29, %s766_s29 }
  0xc0   : > { %p7337_p4 = scmp.lt.s32.totalorder %s7335_s4, %s7328_s5 }
  0xc1   : > { %p7331_p11 = pnand %p7329_p12, %p7755_p1 }
  0xc2   : > { %p7338_p2 = por %p7337_p4, %p7336_p13 }
  0xc3   : > { %p7332_p9 = pneg %p7331_p11 }
  0xc5   : > { %p7339_p6 = pnand %p7338_p2, %p7332_p9 }
  0xc7   : > { %7342 = shalt.err (!%p7339_p6)
}
  0xc8   : > { %6734 = dma.hbm_to_vmem [thread:$0]  (!%p7749_p0), %s8874_s18, 16, %s766_s29, [#allocation28]  }
  0xc9   : > { %s7510_s23 = smov [#allocation30]  }
  0xca   : > { %s778_s21 = sshll.u32 %s7510_s23, 4  ;;  %s779_s21 = int_to_ptr.vmem [resolvable:$true] %s778_s21 }
  0xcb   : > { %s7354_s1 = scalar_lea.vmem %s779_s21, 256  ;;  %p7362_p7 = scmp.lt.s32.totalorder %s779_s21, %s779_s21 }
  0xcc   : > { %p7355_p5 = scmp.ne.s32.totalorder %s779_s21, %s7354_s1  ;;  %p7363_p12 = scmp.lt.s32.totalorder %s7354_s1, %s7354_s1 }
  0xce   : > { %p7357_p8 = pnand %p7355_p5, %p7755_p1  ;;  %p7364_p11 = por %p7363_p12, %p7362_p7 }
  0xd0   : > { %p7358_p3 = pneg %p7357_p8 }
  0xd2   : > { %p7365_p9 = pnand %p7364_p11, %p7358_p3 }
  0xd4   : > { %7368 = shalt.err (!%p7365_p9)
}
  0xd5   : > { %6737 = dma.hbm_to_vmem [thread:$0]  (!%p7749_p0), %s8876_s20, 256, %s779_s21, [#allocation31], %s7506_s30, %s7506_s30, %s7507_s0  }
  0xd6   : > { %819 = sbr.rel (%p7734_p10) target bundleno = 6724 (0x1a44), region = 116  ;;  %p8932_p1 = scmp.ne.s32.totalorder (!%p7734_p10), %s8923_s2, 0 }
  0xdb   : > { %7428 = dma.done.wait (%p8932_p1), [#allocation10], 16  }
  0xdc   : > { %7430 = vsyncadd (%p8932_p1), [#allocation10], 4294967280 }
  0xdd   : > { %7432 = dma.done.wait (%p8932_p1), [#allocation13], 32  }
  0xde   : > { %7434 = vsyncadd (%p8932_p1), [#allocation13], 4294967264 }
  0xdf   : > { %7436 = dma.done.wait (%p8932_p1), [#allocation16], 32  }
  0xe0   : > { %7438 = vsyncadd (%p8932_p1), [#allocation16], 4294967264 }
  0xe1   : > { %7440 = dma.done.wait (%p8932_p1), [#allocation19], 32  }
  0xe2   : > { %7442 = vsyncadd (%p8932_p1), [#allocation19], 4294967264 }
  0xe3   : > { %7444 = dma.done.wait (%p8932_p1), [#allocation22], 272  }
  0xe4   : > { %7446 = vsyncadd (%p8932_p1), [#allocation22], 4294967024 }
  0xe5   : > { %7448 = dma.done.wait (%p8932_p1), [#allocation25], 272  }
  0xe6   : > { %7450 = vsyncadd (%p8932_p1), [#allocation25], 4294967024 }
  0xe7   : > { %7452 = dma.done.wait (%p8932_p1), [#allocation28], 32  }
  0xe8   : > { %7454 = vsyncadd (%p8932_p1), [#allocation28], 4294967264 }
  0xe9   : > { %7456 = dma.done.wait (%p8932_p1), [#allocation31], 256  }
  0xea   : > { %7458 = vsyncadd (%p8932_p1), [#allocation31], 4294967040  ;;  %s939_s24 = sand.u32 1, %s7469_s26   ;;  %p942_p10 = scmp.lt.s32.totalorder %s7481_s6, 1 }
  0xeb   : > { %s7904_s3 = sshll.u32 %s939_s24, 2  ;;  %s8933_s4 = sld [smem:[#allocation52_spill]] }
  0xec   : > { %s943_s7 = scalar_select %p942_p10, %s7481_s6, 1 }
  0xed   : > { %s8934_s23 = sld [smem:[#allocation53_spill]]  ;;  %s941_s1 = scalar_lea.vmem [#allocation32], %s7904_s3 }
  0xee   : > { %s6226_s30 = sshll.u32 %s943_s7, 3  ;;  %p6069_p0 = scmp.ne.s32.totalorder %s7477_s28, 0 }
  0xef   : > { %s8935_s7 = sld [smem:[#allocation56_spill]] (!%p6069_p0)  ;;  %s7515_s8 = smov (!%p6069_p0), 112  }
  0xf0   : > { %956 = sbr.rel (%p6069_p0) target bundleno = 1043 (0x413), region = 176  ;;  %s7516_s29 = smov (!%p6069_p0), 104  }
  0xf1   : > { %s7910_s27 = scalar_lea.vmem %s8933_s4, %s6226_s30 }
  0xf3   : > { %s7915_s21 = scalar_lea.vmem %s8934_s23, %s6226_s30  ;;  %s7511_s30 = smov (!%p6069_p0), 96  }
  0xf5   : > { %v6261_v0 = vld [vmem:[%s7910_s27] sm:$0xff]   ;;  %vm963_vm0 = vcmask 261120   ;;  %v6880_v5 = vld [vmem:[%s8935_s7 + $0x8] sm:$0xff]   ;;  %v7512_v18 = vmov 0.0   ;;  %vm7513_vm1 = vmmov 0   ;;  %v6885_v40 = vld [vmem:[#allocation23 + $0x8] sm:$0xff]  }
  0xf6   : > { %v6262_v1 = vunpack.c.l.bf16 %v6261_v0  ;;  %v6263_v2 = vunpack.c.h.bf16 %v6261_v0  ;;  %v6881_v16 = vld [vmem:[%s8935_s7] sm:$0xff]   ;;  %6361 = vmatprep.subr.bf16.mxu0 %v7512_v18  ;;  %6365 = vmatprep.mubr.msk.bf16.mxu0 %vm7513_vm1, %v7512_v18  ;;  %v6882_v19 = vld [vmem:[%s8868_s12 + $0x8] sm:$0xff]   ;;  %v6886_v42 = vld [vmem:[#allocation23] sm:$0xff]   ;;  %v7517_v0 = vmov 1983009808   ;;  %vm1405_vm2 = vcmask 60416  }
  0xf7   : > { %6369 = vmatprep.subr.bf16.mxu1 %v7512_v18  ;;  %6373 = vmatprep.mubr.msk.bf16.mxu1 %vm7513_vm1, %v7512_v18  ;;  %v6883_v20 = vld [vmem:[%s8868_s12] sm:$0xff]   ;;  %v6100_v56 = vld [vmem:[#allocation21] ss:$0 sm:$0xff] }
  0xf8   : > { %v964_v3 = vsel %vm963_vm0, %v6262_v1, 0.0  ;;  %v967_v4 = vsel %vm963_vm0, %v6263_v2, 0.0  ;;  %6370 = vmatpush3.bf16.msra.mxu1 %v6882_v19  ;;  %v6884_v21 = vld [vmem:[%s7915_s21] sm:$0xff]   ;;  %s7514_s21 = smov 120  }
  0xf9   : > { %965 = vadd.xlane.f32.xlu0 %v964_v3  ;;  %6371 = vmatprep.subr.bf16.mxu1 %v7512_v18  ;;  %v6072_v22 = vld [vmem:[#allocation14] ss:$0 sm:$0xff]  ;;  %v6070_v32 = vld [vmem:[#allocation9] ss:$0 sm:$0xff]  ;;  %v6071_v36 = vld [vmem:[#allocation12] ss:$0 sm:$0xff] }
  0xfa   : > { %v6105_v61 = vld [vmem:[#allocation24] ss:$0 sm:$0xff] }
  0xfc   : > { %6372 = vmatpush3.bf16.msra.mxu1 %v6883_v20 }
  0xfd   : > { %968 = vadd.xlane.f32.xlu0 %v967_v4  ;;  %v7518_v4 = vmov 1934713408  }
  0xff   : > { %6374 = vmatmul.mubr.msk.bf16.vlgmr.msra.gmra.mxu1 %vm963_vm0, %v6884_v21 }
 0x113   : > { %1030 = vrot.lane.b32.xlu0 %v6880_v5, %s7511_s30  ;;  %v1136_v5 = vunpack.c.l.s4 %v7518_v4 }
 0x182   : > { %v966_v6 = vpop.xlane.xlu0 %965 }
 0x183   : > { %v971_v7 = vmul.f32 0.03125, %v966_v6 }
 0x185   : > { %v973_v8 = vsub.f32 %v6262_v1, %v971_v7  ;;  %v1104_v1 = vunpack.c.l.s4 %v7517_v0 }
 0x186   : > { %v969_v9 = vpop.xlane.xlu0 %968 }
 0x187   : > { %v972_v10 = vmul.f32 0.03125, %v969_v9  ;;  %v975_v11 = vmul.f32 %v973_v8, %v973_v8  ;;  %v1105_v6 = vunpack.c.0.s8 %v1104_v1 }
 0x189   : > { %v974_v12 = vsub.f32 %v6263_v2, %v972_v10  ;;  %v977_v13 = vsel %vm963_vm0, %v975_v11, 0.0  ;;  %v1106_v2 = vlaneseq  ;;  %v1137_v10 = vunpack.c.0.s8 %v1136_v5 }
 0x18a   : > { %978 = vadd.xlane.f32.xlu1 %v977_v13  ;;  %v1031_v17 = vpop.permute.xlu0 %1030 }
 0x18b   : > { %v976_v14 = vmul.f32 %v974_v12, %v974_v12  ;;  %6362 = vmatpush3.bf16.msra.mxu0 %v1031_v17  ;;  %v1107_v7 = vshrl.u32 %v1106_v2, 7 }
 0x18c   : > { %6363 = vmatprep.subr.bf16.mxu0 %v7512_v18 }
 0x18d   : > { %v980_v15 = vsel %vm963_vm0, %v976_v14, 0.0  ;;  %v7987_v11 = vsub.s32 %v1105_v6, %v1107_v7 }
 0x18e   : > { %981 = vadd.xlane.f32.xlu1 %v980_v15 }
 0x19f   : > { %1028 = vrot.lane.b32.xlu1 %v6881_v16, %s7511_s30 }
 0x1a3   : > { %1034 = vrot.lane.b32.xlu1 %v6072_v22, %s7511_s30 }
 0x1bf   : > { %v1817_v43 = vpop.f32.mrf.mxu1 }
 0x1c0   : > { %v7955_v59 = vadd.f32 %v6100_v56, %v1817_v43 }
 0x1c1   : > { %v6375_v44 = vpop.f32.mrf.mxu1 }
 0x1c3   : > { %v1820_v45 = vpop.f32.mrf.mxu1 }
 0x1c4   : > { %v7960_v60 = vadd.f32 %v6100_v56, %v1820_v45 }
 0x1c5   : > { %v6376_v46 = vpop.f32.mrf.mxu1 }
 0x213   : > { %v979_v23 = vpop.xlane.xlu1 %978 }
 0x214   : > { %v983_v24 = vmul.f32 0.03125, %v979_v23 }
 0x216   : > { %v985_v25 = vadd.f32 1e-05, %v983_v24 }
 0x217   : > { %v982_v26 = vpop.xlane.xlu1 %981 }
 0x218   : > { %6887 = vrsqrt.f32 %v985_v25  ;;  %v984_v27 = vmul.f32 0.03125, %v982_v26 }
 0x21a   : > { %v986_v28 = vadd.f32 1e-05, %v984_v27 }
 0x21b   : > { %v1029_v29 = vpop.permute.xlu1 %1028 }
 0x21c   : > { %6889 = vrsqrt.f32 %v986_v28  ;;  %6364 = vmatpush3.bf16.msra.mxu0 %v1029_v29 }
 0x21d   : > { %6377 = vmatprep.subr.bf16.mxu0 %v7512_v18 }
 0x21f   : > { %v1035_v47 = vpop.permute.xlu1 %1034 }
 0x225   : > { %v6888_v30 = vpop.eup %6887 }
 0x226   : > { %v989_v31 = vmul.f32 %v6888_v30, %v973_v8 }
 0x228   : > { %v997_v35 = vmul.f32 %v6070_v32, %v989_v31 }
 0x229   : > { %v6890_v33 = vpop.eup %6889 }
 0x22a   : > { %v990_v34 = vmul.f32 %v6890_v33, %v974_v12  ;;  %v1005_v38 = vadd.f32 %v6071_v36, %v997_v35 }
 0x22c   : > { %v998_v37 = vmul.f32 %v6070_v32, %v990_v34 }
 0x22e   : > { %v1006_v39 = vadd.f32 %v6071_v36, %v998_v37 }
 0x230   : > { %v1007_v41 = vpack.c.bf16 %v1006_v39, %v1005_v38 }
 0x232   : > { %6366 = vmatmul.mubr.msk.bf16.vlgmr.msra.gmra.mxu0 %vm963_vm0, %v1007_v41 }
 0x233   : > { %6378 = vmatpush3.bf16.msra.mxu0 %v6885_v40  ;;  %6381 = vmatprep.mubr.msk.bf16.mxu0 %vm7513_vm1, %v7512_v18 }
 0x234   : > { %6379 = vmatprep.subr.bf16.mxu0 %v7512_v18  ;;  %v7990_v18 = vsub.s32 %v1137_v10, %v1107_v7 }
 0x237   : > { %6380 = vmatpush3.bf16.msra.mxu0 %v6886_v42 }
 0x23a   : > { %6382 = vmatmul.mubr.msk.bf16.vlgmr.msra.gmra.mxu0 %vm963_vm0, %v6884_v21 }
 0x2f2   : > { %v1074_v48 = vpop.f32.mrf.mxu0 }
 0x2f3   : > { %v1075_v49 = vadd.f32 %v1074_v48, %v1035_v47 }
 0x2f4   : > { %v6367_v50 = vpop.f32.mrf.mxu0 }
 0x2f5   : > { %1083 = vrot.lane.b32.xlu1 %v1075_v49, %s7514_s21 }
 0x2f6   : > { %v1077_v51 = vpop.f32.mrf.mxu0 }
 0x2f7   : > { %v7949_v52 = vadd.f32 %v1077_v51, %v1035_v47 }
 0x2f8   : > { %v6368_v53 = vpop.f32.mrf.mxu0 }
 0x2f9   : > { %1089 = vrot.lane.b32.xlu1 %v1075_v49, %s7515_s8  ;;  %1085 = vrot.lane.b32.xlu0 %v7949_v52, %s7514_s21 }
 0x2fa   : > { %v1881_v54 = vpop.f32.mrf.mxu0 }
 0x2fb   : > { %v7972_v62 = vadd.f32 %v6105_v61, %v1881_v54 }
 0x2fc   : > { %v6383_v55 = vpop.f32.mrf.mxu0 }
 0x2fd   : > { %1095 = vrot.lane.b32.xlu1 %v1075_v49, %s7516_s29  ;;  %1091 = vrot.lane.b32.xlu0 %v7949_v52, %s7515_s8 }
 0x2fe   : > { %v1884_v57 = vpop.f32.mrf.mxu0 }
 0x2ff   : > { %v7978_v63 = vadd.f32 %v6105_v61, %v1884_v57 }
 0x300   : > { %v6384_v58 = vpop.f32.mrf.mxu0 }
 0x301   : > { %1414 = vrot.lane.b32.xlu1 %v1075_v49, %s7511_s30  ;;  %1097 = vrot.lane.b32.xlu0 %v7949_v52, %s7516_s29 }
 0x305   : > { %1890 = vrot.lane.b32.xlu1 %v7955_v59, %s7514_s21  ;;  %1892 = vrot.lane.b32.xlu0 %v7960_v60, %s7514_s21 }
 0x309   : > { %1896 = vrot.lane.b32.xlu1 %v7955_v59, %s7515_s8  ;;  %1898 = vrot.lane.b32.xlu0 %v7960_v60, %s7515_s8 }
 0x30d   : > { %1902 = vrot.lane.b32.xlu1 %v7955_v59, %s7516_s29  ;;  %1904 = vrot.lane.b32.xlu0 %v7960_v60, %s7516_s29 }
 0x311   : > { %1416 = vrot.lane.b32.xlu0 %v7949_v52, %s7511_s30  ;;  %2222 = vrot.lane.b32.xlu1 %v7972_v62, %s7514_s21 }
 0x315   : > { %2228 = vrot.lane.b32.xlu1 %v7972_v62, %s7515_s8  ;;  %2224 = vrot.lane.b32.xlu0 %v7978_v63, %s7514_s21 }
 0x319   : > { %2230 = vrot.lane.b32.xlu0 %v7978_v63, %s7515_s8 }
 0x367   : > { %v1084_v3 = vpop.permute.xlu1 %1083 }
 0x368   : > { %1418 = vrot.lane.b32.xlu1 %v1084_v3, %s7511_s30 }
 0x36b   : > { %v1090_v8 = vpop.permute.xlu1 %1089  ;;  %v1086_v9 = vpop.permute.xlu0 %1085 }
 0x36c   : > { %1422 = vrot.lane.b32.xlu1 %v1090_v8, %s7511_s30  ;;  %1420 = vrot.lane.b32.xlu0 %v1086_v9, %s7511_s30  ;;  %v1101_v12 = vcombine.low %v1075_v49, %v1090_v8  ;;  %v1102_v13 = vcombine.high %v1075_v49, %v1090_v8 }
 0x36e   : > { %v1109_v19 = vrot.slane %v1101_v12, %v7987_v11  ;;  %v1116_v20 = vrot.slane %v1102_v13, %v7987_v11 }
 0x36f   : > { %v1096_v14 = vpop.permute.xlu1 %1095  ;;  %v1092_v15 = vpop.permute.xlu0 %1091 }
 0x370   : > { %v1117_v16 = vcombine.low %v1084_v3, %v1096_v14  ;;  %v1118_v17 = vcombine.high %v1084_v3, %v1096_v14  ;;  %1426 = vrot.lane.b32.xlu1 %v1096_v14, %s7511_s30  ;;  %1424 = vrot.lane.b32.xlu0 %v1092_v15, %s7511_s30  ;;  %v1169_v23 = vcombine.low %v7949_v52, %v1092_v15 }
 0x371   : > { %v1170_v24 = vcombine.high %v7949_v52, %v1092_v15 }
 0x372   : > { %v1125_v21 = vrot.slane %v1117_v16, %v7987_v11  ;;  %v1132_v22 = vrot.slane %v1118_v17, %v7987_v11  ;;  %v1177_v37 = vrot.slane %v1169_v23, %v7987_v11 }
 0x373   : > { %v7999_v25 = vpop.permute.xlu1 %1414  ;;  %v1098_v26 = vpop.permute.xlu0 %1097  ;;  %v1184_v38 = vrot.slane %v1170_v24, %v7987_v11 }
 0x374   : > { %v1133_v27 = vcombine.low %v1109_v19, %v1125_v21  ;;  %v1134_v28 = vcombine.high %v1109_v19, %v1125_v21  ;;  %v1149_v29 = vcombine.low %v1116_v20, %v1132_v22  ;;  %v1150_v30 = vcombine.high %v1116_v20, %v1132_v22  ;;  %2234 = vrot.lane.b32.xlu1 %v7972_v62, %s7516_s29 }
 0x375   : > { %v1185_v31 = vcombine.low %v1086_v9, %v1098_v26  ;;  %v1186_v32 = vcombine.high %v1086_v9, %v1098_v26  ;;  %1428 = vrot.lane.b32.xlu0 %v1098_v26, %s7511_s30 }
 0x376   : > { %v1141_v33 = vrot.slane %v1133_v27, %v7990_v18  ;;  %v1148_v34 = vrot.slane %v1134_v28, %v7990_v18  ;;  %v1157_v35 = vrot.slane %v1149_v29, %v7990_v18  ;;  %v1164_v36 = vrot.slane %v1150_v30, %v7990_v18 }
 0x377   : > { %v1193_v39 = vrot.slane %v1185_v31, %v7987_v11  ;;  %v1200_v40 = vrot.slane %v1186_v32, %v7987_v11  ;;  %v8012_v49 = vpop.permute.xlu1 %1890  ;;  %v8014_v50 = vpop.permute.xlu0 %1892 }
 0x378   : > { %v1237_v41 = vcombine.low %v1141_v33, %v1148_v34  ;;  %v6076_v42 = vcombine.high %v1141_v33, %v1148_v34  ;;  %v1253_v43 = vcombine.low %v1157_v35, %v1164_v36  ;;  %v6077_v44 = vcombine.high %v1157_v35, %v1164_v36 }
 0x379   : > { %v1201_v45 = vcombine.low %v1177_v37, %v1193_v39  ;;  %v1202_v46 = vcombine.high %v1177_v37, %v1193_v39  ;;  %v1217_v47 = vcombine.low %v1184_v38, %v1200_v40  ;;  %v1218_v48 = vcombine.high %v1184_v38, %v1200_v40  ;;  %2236 = vrot.lane.b32.xlu0 %v7978_v63, %s7516_s29 }
 0x37a   : > { %v1244_v51 = vrot.slane %v1237_v41, %v7987_v11  ;;  %v1252_v52 = vrot.slane %v6076_v42, %v7987_v11  ;;  %v1260_v53 = vrot.slane %v1253_v43, %v7987_v11  ;;  %v1268_v54 = vrot.slane %v6077_v44, %v7987_v11 }
 0x37b   : > { %v1209_v55 = vrot.slane %v1201_v45, %v7990_v18  ;;  %v1216_v56 = vrot.slane %v1202_v46, %v7990_v18  ;;  %v1225_v57 = vrot.slane %v1217_v47, %v7990_v18  ;;  %v1232_v58 = vrot.slane %v1218_v48, %v7990_v18  ;;  %v1897_v16 = vpop.permute.xlu1 %1896  ;;  %v1899_v17 = vpop.permute.xlu0 %1898 }
 0x37c   : > { %v1269_v61 = vcombine.low %v1244_v51, %v1252_v52  ;;  %v1270_v0 = vcombine.high %v1244_v51, %v1252_v52  ;;  %v1285_v1 = vcombine.low %v1260_v53, %v1268_v54  ;;  %v1286_v2 = vcombine.high %v1260_v53, %v1268_v54 }
 0x37d   : > { %v1305_v3 = vcombine.low %v1209_v55, %v1216_v56  ;;  %v6078_v4 = vcombine.high %v1209_v55, %v1216_v56  ;;  %v1321_v5 = vcombine.low %v1225_v57, %v1232_v58  ;;  %v6079_v6 = vcombine.high %v1225_v57, %v1232_v58 }
 0x37e   : > { %v1277_v7 = vrot.slane %v1269_v61, %v7990_v18  ;;  %v1284_v8 = vrot.slane %v1270_v0, %v7990_v18  ;;  %v1293_v9 = vrot.slane %v1285_v1, %v7990_v18  ;;  %v1300_v10 = vrot.slane %v1286_v2, %v7990_v18 }
 0x37f   : > { %v1312_v12 = vrot.slane %v1305_v3, %v7987_v11  ;;  %v1320_v13 = vrot.slane %v6078_v4, %v7987_v11  ;;  %v1328_v14 = vrot.slane %v1321_v5, %v7987_v11  ;;  %v1336_v15 = vrot.slane %v6079_v6, %v7987_v11  ;;  %v1903_v42 = vpop.permute.xlu1 %1902  ;;  %v1905_v43 = vpop.permute.xlu0 %1904 }
 0x380   : > { %v1301_v19 = vcombine.low %v1277_v7, %v1293_v9  ;;  %v1302_v20 = vcombine.high %v1277_v7, %v1293_v9  ;;  %v1303_v21 = vcombine.low %v1284_v8, %v1300_v10  ;;  %v1304_v22 = vcombine.high %v1284_v8, %v1300_v10 }
 0x381   : > { %v1337_v23 = vcombine.low %v1312_v12, %v1320_v13  ;;  %v1338_v24 = vcombine.high %v1312_v12, %v1320_v13  ;;  %v1353_v26 = vcombine.low %v1328_v14, %v1336_v15  ;;  %v1354_v27 = vcombine.high %v1328_v14, %v1336_v15 }
 0x382   : > { %v6228_v28 = vpack.c.bf16 %v1301_v19, %v1301_v19  ;;  %v6230_v29 = vpack.c.bf16 %v1302_v20, %v1302_v20  ;;  %v6232_v30 = vpack.c.bf16 %v1303_v21, %v1303_v21  ;;  %v6234_v31 = vpack.c.bf16 %v1304_v22, %v1304_v22 }
 0x383   : > { %v1345_v32 = vrot.slane %v1337_v23, %v7990_v18  ;;  %v1352_v33 = vrot.slane %v1338_v24, %v7990_v18  ;;  %v1361_v34 = vrot.slane %v1353_v26, %v7990_v18  ;;  %v1368_v35 = vrot.slane %v1354_v27, %v7990_v18 }
 0x384   : > { %1406 = vst.msk [vmem:[#allocation2] sm:$0xf] %vm1405_vm2, %v6228_v28  ;;  %1408 = vst.msk [vmem:[#allocation2 + $0x8] sm:$0xf] %vm1405_vm2, %v6230_v29  ;;  %v1908_v36 = vcombine.low %v7955_v59, %v1897_v16  ;;  %v1909_v37 = vcombine.high %v7955_v59, %v1897_v16  ;;  %v1976_v44 = vcombine.low %v7960_v60, %v1899_v17 }
 0x385   : > { %1410 = vst.msk [vmem:[#allocation2 + $0x10] sm:$0xf] %vm1405_vm2, %v6232_v30  ;;  %1412 = vst.msk [vmem:[#allocation2 + $0x18] sm:$0xf] %vm1405_vm2, %v6234_v31  ;;  %v1369_v38 = vcombine.low %v1345_v32, %v1361_v34  ;;  %v1370_v39 = vcombine.high %v1345_v32, %v1361_v34  ;;  %v1371_v40 = vcombine.low %v1352_v33, %v1368_v35 }
 0x386   : > { %v1372_v41 = vcombine.high %v1352_v33, %v1368_v35  ;;  %v1977_v45 = vcombine.high %v7960_v60, %v1899_v17  ;;  %v1924_v52 = vcombine.low %v8012_v49, %v1903_v42  ;;  %v1925_v53 = vcombine.high %v8012_v49, %v1903_v42 }
 0x387   : > { %v6229_v46 = vpack.c.bf16 %v1369_v38, %v1369_v38  ;;  %v6231_v47 = vpack.c.bf16 %v1370_v39, %v1370_v39  ;;  %v6233_v48 = vpack.c.bf16 %v1371_v40, %v1371_v40  ;;  %v1992_v59 = vcombine.low %v8014_v50, %v1905_v43 }
 0x388   : > { %v6235_v51 = vpack.c.bf16 %v1372_v41, %v1372_v41  ;;  %v1993_v54 = vcombine.high %v8014_v50, %v1905_v43  ;;  %v1916_v60 = vrot.slane %v1908_v36, %v7987_v11  ;;  %v1923_v55 = vrot.slane %v1909_v37, %v7987_v11 }
 0x389   : > { %1407 = vst.msk [vmem:[#allocation2 + $0x4] sm:$0xf] %vm1405_vm2, %v6229_v46  ;;  %1409 = vst.msk [vmem:[#allocation2 + $0xc] sm:$0xf] %vm1405_vm2, %v6231_v47  ;;  %v1932_v56 = vrot.slane %v1924_v52, %v7987_v11  ;;  %v1939_v49 = vrot.slane %v1925_v53, %v7987_v11  ;;  %v2000_v57 = vrot.slane %v1992_v59, %v7987_v11 }
 0x38a   : > { %1411 = vst.msk [vmem:[#allocation2 + $0x14] sm:$0xf] %vm1405_vm2, %v6233_v48  ;;  %1413 = vst.msk [vmem:[#allocation2 + $0x1c] sm:$0xf] %vm1405_vm2, %v6235_v51  ;;  %v2007_v50 = vrot.slane %v1993_v54, %v7987_v11  ;;  %v1984_v58 = vrot.slane %v1976_v44, %v7987_v11  ;;  %v1991_v61 = vrot.slane %v1977_v45, %v7987_v11 }
 0x38b   : > { %v1940_v0 = vcombine.low %v1916_v60, %v1932_v56  ;;  %v1941_v1 = vcombine.high %v1916_v60, %v1932_v56  ;;  %v1956_v2 = vcombine.low %v1923_v55, %v1939_v49  ;;  %v1957_v3 = vcombine.high %v1923_v55, %v1939_v49 }
 0x38c   : > { %v2008_v4 = vcombine.low %v1984_v58, %v2000_v57  ;;  %v2009_v5 = vcombine.high %v1984_v58, %v2000_v57  ;;  %v2024_v6 = vcombine.low %v1991_v61, %v2007_v50  ;;  %v2025_v7 = vcombine.high %v1991_v61, %v2007_v50 }
 0x38d   : > { %v1948_v8 = vrot.slane %v1940_v0, %v7990_v18  ;;  %v1955_v9 = vrot.slane %v1941_v1, %v7990_v18  ;;  %v1964_v10 = vrot.slane %v1956_v2, %v7990_v18  ;;  %v1971_v12 = vrot.slane %v1957_v3, %v7990_v18 }
 0x38e   : > { %v2016_v13 = vrot.slane %v2008_v4, %v7990_v18  ;;  %v2023_v14 = vrot.slane %v2009_v5, %v7990_v18  ;;  %v2032_v15 = vrot.slane %v2024_v6, %v7990_v18  ;;  %v2039_v16 = vrot.slane %v2025_v7, %v7990_v18  ;;  %v1417_v5 = vpop.permute.xlu0 %1416  ;;  %v2223_v6 = vpop.permute.xlu1 %2222 }
 0x38f   : > { %v2044_v17 = vcombine.low %v1948_v8, %v1955_v9  ;;  %v6109_v19 = vcombine.high %v1948_v8, %v1955_v9  ;;  %v2060_v20 = vcombine.low %v1964_v10, %v1971_v12  ;;  %v6110_v21 = vcombine.high %v1964_v10, %v1971_v12 }
 0x390   : > { %v2112_v22 = vcombine.low %v2016_v13, %v2023_v14  ;;  %v6111_v23 = vcombine.high %v2016_v13, %v2023_v14  ;;  %v2128_v24 = vcombine.low %v2032_v15, %v2039_v16  ;;  %v6112_v26 = vcombine.high %v2032_v15, %v2039_v16 }
 0x391   : > { %v2051_v27 = vrot.slane %v2044_v17, %v7987_v11  ;;  %v2059_v28 = vrot.slane %v6109_v19, %v7987_v11  ;;  %v2067_v29 = vrot.slane %v2060_v20, %v7987_v11  ;;  %v2075_v30 = vrot.slane %v6110_v21, %v7987_v11 }
 0x392   : > { %v2119_v31 = vrot.slane %v2112_v22, %v7987_v11  ;;  %v2127_v32 = vrot.slane %v6111_v23, %v7987_v11  ;;  %v2135_v33 = vrot.slane %v2128_v24, %v7987_v11  ;;  %v2143_v34 = vrot.slane %v6112_v26, %v7987_v11  ;;  %v8094_v7 = vpop.permute.xlu0 %2224  ;;  %v2229_v8 = vpop.permute.xlu1 %2228 }
 0x393   : > { %v2076_v35 = vcombine.low %v2051_v27, %v2059_v28  ;;  %v2077_v36 = vcombine.high %v2051_v27, %v2059_v28  ;;  %v2092_v37 = vcombine.low %v2067_v29, %v2075_v30  ;;  %v2093_v38 = vcombine.high %v2067_v29, %v2075_v30 }
 0x394   : > { %v2144_v39 = vcombine.low %v2119_v31, %v2127_v32  ;;  %v2145_v40 = vcombine.high %v2119_v31, %v2127_v32  ;;  %v2160_v41 = vcombine.low %v2135_v33, %v2143_v34  ;;  %v2161_v42 = vcombine.high %v2135_v33, %v2143_v34 }
 0x395   : > { %v2084_v43 = vrot.slane %v2076_v35, %v7990_v18  ;;  %v2091_v44 = vrot.slane %v2077_v36, %v7990_v18  ;;  %v2100_v45 = vrot.slane %v2092_v37, %v7990_v18  ;;  %v2107_v46 = vrot.slane %v2093_v38, %v7990_v18 }
 0x396   : > { %v2152_v47 = vrot.slane %v2144_v39, %v7990_v18  ;;  %v2159_v48 = vrot.slane %v2145_v40, %v7990_v18  ;;  %v2168_v51 = vrot.slane %v2160_v41, %v7990_v18  ;;  %v2175_v52 = vrot.slane %v2161_v42, %v7990_v18  ;;  %v8096_v9 = vpop.permute.xlu0 %2230 }
 0x397   : > { %v2108_v53 = vcombine.low %v2084_v43, %v2100_v45  ;;  %v2109_v59 = vcombine.high %v2084_v43, %v2100_v45  ;;  %v2110_v54 = vcombine.low %v2091_v44, %v2107_v46  ;;  %v2111_v60 = vcombine.high %v2091_v44, %v2107_v46 }
 0x398   : > { %v2176_v55 = vcombine.low %v2152_v47, %v2168_v51  ;;  %v2177_v56 = vcombine.high %v2152_v47, %v2168_v51  ;;  %v2178_v49 = vcombine.low %v2159_v48, %v2175_v52  ;;  %v2179_v57 = vcombine.high %v2159_v48, %v2175_v52 }
 0x399   : > { %v6244_v50 = vpack.c.bf16 %v2108_v53, %v2108_v53  ;;  %v6246_v58 = vpack.c.bf16 %v2109_v59, %v2109_v59  ;;  %v6248_v61 = vpack.c.bf16 %v2110_v54, %v2110_v54  ;;  %v6250_v0 = vpack.c.bf16 %v2111_v60, %v2111_v60 }
 0x39a   : > { %v6245_v1 = vpack.c.bf16 %v2176_v55, %v2176_v55  ;;  %v6247_v2 = vpack.c.bf16 %v2177_v56, %v2177_v56  ;;  %v6249_v3 = vpack.c.bf16 %v2178_v49, %v2178_v49  ;;  %v6251_v4 = vpack.c.bf16 %v2179_v57, %v2179_v57 }
 0x39b   : > { %2212 = vst.msk [vmem:[#allocation4] sm:$0xf] %vm1405_vm2, %v6244_v50  ;;  %2214 = vst.msk [vmem:[#allocation4 + $0x8] sm:$0xf] %vm1405_vm2, %v6246_v58  ;;  %v2240_v14 = vcombine.low %v7972_v62, %v2229_v8  ;;  %v2241_v15 = vcombine.high %v7972_v62, %v2229_v8  ;;  %v2309_v31 = vcombine.high %v7978_v63, %v8096_v9 }
 0x39c   : > { %2216 = vst.msk [vmem:[#allocation4 + $0x10] sm:$0xf] %vm1405_vm2, %v6248_v61  ;;  %2218 = vst.msk [vmem:[#allocation4 + $0x18] sm:$0xf] %vm1405_vm2, %v6250_v0 }
 0x39d   : > { %2213 = vst.msk [vmem:[#allocation4 + $0x4] sm:$0xf] %vm1405_vm2, %v6245_v1  ;;  %2215 = vst.msk [vmem:[#allocation4 + $0xc] sm:$0xf] %vm1405_vm2, %v6247_v2  ;;  %v2248_v23 = vrot.slane %v2240_v14, %v7987_v11  ;;  %v2255_v24 = vrot.slane %v2241_v15, %v7987_v11 }
 0x39e   : > { %2217 = vst.msk [vmem:[#allocation4 + $0x14] sm:$0xf] %vm1405_vm2, %v6249_v3  ;;  %2219 = vst.msk [vmem:[#allocation4 + $0x1c] sm:$0xf] %vm1405_vm2, %v6251_v4 }
 0x3da   : > { %v1419_v10 = vpop.permute.xlu1 %1418 }
 0x3de   : > { %v1423_v12 = vpop.permute.xlu1 %1422  ;;  %v1421_v13 = vpop.permute.xlu0 %1420 }
 0x3df   : > { %v1438_v16 = vcombine.low %v7999_v25, %v1423_v12  ;;  %v1439_v17 = vcombine.high %v7999_v25, %v1423_v12  ;;  %v2308_v25 = vcombine.low %v7978_v63, %v8096_v9 }
 0x3e1   : > { %v1446_v28 = vrot.slane %v1438_v16, %v7987_v11  ;;  %v1453_v29 = vrot.slane %v1439_v17, %v7987_v11 }
 0x3e2   : > { %v1427_v19 = vpop.permute.xlu1 %1426  ;;  %v1425_v22 = vpop.permute.xlu0 %1424 }
 0x3e3   : > { %v1454_v20 = vcombine.low %v1419_v10, %v1427_v19  ;;  %v1455_v21 = vcombine.high %v1419_v10, %v1427_v19  ;;  %v1506_v26 = vcombine.low %v1417_v5, %v1425_v22  ;;  %v1507_v27 = vcombine.high %v1417_v5, %v1425_v22 }
 0x3e5   : > { %v1462_v62 = vrot.slane %v1454_v20, %v7987_v11  ;;  %v1469_v30 = vrot.slane %v1455_v21, %v7987_v11  ;;  %v8113_v32 = vrot.slane %v1506_v26, %v7987_v11  ;;  %v8116_v33 = vrot.slane %v1507_v27, %v7987_v11 }
 0x3e6   : > { %v2235_v34 = vpop.permute.xlu1 %2234 }
 0x3e7   : > { %v1470_v35 = vcombine.low %v1446_v28, %v1462_v62  ;;  %v1471_v36 = vcombine.high %v1446_v28, %v1462_v62  ;;  %v1486_v37 = vcombine.low %v1453_v29, %v1469_v30  ;;  %v1487_v38 = vcombine.high %v1453_v29, %v1469_v30  ;;  %v1429_v39 = vpop.permute.xlu0 %1428 }
 0x3e8   : > { %v2256_v40 = vcombine.low %v2223_v6, %v2235_v34  ;;  %v2257_v41 = vcombine.high %v2223_v6, %v2235_v34  ;;  %v1522_v42 = vcombine.low %v1421_v13, %v1429_v39  ;;  %v1523_v43 = vcombine.high %v1421_v13, %v1429_v39 }
 0x3e9   : > { %v1478_v44 = vrot.slane %v1470_v35, %v7990_v18  ;;  %v1485_v45 = vrot.slane %v1471_v36, %v7990_v18  ;;  %v1494_v46 = vrot.slane %v1486_v37, %v7990_v18  ;;  %v1501_v47 = vrot.slane %v1487_v38, %v7990_v18 }
 0x3ea   : > { %v2264_v48 = vrot.slane %v2256_v40, %v7987_v11  ;;  %v2271_v51 = vrot.slane %v2257_v41, %v7987_v11  ;;  %v8125_v52 = vrot.slane %v1522_v42, %v7987_v11  ;;  %v8128_v53 = vrot.slane %v1523_v43, %v7987_v11 }
 0x3eb   : > { %v1574_v59 = vcombine.low %v1478_v44, %v1485_v45  ;;  %v6088_v54 = vcombine.high %v1478_v44, %v1485_v45  ;;  %v1590_v60 = vcombine.low %v1494_v46, %v1501_v47  ;;  %v6089_v55 = vcombine.high %v1494_v46, %v1501_v47 }
 0x3ec   : > { %v2272_v56 = vcombine.low %v2248_v23, %v2264_v48  ;;  %v2273_v49 = vcombine.high %v2248_v23, %v2264_v48  ;;  %v2288_v57 = vcombine.low %v2255_v24, %v2271_v51  ;;  %v2289_v50 = vcombine.high %v2255_v24, %v2271_v51 }
 0x3ed   : > { %v1581_v58 = vrot.slane %v1574_v59, %v7987_v11  ;;  %v1589_v61 = vrot.slane %v6088_v54, %v7987_v11  ;;  %v1597_v0 = vrot.slane %v1590_v60, %v7987_v11  ;;  %v1605_v1 = vrot.slane %v6089_v55, %v7987_v11 }
 0x3ee   : > { %v2280_v2 = vrot.slane %v2272_v56, %v7990_v18  ;;  %v2287_v3 = vrot.slane %v2273_v49, %v7990_v18  ;;  %v2296_v4 = vrot.slane %v2288_v57, %v7990_v18  ;;  %v2303_v5 = vrot.slane %v2289_v50, %v7990_v18  ;;  %v2237_v50 = vpop.permute.xlu0 %2236 }
 0x3ef   : > { %v1606_v6 = vcombine.low %v1581_v58, %v1589_v61  ;;  %v1607_v8 = vcombine.high %v1581_v58, %v1589_v61  ;;  %v1622_v10 = vcombine.low %v1597_v0, %v1605_v1  ;;  %v1623_v12 = vcombine.high %v1597_v0, %v1605_v1 }
 0x3f0   : > { %v2376_v13 = vcombine.low %v2280_v2, %v2287_v3  ;;  %v6121_v14 = vcombine.high %v2280_v2, %v2287_v3  ;;  %v2392_v15 = vcombine.low %v2296_v4, %v2303_v5  ;;  %v6122_v16 = vcombine.high %v2296_v4, %v2303_v5 }
 0x3f1   : > { %v1614_v17 = vrot.slane %v1606_v6, %v7990_v18  ;;  %v1621_v19 = vrot.slane %v1607_v8, %v7990_v18  ;;  %v1630_v20 = vrot.slane %v1622_v10, %v7990_v18  ;;  %v1637_v21 = vrot.slane %v1623_v12, %v7990_v18 }
 0x3f2   : > { %v2383_v22 = vrot.slane %v2376_v13, %v7987_v11  ;;  %v2391_v23 = vrot.slane %v6121_v14, %v7987_v11  ;;  %v2399_v24 = vrot.slane %v2392_v15, %v7987_v11  ;;  %v2407_v26 = vrot.slane %v6122_v16, %v7987_v11 }
 0x3f3   : > { %v1638_v27 = vcombine.low %v1614_v17, %v1630_v20  ;;  %v1639_v28 = vcombine.high %v1614_v17, %v1630_v20  ;;  %v1640_v29 = vcombine.low %v1621_v19, %v1637_v21  ;;  %v1641_v62 = vcombine.high %v1621_v19, %v1637_v21 }
 0x3f4   : > { %v2408_v30 = vcombine.low %v2383_v22, %v2391_v23  ;;  %v2409_v34 = vcombine.high %v2383_v22, %v2391_v23  ;;  %v2424_v35 = vcombine.low %v2399_v24, %v2407_v26  ;;  %v2425_v36 = vcombine.high %v2399_v24, %v2407_v26 }
 0x3f5   : > { %v6236_v37 = vpack.c.bf16 %v1638_v27, %v1638_v27  ;;  %v6238_v38 = vpack.c.bf16 %v1639_v28, %v1639_v28  ;;  %v6240_v39 = vpack.c.bf16 %v1640_v29, %v1640_v29  ;;  %v6242_v40 = vpack.c.bf16 %v1641_v62, %v1641_v62 }
 0x3f6   : > { %v2416_v41 = vrot.slane %v2408_v30, %v7990_v18  ;;  %v2423_v42 = vrot.slane %v2409_v34, %v7990_v18  ;;  %v2432_v43 = vrot.slane %v2424_v35, %v7990_v18  ;;  %v2439_v44 = vrot.slane %v2425_v36, %v7990_v18 }
 0x3f7   : > { %1742 = vst.msk [vmem:[#allocation3] sm:$0xf] %vm1405_vm2, %v6236_v37  ;;  %1744 = vst.msk [vmem:[#allocation3 + $0x8] sm:$0xf] %vm1405_vm2, %v6238_v38  ;;  %v1538_v45 = vcombine.low %v8113_v32, %v8125_v52  ;;  %v1539_v46 = vcombine.high %v8113_v32, %v8125_v52  ;;  %v1554_v47 = vcombine.low %v8116_v33, %v8128_v53 }
 0x3f8   : > { %1746 = vst.msk [vmem:[#allocation3 + $0x10] sm:$0xf] %vm1405_vm2, %v6240_v39  ;;  %1748 = vst.msk [vmem:[#allocation3 + $0x18] sm:$0xf] %vm1405_vm2, %v6242_v40  ;;  %v1555_v48 = vcombine.high %v8116_v33, %v8128_v53  ;;  %v2440_v51 = vcombine.low %v2416_v41, %v2432_v43  ;;  %v2441_v59 = vcombine.high %v2416_v41, %v2432_v43 }
 0x3f9   : > { %v2442_v54 = vcombine.low %v2423_v42, %v2439_v44  ;;  %v2443_v60 = vcombine.high %v2423_v42, %v2439_v44  ;;  %v1546_v55 = vrot.slane %v1538_v45, %v7990_v18  ;;  %v1553_v56 = vrot.slane %v1539_v46, %v7990_v18 }
 0x3fa   : > { %v1562_v49 = vrot.slane %v1554_v47, %v7990_v18  ;;  %v1569_v57 = vrot.slane %v1555_v48, %v7990_v18  ;;  %v6252_v32 = vpack.c.bf16 %v2440_v51, %v2440_v51  ;;  %v6254_v52 = vpack.c.bf16 %v2441_v59, %v2441_v59 }
 0x3fb   : > { %v6256_v58 = vpack.c.bf16 %v2442_v54, %v2442_v54  ;;  %v6258_v61 = vpack.c.bf16 %v2443_v60, %v2443_v60  ;;  %v1642_v0 = vcombine.low %v1546_v55, %v1553_v56  ;;  %v6090_v1 = vcombine.high %v1546_v55, %v1553_v56 }
 0x3fc   : > { %v1658_v33 = vcombine.low %v1562_v49, %v1569_v57  ;;  %v6091_v53 = vcombine.high %v1562_v49, %v1569_v57  ;;  %2544 = vst.msk [vmem:[#allocation5] sm:$0xf] %vm1405_vm2, %v6252_v32  ;;  %2546 = vst.msk [vmem:[#allocation5 + $0x8] sm:$0xf] %vm1405_vm2, %v6254_v52  ;;  %v2324_v2 = vcombine.low %v8094_v7, %v2237_v50 }
 0x3fd   : > { %2548 = vst.msk [vmem:[#allocation5 + $0x10] sm:$0xf] %vm1405_vm2, %v6256_v58  ;;  %2550 = vst.msk [vmem:[#allocation5 + $0x18] sm:$0xf] %vm1405_vm2, %v6258_v61  ;;  %v2325_v3 = vcombine.high %v8094_v7, %v2237_v50  ;;  %v1649_v4 = vrot.slane %v1642_v0, %v7987_v11  ;;  %v1657_v5 = vrot.slane %v6090_v1, %v7987_v11 }
 0x3fe   : > { %v1665_v6 = vrot.slane %v1658_v33, %v7987_v11  ;;  %v1673_v8 = vrot.slane %v6091_v53, %v7987_v11  ;;  %v2316_v10 = vrot.slane %v2308_v25, %v7987_v11  ;;  %v2323_v12 = vrot.slane %v2309_v31, %v7987_v11 }
 0x3ff   : > { %v2332_v7 = vrot.slane %v2324_v2, %v7987_v11  ;;  %v2339_v13 = vrot.slane %v2325_v3, %v7987_v11  ;;  %v1674_v14 = vcombine.low %v1649_v4, %v1657_v5  ;;  %v1675_v15 = vcombine.high %v1649_v4, %v1657_v5 }
 0x400   : > { %v1690_v16 = vcombine.low %v1665_v6, %v1673_v8  ;;  %v1691_v17 = vcombine.high %v1665_v6, %v1673_v8 }
 0x401   : > { %v2340_v19 = vcombine.low %v2316_v10, %v2332_v7  ;;  %v2341_v20 = vcombine.high %v2316_v10, %v2332_v7  ;;  %v2356_v21 = vcombine.low %v2323_v12, %v2339_v13  ;;  %v2357_v22 = vcombine.high %v2323_v12, %v2339_v13 }
 0x402   : > { %v1682_v23 = vrot.slane %v1674_v14, %v7990_v18  ;;  %v1689_v25 = vrot.slane %v1675_v15, %v7990_v18  ;;  %v1698_v24 = vrot.slane %v1690_v16, %v7990_v18  ;;  %v1705_v63 = vrot.slane %v1691_v17, %v7990_v18 }
 0x403   : > { %v2348_v9 = vrot.slane %v2340_v19, %v7990_v18  ;;  %v2355_v31 = vrot.slane %v2341_v20, %v7990_v18  ;;  %v2364_v26 = vrot.slane %v2356_v21, %v7990_v18  ;;  %v2371_v27 = vrot.slane %v2357_v22, %v7990_v18 }
 0x404   : > { %v1706_v28 = vcombine.low %v1682_v23, %v1698_v24  ;;  %v1707_v29 = vcombine.high %v1682_v23, %v1698_v24  ;;  %v1708_v62 = vcombine.low %v1689_v25, %v1705_v63  ;;  %v1709_v30 = vcombine.high %v1689_v25, %v1705_v63 }
 0x405   : > { %v2444_v34 = vcombine.low %v2348_v9, %v2355_v31  ;;  %v6123_v35 = vcombine.high %v2348_v9, %v2355_v31  ;;  %v2460_v36 = vcombine.low %v2364_v26, %v2371_v27  ;;  %v6124_v37 = vcombine.high %v2364_v26, %v2371_v27 }
 0x406   : > { %v6237_v38 = vpack.c.bf16 %v1706_v28, %v1706_v28  ;;  %v6239_v39 = vpack.c.bf16 %v1707_v29, %v1707_v29  ;;  %v6241_v40 = vpack.c.bf16 %v1708_v62, %v1708_v62  ;;  %v6243_v41 = vpack.c.bf16 %v1709_v30, %v1709_v30 }
 0x407   : > { %v2451_v42 = vrot.slane %v2444_v34, %v7987_v11  ;;  %v2459_v43 = vrot.slane %v6123_v35, %v7987_v11  ;;  %v2467_v44 = vrot.slane %v2460_v36, %v7987_v11  ;;  %v2475_v45 = vrot.slane %v6124_v37, %v7987_v11 }
 0x408   : > { %1743 = vst.msk [vmem:[#allocation3 + $0x4] sm:$0xf] %vm1405_vm2, %v6237_v38  ;;  %1745 = vst.msk [vmem:[#allocation3 + $0xc] sm:$0xf] %vm1405_vm2, %v6239_v39 }
 0x409   : > { %1747 = vst.msk [vmem:[#allocation3 + $0x14] sm:$0xf] %vm1405_vm2, %v6241_v40  ;;  %1749 = vst.msk [vmem:[#allocation3 + $0x1c] sm:$0xf] %vm1405_vm2, %v6243_v41  ;;  %v2476_v46 = vcombine.low %v2451_v42, %v2459_v43  ;;  %v2477_v47 = vcombine.high %v2451_v42, %v2459_v43  ;;  %v2492_v48 = vcombine.low %v2467_v44, %v2475_v45 }
 0x40a   : > { %v2493_v51 = vcombine.high %v2467_v44, %v2475_v45 }
 0x40b   : > { %v2484_v59 = vrot.slane %v2476_v46, %v7990_v18  ;;  %v2491_v54 = vrot.slane %v2477_v47, %v7990_v18  ;;  %v2500_v60 = vrot.slane %v2492_v48, %v7990_v18 }
 0x40c   : > { %v2507_v11 = vrot.slane %v2493_v51, %v7990_v18 }
 0x40d   : > { %v2508_v55 = vcombine.low %v2484_v59, %v2500_v60  ;;  %v2509_v56 = vcombine.high %v2484_v59, %v2500_v60 }
 0x40e   : > { %v2510_v49 = vcombine.low %v2491_v54, %v2507_v11  ;;  %v2511_v57 = vcombine.high %v2491_v54, %v2507_v11 }
 0x40f   : > { %v6253_v50 = vpack.c.bf16 %v2508_v55, %v2508_v55  ;;  %v6255_v32 = vpack.c.bf16 %v2509_v56, %v2509_v56 }
 0x410   : > { %v6257_v52 = vpack.c.bf16 %v2510_v49, %v2510_v49  ;;  %v6259_v58 = vpack.c.bf16 %v2511_v57, %v2511_v57 }
 0x411   : > { %2545 = vst.msk [vmem:[#allocation5 + $0x4] sm:$0xf] %vm1405_vm2, %v6253_v50  ;;  %2547 = vst.msk [vmem:[#allocation5 + $0xc] sm:$0xf] %vm1405_vm2, %v6255_v32 }
 0x412   : > { %2549 = vst.msk [vmem:[#allocation5 + $0x14] sm:$0xf] %vm1405_vm2, %v6257_v52  ;;  %2551 = vst.msk [vmem:[#allocation5 + $0x1c] sm:$0xf] %vm1405_vm2, %v6259_v58 }
 0x413 PF: > { %s6133_s7 = sshll.u32 %s7477_s28, 3  ;;  %vm2561_vm3 = vcmask 261120   ;;  %vm2808_vm4 = vcmask 7168   ;;  %vm2817_vm5 = vcmask 64512   ;;  %s8936_s25 = sld [smem:[#allocation56_spill]]  ;;  %v7519_v5 = vmov 0.0  }
 0x414   : > { %s2553_s30 = sshra.s32 %s6133_s7, 3  ;;  %6385 = vmatprep.subr.bf16.mxu0 %v7519_v5  ;;  %v7520_v6 = vmov -1e+30   ;;  %2813 = vst.msk [vmem:[#allocation7] sm:$0xff] %vm2808_vm4, %v7519_v5  ;;  %2814 = vst.msk [vmem:[#allocation7 + $0x8] sm:$0xff] %vm2808_vm4, %v7519_v5  ;;  %vm7521_vm6 = vmmov 0   ;;  %v2673_v27 = vlaneseq }
 0x415   : > { %s6134_s0 = sshll.u32 %s2553_s30, 2  ;;  %2809 = vst.msk [vmem:[#allocation6] sm:$0xff] %vm2808_vm4, %v7520_v6  ;;  %2810 = vst.msk [vmem:[#allocation6 + $0x8] sm:$0xff] %vm2808_vm4, %v7520_v6  ;;  %6389 = vmatprep.mubr.msk.bf16.mxu0 %vm7521_vm6, %v7519_v5  ;;  %v6135_v14 = vld [vmem:[#allocation9] ss:$0 sm:$0xff]  ;;  %s7522_s21 = smov 104  }
 0x416   : > { %s2556_s5 = scalar_lea.vmem %s7910_s27, %s6134_s0  ;;  %2811 = vst.msk [vmem:[#allocation6 + $0x10] sm:$0xff] %vm2808_vm4, %v7520_v6  ;;  %2812 = vst.msk [vmem:[#allocation6 + $0x18] sm:$0xff] %vm2808_vm4, %v7520_v6  ;;  %v6136_v16 = vld [vmem:[#allocation12] ss:$0 sm:$0xff]  ;;  %v6137_v21 = vld [vmem:[#allocation14] ss:$0 sm:$0xff] }
 0x417   : > { %v2557_v18 = vld [vmem:[%s2556_s5] sm:$0xf]  ;;  %2815 = vst.msk [vmem:[#allocation7 + $0x10] sm:$0xff] %vm2808_vm4, %v7519_v5  ;;  %2816 = vst.msk [vmem:[#allocation7 + $0x18] sm:$0xff] %vm2808_vm4, %v7519_v5  ;;  %s7523_s8 = smov 120   ;;  %s7524_s29 = smov 112  }
 0x418   : > { %v8212_v61 = vunpack.c.l.bf16 %v2557_v18  ;;  %2818 = vst.msk [vmem:[#allocation8] sm:$0xff] %vm2817_vm5, %v7519_v5  ;;  %2819 = vst.msk [vmem:[#allocation8 + $0x8] sm:$0xff] %vm2817_vm5, %v7519_v5  ;;  %v7525_v31 = vmov 1983009808   ;;  %v7526_v28 = vmov 1934713408  }
 0x419   : > { %v6891_v4 = vld [vmem:[%s8936_s25 + $0x8] sm:$0xff]   ;;  %2820 = vst.msk [vmem:[#allocation8 + $0x10] sm:$0xff] %vm2817_vm5, %v7519_v5  ;;  %2821 = vst.msk [vmem:[#allocation8 + $0x18] sm:$0xff] %vm2817_vm5, %v7519_v5  ;;  %v6892_v8 = vld [vmem:[%s8936_s25] sm:$0xff]   ;;  %v2671_v26 = vunpack.c.l.s4 %v7525_v31  ;;  %v2703_v29 = vunpack.c.l.s4 %v7526_v28  ;;  %v8253_v30 = vshrl.u32 %v2673_v27, 7  ;;  %p6143_p13 = scmp.le.s32.totalorder %s7477_s28, 0 }
 0x41a   : > { %v2562_v0 = vsel %vm2561_vm3, %v8212_v61, 0.0  ;;  %6386 = vmatpush3.bf16.msra.mxu0 %v6891_v4 }
 0x41b   : > { %2563 = vadd.xlane.f32.xlu0 %v2562_v0  ;;  %6387 = vmatprep.subr.bf16.mxu0 %v7519_v5  ;;  %v2672_v62 = vunpack.c.0.s8 %v2671_v26  ;;  %v2704_v36 = vunpack.c.0.s8 %v2703_v29 }
 0x41d   : > { %v8256_v37 = vsub.s32 %v2672_v62, %v8253_v30  ;;  %v8259_v43 = vsub.s32 %v2704_v36, %v8253_v30 }
 0x41e   : > { %6388 = vmatpush3.bf16.msra.mxu0 %v6892_v8 }
 0x4a4   : > { %v2564_v1 = vpop.xlane.xlu0 %2563 }
 0x4a5   : > { %v2566_v33 = vmul.f32 0.03125, %v2564_v1 }
 0x4a7   : > { %v2567_v53 = vsub.f32 %v8212_v61, %v2566_v33 }
 0x4a9   : > { %v2568_v2 = vmul.f32 %v2567_v53, %v2567_v53 }
 0x4ab   : > { %v2569_v3 = vsel %vm2561_vm3, %v2568_v2, 0.0 }
 0x4ac   : > { %2570 = vadd.xlane.f32.xlu0 %v2569_v3 }
 0x535   : > { %v2571_v10 = vpop.xlane.xlu0 %2570 }
 0x536   : > { %v2572_v12 = vmul.f32 0.03125, %v2571_v10 }
 0x538   : > { %v2573_v7 = vadd.f32 1e-05, %v2572_v12 }
 0x53a   : > { %6893 = vrsqrt.f32 %v2573_v7 }
 0x547   : > { %v6894_v13 = vpop.eup %6893 }
 0x548   : > { %v2575_v15 = vmul.f32 %v6894_v13, %v2567_v53 }
 0x54a   : > { %v2582_v17 = vmul.f32 %v6135_v14, %v2575_v15 }
 0x54c   : > { %v2589_v19 = vadd.f32 %v6136_v16, %v2582_v17 }
 0x54e   : > { %v2590_v20 = vpack.c.bf16 %v2589_v19, %v2589_v19 }
 0x550   : > { %6390 = vmatmul.mubr.msk.bf16.vlgmr.msra.gmra.mxu0 %vm2561_vm3, %v2590_v20 }
 0x610   : > { %v2651_v22 = vpop.f32.mrf.mxu0 }
 0x611   : > { %v2652_v23 = vadd.f32 %v6137_v21, %v2651_v22 }
 0x612   : > { %v6391_v25 = vpop.f32.mrf.mxu0 }
 0x613   : > { %v2657_v24 = vmul.f32 0.35355338, %v2652_v23 }
 0x614   : > { %v2654_v63 = vpop.f32.mrf.mxu0 }
 0x615   : > { %2665 = vrot.lane.b32.xlu0 %v2657_v24, %s7522_s21  ;;  %2659 = vrot.lane.b32.xlu1 %v2657_v24, %s7523_s8 }
 0x616   : > { %v6392_v9 = vpop.f32.mrf.mxu0 }
 0x619   : > { %2662 = vrot.lane.b32.xlu1 %v2657_v24, %s7524_s29 }
 0x687   : > { %v2666_v34 = vpop.permute.xlu0 %2665  ;;  %v2660_v35 = vpop.permute.xlu1 %2659 }
 0x688   : > { %v2684_v38 = vcombine.low %v2660_v35, %v2666_v34  ;;  %v2685_v39 = vcombine.high %v2660_v35, %v2666_v34 }
 0x68a   : > { %v2692_v44 = vrot.slane %v2684_v38, %v8256_v37  ;;  %v2699_v45 = vrot.slane %v2685_v39, %v8256_v37 }
 0x68b   : > { %v2663_v40 = vpop.permute.xlu1 %2662 }
 0x68c   : > { %v2668_v41 = vcombine.low %v2657_v24, %v2663_v40  ;;  %v2669_v42 = vcombine.high %v2657_v24, %v2663_v40 }
 0x68e   : > { %v2676_v46 = vrot.slane %v2668_v41, %v8256_v37  ;;  %v2683_v47 = vrot.slane %v2669_v42, %v8256_v37 }
 0x690   : > { %v2700_v48 = vcombine.low %v2676_v46, %v2692_v44  ;;  %v2701_v51 = vcombine.high %v2676_v46, %v2692_v44  ;;  %v2716_v59 = vcombine.low %v2683_v47, %v2699_v45  ;;  %v2717_v54 = vcombine.high %v2683_v47, %v2699_v45 }
 0x692   : > { %v2708_v60 = vrot.slane %v2700_v48, %v8259_v43  ;;  %v2715_v11 = vrot.slane %v2701_v51, %v8259_v43  ;;  %v2724_v55 = vrot.slane %v2716_v59, %v8259_v43  ;;  %v2731_v56 = vrot.slane %v2717_v54, %v8259_v43 }
 0x694   : > { %v2736_v49 = vcombine.low %v2708_v60, %v2715_v11  ;;  %v6141_v57 = vcombine.high %v2708_v60, %v2715_v11  ;;  %v2752_v50 = vcombine.low %v2724_v55, %v2731_v56  ;;  %v6142_v32 = vcombine.high %v2724_v55, %v2731_v56 }
 0x696   : > { %v2743_v52 = vrot.slane %v2736_v49, %v8256_v37  ;;  %v2751_v58 = vrot.slane %v6141_v57, %v8256_v37  ;;  %v2759_v18 = vrot.slane %v2752_v50, %v8256_v37  ;;  %v2767_v0 = vrot.slane %v6142_v32, %v8256_v37 }
 0x698   : > { %v2768_v1 = vcombine.low %v2743_v52, %v2751_v58  ;;  %v2769_v33 = vcombine.high %v2743_v52, %v2751_v58  ;;  %v2784_v53 = vcombine.low %v2759_v18, %v2767_v0  ;;  %v2785_v2 = vcombine.high %v2759_v18, %v2767_v0 }
 0x69a   : > { %v2776_v3 = vrot.slane %v2768_v1, %v8259_v43  ;;  %v2783_v4 = vrot.slane %v2769_v33, %v8259_v43  ;;  %v2792_v6 = vrot.slane %v2784_v53, %v8259_v43  ;;  %v2799_v8 = vrot.slane %v2785_v2, %v8259_v43  ;;  %2825 = sbr.rel (%p6143_p13) target bundleno = 2393 (0x959), region = 180 }
 0x69c   : > { %v2800_v10 = vcombine.low %v2776_v3, %v2792_v6  ;;  %v2801_v12 = vcombine.high %v2776_v3, %v2792_v6  ;;  %v2802_v7 = vcombine.low %v2783_v4, %v2799_v8  ;;  %v2803_v13 = vcombine.high %v2783_v4, %v2799_v8 }
 0x69e   : > { %v8277_v14 = vpack.c.bf16 %v2800_v10, %v2800_v10  ;;  %v8279_v15 = vpack.c.bf16 %v2801_v12, %v2801_v12  ;;  %v8281_v16 = vpack.c.bf16 %v2802_v7, %v2802_v7  ;;  %v8283_v17 = vpack.c.bf16 %v2803_v13, %v2803_v13 }
 0x69f   : > { %v2826_v19 = vld [vmem:[#allocation2] sm:$0xf]  ;;  %v2827_v20 = vld [vmem:[#allocation2 + $0x8] sm:$0xf]  ;;  %v7527_v21 = vmov 0.0   ;;  %vm7528_vm7 = vmmov 0  }
 0x6a0   : > { %6393 = vmatprep.subr.bf16.mxu0 %v7527_v21  ;;  %6399 = vmatprep.subr.bf16.mxu1 %v7527_v21  ;;  %v2838_v22 = vsel %vm2817_vm5, %v2826_v19, 0  ;;  %v2884_v23 = vsel %vm2817_vm5, %v2827_v20, 0  ;;  %v2828_v25 = vld [vmem:[#allocation2 + $0x10] sm:$0xf]  ;;  %v2829_v24 = vld [vmem:[#allocation2 + $0x18] sm:$0xf] }
 0x6a1   : > { %6394 = vmatpush3.bf16.xpose.msra.mxu0 %v2838_v22  ;;  %6400 = vmatpush3.bf16.xpose.msra.mxu1 %v2884_v23  ;;  %v2930_v63 = vsel %vm2817_vm5, %v2828_v25, 0  ;;  %v2976_v9 = vsel %vm2817_vm5, %v2829_v24, 0  ;;  %v7529_v51 = vmov 0   ;;  %v3018_v60 = vld [vmem:[#allocation6] sm:$0xff]  ;;  %v8329_v56 = vld [vmem:[#allocation6 + $0x8] sm:$0xff]  ;;  %v3020_v52 = vld [vmem:[#allocation6 + $0x10] sm:$0xff] }
 0x6a2   : > { %6395 = vmatprep.mubr.msk.bf16.mxu0 %vm7528_vm7, %v7527_v21  ;;  %6401 = vmatprep.mubr.msk.bf16.mxu1 %vm7528_vm7, %v7527_v21  ;;  %v8340_v1 = vld [vmem:[#allocation6 + $0x18] sm:$0xff]  ;;  %v2830_v3 = vld [vmem:[#allocation3] sm:$0xf]  ;;  %vm3145_vm8 = vcmask 1043456   ;;  %v2831_v8 = vld [vmem:[#allocation3 + $0x8] sm:$0xf] }
 0x6a3   : > { %6405 = vmatprep.subr.bf16.mxu0 %v7527_v21  ;;  %6411 = vmatprep.subr.bf16.mxu1 %v7527_v21  ;;  %v3147_v6 = vsel %vm3145_vm8, %v2830_v3, 0  ;;  %v3193_v10 = vsel %vm3145_vm8, %v2831_v8, 0  ;;  %v3085_v3 = vld [vmem:[#allocation7 + $0x18] sm:$0xff]  ;;  %v3111_v8 = vld [vmem:[#allocation8 + $0x8] sm:$0xff] }
 0x6a4   : > { %6895 = vset.pattern.permute.xlu0 %v7529_v51  ;;  %6896 = vset.pattern.permute.xlu1 %v7529_v51 }
 0x6a8   : > { %6396 = vmatmul.mubr.msk.bf16.vlgmr.msra.gmra.mxu0 %vm2817_vm5, %v8277_v14  ;;  %6402 = vmatmul.mubr.msk.bf16.vlgmr.msra.gmra.mxu1 %vm2817_vm5, %v8279_v15 }
 0x6a9   : > { %6406 = vmatpush3.bf16.xpose.msra.mxu0 %v2930_v63  ;;  %6412 = vmatpush3.bf16.xpose.msra.mxu1 %v2976_v9 }
 0x6aa   : > { %6407 = vmatprep.mubr.msk.bf16.mxu0 %vm7528_vm7, %v7527_v21  ;;  %6413 = vmatprep.mubr.msk.bf16.mxu1 %vm7528_vm7, %v7527_v21 }
 0x6ab   : > { %6417 = vmatprep.subr.bf16.mxu0 %v7527_v21  ;;  %6423 = vmatprep.subr.bf16.mxu1 %v7527_v21 }
 0x6b0   : > { %6408 = vmatmul.mubr.msk.bf16.vlgmr.msra.gmra.mxu0 %vm2817_vm5, %v8281_v16  ;;  %6414 = vmatmul.mubr.msk.bf16.vlgmr.msra.gmra.mxu1 %vm2817_vm5, %v8283_v17 }
 0x6b1   : > { %6419 = vmatprep.mubr.msk.bf16.mxu0 %vm7528_vm7, %v7527_v21  ;;  %6425 = vmatprep.mubr.msk.bf16.mxu1 %vm7528_vm7, %v7527_v21 }
 0x6b2   : > { %6418 = vmatpush3.bf16.msra.mxu0 %v3147_v6  ;;  %6424 = vmatpush3.bf16.msra.mxu1 %v3193_v10 }
 0x6b3   : > { %6429 = vmatprep.subr.bf16.mxu0 %v7527_v21  ;;  %6435 = vmatprep.subr.bf16.mxu1 %v7527_v21 }
 0x768   : > { %v8316_v31 = vpop.f32.mrf.mxu0  ;;  %v8318_v26 = vpop.f32.mrf.mxu1 }
 0x769   : > { %v3022_v28 = vsel %vm2817_vm5, %v8316_v31, -inf  ;;  %v3025_v34 = vsel %vm2817_vm5, %v8318_v26, -inf }
 0x76a   : > { %v6403_v29 = vpop.f32.mrf.mxu1  ;;  %3023 = vmax.xlane.f32.xlu0 %v3022_v28  ;;  %v6397_v62 = vpop.f32.mrf.mxu0 }
 0x76b   : > { %v2832_v62 = vld [vmem:[#allocation3 + $0x10] sm:$0xf] }
 0x76c   : > { %v2877_v35 = vpop.f32.mrf.mxu0  ;;  %v2923_v36 = vpop.f32.mrf.mxu1 }
 0x76e   : > { %v6404_v38 = vpop.f32.mrf.mxu1  ;;  %3026 = vmax.xlane.f32.xlu0 %v3025_v34  ;;  %v6398_v39 = vpop.f32.mrf.mxu0 }
 0x76f   : > { %v3239_v38 = vsel %vm3145_vm8, %v2832_v62, 0 }
 0x770   : > { %v2966_v40 = vpop.f32.mrf.mxu0  ;;  %v8324_v41 = vpop.f32.mrf.mxu1 }
 0x771   : > { %v3028_v42 = vsel %vm2817_vm5, %v2966_v40, -inf  ;;  %v3031_v46 = vsel %vm2817_vm5, %v8324_v41, -inf }
 0x772   : > { %v6415_v44 = vpop.f32.mrf.mxu1  ;;  %3029 = vmax.xlane.f32.xlu1 %v3028_v42  ;;  %v6409_v45 = vpop.f32.mrf.mxu0 }
 0x774   : > { %v2969_v47 = vpop.f32.mrf.mxu0  ;;  %v3015_v48 = vpop.f32.mrf.mxu1 }
 0x776   : > { %v6416_v59 = vpop.f32.mrf.mxu1  ;;  %3032 = vmax.xlane.f32.xlu1 %v3031_v46  ;;  %v6410_v54 = vpop.f32.mrf.mxu0 }
 0x7f3   : > { %v3024_v11 = vpop.xlane.xlu0 %3023 }
 0x7f4   : > { %v3034_v55 = vmax.f32 %v3018_v60, %v3024_v11 }
 0x7f6   : > { %v3038_v49 = vsub.f32 %v3018_v60, %v3034_v55  ;;  %3335 = vst.msk [vmem:[#allocation6] sm:$0xff] %vm2808_vm4, %v3034_v55  ;;  %3052 = vperm.xlu0 %6895, %v3034_v55  }
 0x7f7   : > { %v3027_v57 = vpop.xlane.xlu0 %3026 }
 0x7f8   : > { %v3042_v50 = vmul.f32 1.442695, %v3038_v49  ;;  %v8333_v32 = vmax.f32 %v8329_v56, %v3027_v57 }
 0x7fa   : > { %6897 = vpow2.f32 %v3042_v50  ;;  %v3039_v58 = vsub.f32 %v8329_v56, %v8333_v32  ;;  %3336 = vst.msk [vmem:[#allocation6 + $0x8] sm:$0xff] %vm2808_vm4, %v8333_v32  ;;  %3057 = vperm.xlu1 %6896, %v8333_v32   ;;  %v3082_v56 = vld [vmem:[#allocation7] sm:$0xff]  ;;  %v3083_v50 = vld [vmem:[#allocation7 + $0x8] sm:$0xff] }
 0x7fb   : > { %v3030_v18 = vpop.xlane.xlu1 %3029 }
 0x7fc   : > { %v3036_v0 = vmax.f32 %v3020_v52, %v3030_v18  ;;  %v3044_v46 = vmul.f32 1.442695, %v3039_v58 }
 0x7fe   : > { %v3040_v33 = vsub.f32 %v3020_v52, %v3036_v0  ;;  %3337 = vst.msk [vmem:[#allocation6 + $0x10] sm:$0xff] %vm2808_vm4, %v3036_v0  ;;  %3062 = vperm.xlu1 %6896, %v3036_v0  }
 0x7ff   : > { %v3033_v53 = vpop.xlane.xlu1 %3032 }
 0x800   : > { %v8344_v2 = vmax.f32 %v8340_v1, %v3033_v53  ;;  %v3046_v35 = vmul.f32 1.442695, %v3040_v33  ;;  %v3110_v33 = vld [vmem:[#allocation8] sm:$0xff] }
 0x802   : > { %v3041_v4 = vsub.f32 %v8340_v1, %v8344_v2  ;;  %3338 = vst.msk [vmem:[#allocation6 + $0x18] sm:$0xff] %vm2808_vm4, %v8344_v2  ;;  %3067 = vperm.xlu1 %6896, %v8344_v2   ;;  %v3084_v1 = vld [vmem:[#allocation7 + $0x10] sm:$0xff] }
 0x807   : > { %v6898_v12 = vpop.eup %6897 }
 0x808   : > { %3116 = vperm.xlu1 %6896, %v6898_v12   ;;  %v3086_v49 = vmul.f32 %v6898_v12, %v3082_v56 }
 0x871   : > { %v3053_v7 = vpop.permute.xlu0 %3052 }
 0x872   : > { %v3070_v13 = vsub.f32 %v8316_v31, %v3053_v7 }
 0x874   : > { %v3074_v19 = vmul.f32 1.442695, %v3070_v13 }
 0x875   : > { %v3058_v20 = vpop.permute.xlu1 %3057 }
 0x876   : > { %6899 = vpow2.f32 %v3074_v19  ;;  %v3071_v22 = vsub.f32 %v8318_v26, %v3058_v20  ;;  %v2833_v26 = vld [vmem:[#allocation3 + $0x18] sm:$0xf] }
 0x877   : > { %v3285_v42 = vsel %vm3145_vm8, %v2833_v26, 0 }
 0x878   : > { %v3076_v23 = vmul.f32 1.442695, %v3071_v22 }
 0x879   : > { %v3063_v25 = vpop.permute.xlu1 %3062 }
 0x87a   : > { %6901 = vpow2.f32 %v3076_v23  ;;  %v3072_v24 = vsub.f32 %v2966_v40, %v3063_v25  ;;  %v3112_v25 = vld [vmem:[#allocation8 + $0x10] sm:$0xff] }
 0x87c   : > { %v3078_v63 = vmul.f32 1.442695, %v3072_v24 }
 0x87d   : > { %v3068_v9 = vpop.permute.xlu1 %3067 }
 0x87e   : > { %6903 = vpow2.f32 %v3078_v63  ;;  %v3073_v28 = vsub.f32 %v8324_v41, %v3068_v9 }
 0x880   : > { %v3080_v29 = vmul.f32 1.442695, %v3073_v28 }
 0x882   : > { %6905 = vpow2.f32 %v3080_v29 }
 0x883   : > { %v6900_v34 = vpop.eup %6899  ;;  %6907 = vpow2.f32 %v3046_v35  ;;  %v3117_v55 = vpop.permute.xlu1 %3116  ;;  %v3113_v35 = vld [vmem:[#allocation8 + $0x18] sm:$0xff] }
 0x884   : > { %v3090_v31 = vsel %vm2817_vm5, %v6900_v34, 0.0  ;;  %v3138_v36 = vpack.c.bf16 %v6900_v34, %v6900_v34  ;;  %6909 = vpow2.f32 %v3044_v46  ;;  %v3134_v6 = vmul.f32 %v3117_v55, %v3110_v33 }
 0x885   : > { %3091 = vadd.xlane.f32.xlu1 %v3090_v31 }
 0x886   : > { %6420 = vmatmul.mubr.msk.bf16.vlgmr.msra.gmra.mxu0 %vm2817_vm5, %v3138_v36 }
 0x887   : > { %v6902_v39 = vpop.eup %6901  ;;  %6430 = vmatpush3.bf16.msra.mxu0 %v3239_v38  ;;  %6431 = vmatprep.mubr.msk.bf16.mxu0 %vm7528_vm7, %v7527_v21 }
 0x888   : > { %v3093_v40 = vsel %vm2817_vm5, %v6902_v39, 0.0  ;;  %v3139_v41 = vpack.c.bf16 %v6902_v39, %v6902_v39 }
 0x889   : > { %3094 = vadd.xlane.f32.xlu0 %v3093_v40 }
 0x88a   : > { %6426 = vmatmul.mubr.msk.bf16.vlgmr.msra.gmra.mxu1 %vm2817_vm5, %v3139_v41 }
 0x88b   : > { %v6904_v44 = vpop.eup %6903  ;;  %6436 = vmatpush3.bf16.msra.mxu1 %v3285_v42  ;;  %6437 = vmatprep.mubr.msk.bf16.mxu1 %vm7528_vm7, %v7527_v21  ;;  %v3048_v21 = vmul.f32 1.442695, %v3041_v4 }
 0x88c   : > { %v3140_v45 = vpack.c.bf16 %v6904_v44, %v6904_v44  ;;  %v3096_v54 = vsel %vm2817_vm5, %v6904_v44, 0.0 }
 0x88d   : > { %6911 = vpow2.f32 %v3048_v21 }
 0x88e   : > { %6432 = vmatmul.mubr.msk.bf16.vlgmr.msra.gmra.mxu0 %vm2817_vm5, %v3140_v45 }
 0x88f   : > { %v6906_v47 = vpop.eup %6905 }
 0x890   : > { %v3141_v48 = vpack.c.bf16 %v6906_v47, %v6906_v47  ;;  %v6908_v51 = vpop.eup %6907  ;;  %v3099_v60 = vsel %vm2817_vm5, %v6906_v47, 0.0 }
 0x891   : > { %v6910_v59 = vpop.eup %6909  ;;  %v3088_v53 = vmul.f32 %v6908_v51, %v3084_v1 }
 0x892   : > { %6438 = vmatmul.mubr.msk.bf16.vlgmr.msra.gmra.mxu1 %vm2817_vm5, %v3141_v48  ;;  %v3087_v52 = vmul.f32 %v6910_v59, %v3083_v50 }
 0x896   : > { %3126 = vperm.xlu1 %6896, %v6908_v51  }
 0x89a   : > { %v6912_v11 = vpop.eup %6911 }
 0x89b   : > { %v3089_v7 = vmul.f32 %v6912_v11, %v3085_v3 }
 0x89f   : > { %3121 = vperm.xlu0 %6895, %v6910_v59  }
 0x8ba   : > { %3097 = vadd.xlane.f32.xlu1 %v3096_v54 }
 0x8be   : > { %3100 = vadd.xlane.f32.xlu1 %v3099_v60 }
 0x8cf   : > { %3131 = vperm.xlu1 %6896, %v6912_v11  }
 0x90e   : > { %v3092_v57 = vpop.xlane.xlu1 %3091 }
 0x90f   : > { %v3102_v32 = vadd.f32 %v3092_v57, %v3086_v49 }
 0x911   : > { %3106 = vst.msk [vmem:[#allocation7] sm:$0xff] %vm2808_vm4, %v3102_v32 }
 0x912   : > { %v3095_v58 = vpop.xlane.xlu0 %3094  ;;  %v3127_v0 = vpop.permute.xlu1 %3126 }
 0x913   : > { %v3103_v18 = vadd.f32 %v3095_v58, %v3087_v52  ;;  %v3136_v62 = vmul.f32 %v3127_v0, %v3112_v25 }
 0x915   : > { %3107 = vst.msk [vmem:[#allocation7 + $0x8] sm:$0xff] %vm2808_vm4, %v3103_v18 }
 0x91a   : > { %v3122_v10 = vpop.permute.xlu0 %3121 }
 0x91b   : > { %v3135_v23 = vmul.f32 %v3122_v10, %v3111_v8 }
 0x943   : > { %v3098_v2 = vpop.xlane.xlu1 %3097 }
 0x944   : > { %v3104_v4 = vadd.f32 %v3098_v2, %v3088_v53 }
 0x946   : > { %3108 = vst.msk [vmem:[#allocation7 + $0x10] sm:$0xff] %vm2808_vm4, %v3104_v4  ;;  %v3183_v12 = vpop.f32.mrf.mxu0 }
 0x947   : > { %v3327_v13 = vadd.f32 %v3183_v12, %v3134_v6  ;;  %v3101_v19 = vpop.xlane.xlu1 %3100 }
 0x948   : > { %v3105_v20 = vadd.f32 %v3101_v19, %v3089_v7  ;;  %v6421_v22 = vpop.f32.mrf.mxu0 }
 0x949   : > { %3331 = vst.msk [vmem:[#allocation8] sm:$0xff] %vm2817_vm5, %v3327_v13 }
 0x94a   : > { %3109 = vst.msk [vmem:[#allocation7 + $0x18] sm:$0xff] %vm2808_vm4, %v3105_v20  ;;  %v3186_v24 = vpop.f32.mrf.mxu0  ;;  %v3229_v63 = vpop.f32.mrf.mxu1 }
 0x94b   : > { %v3328_v9 = vadd.f32 %v3229_v63, %v3135_v23  ;;  %v3132_v34 = vpop.permute.xlu1 %3131 }
 0x94c   : > { %v6422_v28 = vpop.f32.mrf.mxu0  ;;  %v6427_v29 = vpop.f32.mrf.mxu1  ;;  %v3137_v40 = vmul.f32 %v3132_v34, %v3113_v35 }
 0x94d   : > { %3332 = vst.msk [vmem:[#allocation8 + $0x8] sm:$0xff] %vm2817_vm5, %v3328_v9 }
 0x94e   : > { %v3232_v31 = vpop.f32.mrf.mxu1  ;;  %v3275_v36 = vpop.f32.mrf.mxu0 }
 0x94f   : > { %v3329_v38 = vadd.f32 %v3275_v36, %v3136_v62 }
 0x950   : > { %v6428_v26 = vpop.f32.mrf.mxu1  ;;  %v6433_v39 = vpop.f32.mrf.mxu0 }
 0x951   : > { %3333 = vst.msk [vmem:[#allocation8 + $0x10] sm:$0xff] %vm2817_vm5, %v3329_v38 }
 0x952   : > { %v3278_v41 = vpop.f32.mrf.mxu0  ;;  %v3321_v42 = vpop.f32.mrf.mxu1 }
 0x953   : > { %v3330_v44 = vadd.f32 %v3321_v42, %v3137_v40 }
 0x954   : > { %v6434_v45 = vpop.f32.mrf.mxu0  ;;  %v6439_v46 = vpop.f32.mrf.mxu1 }
 0x955   : > { %3334 = vst.msk [vmem:[#allocation8 + $0x18] sm:$0xff] %vm2817_vm5, %v3330_v44 }
 0x956   : > { %v3324_v47 = vpop.f32.mrf.mxu1 }
 0x958   : > { %v6440_v48 = vpop.f32.mrf.mxu1 }
 0x959 PF: > { %v3342_v51 = vand.u32 127, %v2673_v27  ;;  %3346 = sbr.rel (%p6069_p0) target bundleno = 3097 (0xc19), region = 184 }
 0x95b   : > { %vm8385_vm9 = vcmp.le.s32.totalorder %v3342_v51, %v8253_v30 }
 0x95e   : > { %v3347_v54 = vld [vmem:[#allocation2] sm:$0xf]  ;;  %v3348_v21 = vld [vmem:[#allocation2 + $0x8] sm:$0xf]  ;;  %v7530_v60 = vmov 0.0   ;;  %vm7531_vm10 = vmmov 0  }
 0x95f   : > { %6441 = vmatprep.subr.bf16.mxu0 %v7530_v60  ;;  %6447 = vmatprep.subr.bf16.mxu1 %v7530_v60  ;;  %v3359_v11 = vsel %vm2817_vm5, %v3347_v54, 0  ;;  %v3405_v55 = vsel %vm2817_vm5, %v3348_v21, 0  ;;  %v3349_v27 = vld [vmem:[#allocation2 + $0x10] sm:$0xf]  ;;  %v3350_v30 = vld [vmem:[#allocation2 + $0x18] sm:$0xf] }
 0x960   : > { %6442 = vmatpush3.bf16.xpose.msra.mxu0 %v3359_v11  ;;  %6448 = vmatpush3.bf16.xpose.msra.mxu1 %v3405_v55  ;;  %v3451_v56 = vsel %vm2817_vm5, %v3349_v27, 0  ;;  %v3497_v49 = vsel %vm2817_vm5, %v3350_v30, 0  ;;  %v7532_v24 = vmov 0   ;;  %v3545_v63 = vld [vmem:[#allocation6] sm:$0xff]  ;;  %v8442_v29 = vld [vmem:[#allocation6 + $0x8] sm:$0xff]  ;;  %v3547_v36 = vld [vmem:[#allocation6 + $0x10] sm:$0xff] }
 0x961   : > { %6443 = vmatprep.mubr.msk.bf16.mxu0 %vm7531_vm10, %v7530_v60  ;;  %6449 = vmatprep.mubr.msk.bf16.mxu1 %vm7531_vm10, %v7530_v60  ;;  %v8453_v40 = vld [vmem:[#allocation6 + $0x18] sm:$0xff]  ;;  %v3351_v45 = vld [vmem:[#allocation3] sm:$0xf]  ;;  %vm3672_vm11 = vcmask 1043456   ;;  %v3352_v48 = vld [vmem:[#allocation3 + $0x8] sm:$0xf] }
 0x962   : > { %6453 = vmatprep.subr.bf16.mxu0 %v7530_v60  ;;  %6459 = vmatprep.subr.bf16.mxu1 %v7530_v60  ;;  %v3674_v47 = vsel %vm3672_vm11, %v3351_v45, 0  ;;  %v3720_v51 = vsel %vm3672_vm11, %v3352_v48, 0 }
 0x963   : > { %6913 = vset.pattern.permute.xlu0 %v7532_v24  ;;  %6914 = vset.pattern.permute.xlu1 %v7532_v24 }
 0x967   : > { %6444 = vmatmul.mubr.msk.bf16.vlgmr.msra.gmra.mxu0 %vm2817_vm5, %v8277_v14  ;;  %6450 = vmatmul.mubr.msk.bf16.vlgmr.msra.gmra.mxu1 %vm2817_vm5, %v8279_v15 }
 0x968   : > { %6454 = vmatpush3.bf16.xpose.msra.mxu0 %v3451_v56  ;;  %6460 = vmatpush3.bf16.xpose.msra.mxu1 %v3497_v49 }
 0x969   : > { %6455 = vmatprep.mubr.msk.bf16.mxu0 %vm7531_vm10, %v7530_v60  ;;  %6461 = vmatprep.mubr.msk.bf16.mxu1 %vm7531_vm10, %v7530_v60 }
 0x96a   : > { %6465 = vmatprep.subr.bf16.mxu0 %v7530_v60  ;;  %6471 = vmatprep.subr.bf16.mxu1 %v7530_v60 }
 0x96f   : > { %6456 = vmatmul.mubr.msk.bf16.vlgmr.msra.gmra.mxu0 %vm2817_vm5, %v8281_v16  ;;  %6462 = vmatmul.mubr.msk.bf16.vlgmr.msra.gmra.mxu1 %vm2817_vm5, %v8283_v17 }
 0x970   : > { %6467 = vmatprep.mubr.msk.bf16.mxu0 %vm7531_vm10, %v7530_v60  ;;  %6473 = vmatprep.mubr.msk.bf16.mxu1 %vm7531_vm10, %v7530_v60 }
 0x971   : > { %6466 = vmatpush3.bf16.msra.mxu0 %v3674_v47  ;;  %6472 = vmatpush3.bf16.msra.mxu1 %v3720_v51  ;;  %v3638_v47 = vld [vmem:[#allocation8 + $0x8] sm:$0xff] }
 0x972   : > { %6477 = vmatprep.subr.bf16.mxu0 %v7530_v60  ;;  %6483 = vmatprep.subr.bf16.mxu1 %v7530_v60 }
 0xa27   : > { %v3395_v57 = vpop.f32.mrf.mxu0  ;;  %v3441_v50 = vpop.f32.mrf.mxu1 }
 0xa28   : > { %v8423_v32 = vsel %vm8385_vm9, %v3395_v57, -1e+30  ;;  %v8427_v52 = vsel %vm8385_vm9, %v3441_v50, -1e+30 }
 0xa29   : > { %v6445_v58 = vpop.f32.mrf.mxu0  ;;  %v6451_v18 = vpop.f32.mrf.mxu1  ;;  %v3549_v0 = vsel %vm2817_vm5, %v8423_v32, -inf  ;;  %v3552_v53 = vsel %vm2817_vm5, %v8427_v52, -inf }
 0xa2a   : > { %3550 = vmax.xlane.f32.xlu0 %v3549_v0 }
 0xa2b   : > { %v3398_v1 = vpop.f32.mrf.mxu0  ;;  %v3444_v33 = vpop.f32.mrf.mxu1 }
 0xa2c   : > { %v3353_v1 = vld [vmem:[#allocation3 + $0x10] sm:$0xf] }
 0xa2d   : > { %v6446_v2 = vpop.f32.mrf.mxu0  ;;  %v6452_v3 = vpop.f32.mrf.mxu1 }
 0xa2e   : > { %3553 = vmax.xlane.f32.xlu0 %v3552_v53  ;;  %v3766_v3 = vsel %vm3672_vm11, %v3353_v1, 0 }
 0xa2f   : > { %v3487_v4 = vpop.f32.mrf.mxu0  ;;  %v3533_v6 = vpop.f32.mrf.mxu1 }
 0xa30   : > { %v3543_v8 = vsel %vm8385_vm9, %v3487_v4, -1e+30  ;;  %v8437_v10 = vsel %vm8385_vm9, %v3533_v6, -1e+30 }
 0xa31   : > { %v6457_v12 = vpop.f32.mrf.mxu0  ;;  %v6463_v7 = vpop.f32.mrf.mxu1  ;;  %v3555_v13 = vsel %vm2817_vm5, %v3543_v8, -inf  ;;  %v3558_v22 = vsel %vm2817_vm5, %v8437_v10, -inf }
 0xa32   : > { %3556 = vmax.xlane.f32.xlu1 %v3555_v13 }
 0xa33   : > { %v3490_v19 = vpop.f32.mrf.mxu0  ;;  %v3536_v20 = vpop.f32.mrf.mxu1 }
 0xa35   : > { %v6458_v23 = vpop.f32.mrf.mxu0  ;;  %v6464_v25 = vpop.f32.mrf.mxu1 }
 0xa36   : > { %3559 = vmax.xlane.f32.xlu1 %v3558_v22 }
 0xab3   : > { %v3551_v9 = vpop.xlane.xlu0 %3550 }
 0xab4   : > { %v3561_v28 = vmax.f32 %v3545_v63, %v3551_v9 }
 0xab6   : > { %v3565_v62 = vsub.f32 %v3545_v63, %v3561_v28  ;;  %3862 = vst.msk [vmem:[#allocation6] sm:$0xff] %vm2808_vm4, %v3561_v28  ;;  %3579 = vperm.xlu0 %6913, %v3561_v28   ;;  %v3609_v28 = vld [vmem:[#allocation7] sm:$0xff] }
 0xab7   : > { %v3554_v34 = vpop.xlane.xlu0 %3553 }
 0xab8   : > { %v3569_v35 = vmul.f32 1.442695, %v3565_v62  ;;  %v8446_v31 = vmax.f32 %v8442_v29, %v3554_v34  ;;  %v3610_v34 = vld [vmem:[#allocation7 + $0x8] sm:$0xff] }
 0xaba   : > { %6915 = vpow2.f32 %v3569_v35  ;;  %v3566_v38 = vsub.f32 %v8442_v29, %v8446_v31  ;;  %3863 = vst.msk [vmem:[#allocation6 + $0x8] sm:$0xff] %vm2808_vm4, %v8446_v31  ;;  %3584 = vperm.xlu1 %6914, %v8446_v31  }
 0xabb   : > { %v3557_v26 = vpop.xlane.xlu1 %3556 }
 0xabc   : > { %v3563_v39 = vmax.f32 %v3547_v36, %v3557_v26  ;;  %v3571_v13 = vmul.f32 1.442695, %v3566_v38 }
 0xabe   : > { %v3567_v41 = vsub.f32 %v3547_v36, %v3563_v39  ;;  %3864 = vst.msk [vmem:[#allocation6 + $0x10] sm:$0xff] %vm2808_vm4, %v3563_v39  ;;  %3589 = vperm.xlu1 %6914, %v3563_v39   ;;  %v3611_v39 = vld [vmem:[#allocation7 + $0x10] sm:$0xff] }
 0xabf   : > { %v3560_v42 = vpop.xlane.xlu1 %3559 }
 0xac0   : > { %v8457_v44 = vmax.f32 %v8453_v40, %v3560_v42  ;;  %v3573_v53 = vmul.f32 1.442695, %v3567_v41 }
 0xac2   : > { %v3568_v46 = vsub.f32 %v8453_v40, %v8457_v44  ;;  %3865 = vst.msk [vmem:[#allocation6 + $0x18] sm:$0xff] %vm2808_vm4, %v8457_v44  ;;  %3594 = vperm.xlu1 %6914, %v8457_v44   ;;  %v3637_v40 = vld [vmem:[#allocation8] sm:$0xff]  ;;  %v3612_v44 = vld [vmem:[#allocation7 + $0x18] sm:$0xff] }
 0xac7   : > { %v6916_v54 = vpop.eup %6915 }
 0xac8   : > { %3643 = vperm.xlu1 %6914, %v6916_v54   ;;  %v3613_v29 = vmul.f32 %v6916_v54, %v3609_v28 }
 0xb31   : > { %v3580_v21 = vpop.permute.xlu0 %3579 }
 0xb32   : > { %v3597_v11 = vsub.f32 %v8423_v32, %v3580_v21 }
 0xb34   : > { %v3601_v55 = vmul.f32 1.442695, %v3597_v11 }
 0xb35   : > { %v3585_v27 = vpop.permute.xlu1 %3584 }
 0xb36   : > { %6917 = vpow2.f32 %v3601_v55  ;;  %v3598_v30 = vsub.f32 %v8427_v52, %v3585_v27  ;;  %v3354_v52 = vld [vmem:[#allocation3 + $0x18] sm:$0xf] }
 0xb38   : > { %v3603_v56 = vmul.f32 1.442695, %v3598_v30 }
 0xb39   : > { %v3590_v49 = vpop.permute.xlu1 %3589 }
 0xb3a   : > { %6919 = vpow2.f32 %v3603_v56  ;;  %v3599_v57 = vsub.f32 %v3543_v8, %v3590_v49  ;;  %v3639_v56 = vld [vmem:[#allocation8 + $0x10] sm:$0xff] }
 0xb3c   : > { %v3605_v50 = vmul.f32 1.442695, %v3599_v57 }
 0xb3d   : > { %v3595_v58 = vpop.permute.xlu1 %3594 }
 0xb3e   : > { %6921 = vpow2.f32 %v3605_v50  ;;  %v3600_v18 = vsub.f32 %v8437_v10, %v3595_v58  ;;  %v3812_v10 = vsel %vm3672_vm11, %v3354_v52, 0 }
 0xb40   : > { %v3607_v0 = vmul.f32 1.442695, %v3600_v18 }
 0xb42   : > { %6923 = vpow2.f32 %v3607_v0 }
 0xb43   : > { %v6918_v33 = vpop.eup %6917  ;;  %6925 = vpow2.f32 %v3573_v53  ;;  %v3644_v9 = vpop.permute.xlu1 %3643 }
 0xb44   : > { %v3617_v32 = vsel %vm2817_vm5, %v6918_v33, 0.0  ;;  %v3665_v2 = vpack.c.bf16 %v6918_v33, %v6918_v33  ;;  %6927 = vpow2.f32 %v3571_v13  ;;  %v3640_v33 = vld [vmem:[#allocation8 + $0x18] sm:$0xff] }
 0xb45   : > { %3618 = vadd.xlane.f32.xlu1 %v3617_v32 }
 0xb46   : > { %6468 = vmatmul.mubr.msk.bf16.vlgmr.msra.gmra.mxu0 %vm2817_vm5, %v3665_v2 }
 0xb47   : > { %v6920_v4 = vpop.eup %6919  ;;  %6478 = vmatpush3.bf16.msra.mxu0 %v3766_v3  ;;  %6479 = vmatprep.mubr.msk.bf16.mxu0 %vm7531_vm10, %v7530_v60 }
 0xb48   : > { %v3620_v6 = vsel %vm2817_vm5, %v6920_v4, 0.0  ;;  %v3666_v8 = vpack.c.bf16 %v6920_v4, %v6920_v4 }
 0xb49   : > { %3621 = vadd.xlane.f32.xlu0 %v3620_v6 }
 0xb4a   : > { %6474 = vmatmul.mubr.msk.bf16.vlgmr.msra.gmra.mxu1 %vm2817_vm5, %v3666_v8 }
 0xb4b   : > { %v6922_v12 = vpop.eup %6921  ;;  %6484 = vmatpush3.bf16.msra.mxu1 %v3812_v10  ;;  %6485 = vmatprep.mubr.msk.bf16.mxu1 %vm7531_vm10, %v7530_v60  ;;  %v3575_v60 = vmul.f32 1.442695, %v3568_v46  ;;  %v3661_v46 = vmul.f32 %v3644_v9, %v3637_v40 }
 0xb4c   : > { %v3667_v7 = vpack.c.bf16 %v6922_v12, %v6922_v12  ;;  %v3623_v25 = vsel %vm2817_vm5, %v6922_v12, 0.0 }
 0xb4d   : > { %6929 = vpow2.f32 %v3575_v60 }
 0xb4e   : > { %6480 = vmatmul.mubr.msk.bf16.vlgmr.msra.gmra.mxu0 %vm2817_vm5, %v3667_v7 }
 0xb4f   : > { %v6924_v19 = vpop.eup %6923 }
 0xb50   : > { %v3668_v20 = vpack.c.bf16 %v6924_v19, %v6924_v19  ;;  %v6926_v22 = vpop.eup %6925  ;;  %v3626_v24 = vsel %vm2817_vm5, %v6924_v19, 0.0 }
 0xb51   : > { %v6928_v23 = vpop.eup %6927  ;;  %v3615_v41 = vmul.f32 %v6926_v22, %v3611_v39 }
 0xb52   : > { %6486 = vmatmul.mubr.msk.bf16.vlgmr.msra.gmra.mxu1 %vm2817_vm5, %v3668_v20  ;;  %v3614_v31 = vmul.f32 %v6928_v23, %v3610_v34 }
 0xb56   : > { %3653 = vperm.xlu1 %6914, %v6926_v22  }
 0xb5a   : > { %v6930_v63 = vpop.eup %6929 }
 0xb5b   : > { %v3616_v54 = vmul.f32 %v6930_v63, %v3612_v44 }
 0xb5f   : > { %3648 = vperm.xlu0 %6913, %v6928_v23  }
 0xb7a   : > { %3624 = vadd.xlane.f32.xlu1 %v3623_v25 }
 0xb7e   : > { %3627 = vadd.xlane.f32.xlu1 %v3626_v24 }
 0xb8f   : > { %3658 = vperm.xlu1 %6914, %v6930_v63  }
 0xbce   : > { %v3619_v62 = vpop.xlane.xlu1 %3618 }
 0xbcf   : > { %v3629_v35 = vadd.f32 %v3619_v62, %v3613_v29 }
 0xbd1   : > { %3633 = vst.msk [vmem:[#allocation7] sm:$0xff] %vm2808_vm4, %v3629_v35 }
 0xbd2   : > { %v3622_v36 = vpop.xlane.xlu0 %3621  ;;  %v3654_v26 = vpop.permute.xlu1 %3653 }
 0xbd3   : > { %v3630_v38 = vadd.f32 %v3622_v36, %v3614_v31  ;;  %v3663_v0 = vmul.f32 %v3654_v26, %v3639_v56 }
 0xbd5   : > { %3634 = vst.msk [vmem:[#allocation7 + $0x8] sm:$0xff] %vm2808_vm4, %v3630_v38 }
 0xbda   : > { %v3649_v48 = vpop.permute.xlu0 %3648 }
 0xbdb   : > { %v3662_v30 = vmul.f32 %v3649_v48, %v3638_v47 }
 0xc03   : > { %v3625_v42 = vpop.xlane.xlu1 %3624 }
 0xc04   : > { %v3631_v45 = vadd.f32 %v3625_v42, %v3615_v41 }
 0xc06   : > { %3635 = vst.msk [vmem:[#allocation7 + $0x10] sm:$0xff] %vm2808_vm4, %v3631_v45  ;;  %v3710_v51 = vpop.f32.mrf.mxu0 }
 0xc07   : > { %v3854_v21 = vadd.f32 %v3710_v51, %v3661_v46  ;;  %v3628_v11 = vpop.xlane.xlu1 %3627 }
 0xc08   : > { %v3632_v55 = vadd.f32 %v3628_v11, %v3616_v54  ;;  %v6469_v27 = vpop.f32.mrf.mxu0 }
 0xc09   : > { %3858 = vst.msk [vmem:[#allocation8] sm:$0xff] %vm2817_vm5, %v3854_v21 }
 0xc0a   : > { %3636 = vst.msk [vmem:[#allocation7 + $0x18] sm:$0xff] %vm2808_vm4, %v3632_v55  ;;  %v3713_v49 = vpop.f32.mrf.mxu0  ;;  %v3756_v57 = vpop.f32.mrf.mxu1 }
 0xc0b   : > { %v3855_v50 = vadd.f32 %v3756_v57, %v3662_v30  ;;  %v3659_v1 = vpop.permute.xlu1 %3658 }
 0xc0c   : > { %v6470_v58 = vpop.f32.mrf.mxu0  ;;  %v6475_v18 = vpop.f32.mrf.mxu1  ;;  %v3664_v4 = vmul.f32 %v3659_v1, %v3640_v33 }
 0xc0d   : > { %3859 = vst.msk [vmem:[#allocation8 + $0x8] sm:$0xff] %vm2817_vm5, %v3855_v50 }
 0xc0e   : > { %v3759_v53 = vpop.f32.mrf.mxu1  ;;  %v3802_v32 = vpop.f32.mrf.mxu0 }
 0xc0f   : > { %v3856_v2 = vadd.f32 %v3802_v32, %v3663_v0 }
 0xc10   : > { %v6476_v3 = vpop.f32.mrf.mxu1  ;;  %v6481_v52 = vpop.f32.mrf.mxu0 }
 0xc11   : > { %3860 = vst.msk [vmem:[#allocation8 + $0x10] sm:$0xff] %vm2817_vm5, %v3856_v2 }
 0xc12   : > { %v3805_v6 = vpop.f32.mrf.mxu0  ;;  %v3848_v8 = vpop.f32.mrf.mxu1 }
 0xc13   : > { %v3857_v10 = vadd.f32 %v3848_v8, %v3664_v4 }
 0xc14   : > { %v6482_v12 = vpop.f32.mrf.mxu0  ;;  %v6487_v7 = vpop.f32.mrf.mxu1 }
 0xc15   : > { %3861 = vst.msk [vmem:[#allocation8 + $0x18] sm:$0xff] %vm2817_vm5, %v3857_v10 }
 0xc16   : > { %v3851_v13 = vpop.f32.mrf.mxu1 }
 0xc18   : > { %v6488_v19 = vpop.f32.mrf.mxu1 }
 0xc19 PF: > { %p6161_p4 = scmp.ne.s32.totalorder %s7477_s28, 1 }
 0xc1b   : > { %3869 = sbr.rel (%p6161_p4) target bundleno = 3803 (0xedb), region = 188 }
 0xc20   : > { %v3870_v20 = vld [vmem:[#allocation2 + $0x4] sm:$0xf]  ;;  %v3871_v22 = vld [vmem:[#allocation2 + $0xc] sm:$0xf]  ;;  %v7533_v23 = vmov 0.0   ;;  %vm7534_vm12 = vmmov 0  }
 0xc21   : > { %6489 = vmatprep.subr.bf16.mxu0 %v7533_v23  ;;  %6495 = vmatprep.subr.bf16.mxu1 %v7533_v23  ;;  %v3882_v25 = vsel %vm2817_vm5, %v3870_v20, 0  ;;  %v3928_v60 = vsel %vm2817_vm5, %v3871_v22, 0  ;;  %v3872_v24 = vld [vmem:[#allocation2 + $0x14] sm:$0xf]  ;;  %v3873_v63 = vld [vmem:[#allocation2 + $0x1c] sm:$0xf] }
 0xc22   : > { %6490 = vmatpush3.bf16.xpose.msra.mxu0 %v3882_v25  ;;  %6496 = vmatpush3.bf16.xpose.msra.mxu1 %v3928_v60  ;;  %v3974_v9 = vsel %vm2817_vm5, %v3872_v24, 0  ;;  %v4020_v28 = vsel %vm2817_vm5, %v3873_v63, 0  ;;  %v7535_v11 = vmov 0   ;;  %v4068_v55 = vld [vmem:[#allocation6] sm:$0xff]  ;;  %v8548_v30 = vld [vmem:[#allocation6 + $0x8] sm:$0xff]  ;;  %v4070_v58 = vld [vmem:[#allocation6 + $0x10] sm:$0xff] }
 0xc23   : > { %6491 = vmatprep.mubr.msk.bf16.mxu0 %vm7534_vm12, %v7533_v23  ;;  %6497 = vmatprep.mubr.msk.bf16.mxu1 %vm7534_vm12, %v7533_v23  ;;  %v8559_v33 = vld [vmem:[#allocation6 + $0x18] sm:$0xff]  ;;  %v3874_v3 = vld [vmem:[#allocation3 + $0x4] sm:$0xf]  ;;  %vm4195_vm13 = vcmask 1043456   ;;  %v3875_v6 = vld [vmem:[#allocation3 + $0xc] sm:$0xf] }
 0xc24   : > { %6501 = vmatprep.subr.bf16.mxu0 %v7533_v23  ;;  %6507 = vmatprep.subr.bf16.mxu1 %v7533_v23  ;;  %v4197_v4 = vsel %vm4195_vm13, %v3874_v3, 0  ;;  %v4243_v8 = vsel %vm4195_vm13, %v3875_v6, 0 }
 0xc25   : > { %6931 = vset.pattern.permute.xlu0 %v7535_v11  ;;  %6932 = vset.pattern.permute.xlu1 %v7535_v11 }
 0xc29   : > { %6492 = vmatmul.mubr.msk.bf16.vlgmr.msra.gmra.mxu0 %vm2817_vm5, %v8277_v14  ;;  %6498 = vmatmul.mubr.msk.bf16.vlgmr.msra.gmra.mxu1 %vm2817_vm5, %v8279_v15 }
 0xc2a   : > { %6502 = vmatpush3.bf16.xpose.msra.mxu0 %v3974_v9  ;;  %6508 = vmatpush3.bf16.xpose.msra.mxu1 %v4020_v28 }
 0xc2b   : > { %6503 = vmatprep.mubr.msk.bf16.mxu0 %vm7534_vm12, %v7533_v23  ;;  %6509 = vmatprep.mubr.msk.bf16.mxu1 %vm7534_vm12, %v7533_v23 }
 0xc2c   : > { %6513 = vmatprep.subr.bf16.mxu0 %v7533_v23  ;;  %6519 = vmatprep.subr.bf16.mxu1 %v7533_v23 }
 0xc31   : > { %6504 = vmatmul.mubr.msk.bf16.vlgmr.msra.gmra.mxu0 %vm2817_vm5, %v8281_v16  ;;  %6510 = vmatmul.mubr.msk.bf16.vlgmr.msra.gmra.mxu1 %vm2817_vm5, %v8283_v17 }
 0xc32   : > { %6515 = vmatprep.mubr.msk.bf16.mxu0 %vm7534_vm12, %v7533_v23  ;;  %6521 = vmatprep.mubr.msk.bf16.mxu1 %vm7534_vm12, %v7533_v23 }
 0xc33   : > { %6514 = vmatpush3.bf16.msra.mxu0 %v4197_v4  ;;  %6520 = vmatpush3.bf16.msra.mxu1 %v4243_v8 }
 0xc34   : > { %6525 = vmatprep.subr.bf16.mxu0 %v7533_v23  ;;  %6531 = vmatprep.subr.bf16.mxu1 %v7533_v23 }
 0xce9   : > { %v3918_v14 = vpop.f32.mrf.mxu0  ;;  %v3964_v15 = vpop.f32.mrf.mxu1 }
 0xcea   : > { %v8529_v29 = vsel %vm8385_vm9, %v3918_v14, -1e+30  ;;  %v8533_v62 = vsel %vm8385_vm9, %v3964_v15, -1e+30  ;;  %v3876_v14 = vld [vmem:[#allocation3 + $0x14] sm:$0xf] }
 0xceb   : > { %v6493_v16 = vpop.f32.mrf.mxu0  ;;  %v6499_v34 = vpop.f32.mrf.mxu1  ;;  %v4072_v17 = vsel %vm2817_vm5, %v8529_v29, -inf  ;;  %v4075_v36 = vsel %vm2817_vm5, %v8533_v62, -inf }
 0xcec   : > { %4073 = vmax.xlane.f32.xlu0 %v4072_v17  ;;  %v4289_v17 = vsel %vm4195_vm13, %v3876_v14, 0 }
 0xced   : > { %v3921_v35 = vpop.f32.mrf.mxu0  ;;  %v3967_v31 = vpop.f32.mrf.mxu1 }
 0xcef   : > { %v6494_v38 = vpop.f32.mrf.mxu0  ;;  %v6500_v26 = vpop.f32.mrf.mxu1 }
 0xcf0   : > { %4076 = vmax.xlane.f32.xlu0 %v4075_v36 }
 0xcf1   : > { %v4010_v39 = vpop.f32.mrf.mxu0  ;;  %v4056_v40 = vpop.f32.mrf.mxu1 }
 0xcf2   : > { %v4066_v41 = vsel %vm8385_vm9, %v4010_v39, -1e+30  ;;  %v8543_v42 = vsel %vm8385_vm9, %v4056_v40, -1e+30 }
 0xcf3   : > { %v6505_v44 = vpop.f32.mrf.mxu0  ;;  %v6511_v45 = vpop.f32.mrf.mxu1  ;;  %v4078_v46 = vsel %vm2817_vm5, %v4066_v41, -inf  ;;  %v4081_v51 = vsel %vm2817_vm5, %v8543_v42, -inf }
 0xcf4   : > { %4079 = vmax.xlane.f32.xlu1 %v4078_v46 }
 0xcf5   : > { %v4013_v47 = vpop.f32.mrf.mxu0  ;;  %v4059_v48 = vpop.f32.mrf.mxu1 }
 0xcf7   : > { %v6506_v54 = vpop.f32.mrf.mxu0  ;;  %v6512_v21 = vpop.f32.mrf.mxu1 }
 0xcf8   : > { %4082 = vmax.xlane.f32.xlu1 %v4081_v51  ;;  %v4132_v54 = vld [vmem:[#allocation7] sm:$0xff] }
 0xd75   : > { %v4074_v59 = vpop.xlane.xlu0 %4073 }
 0xd76   : > { %v4084_v27 = vmax.f32 %v4068_v55, %v4074_v59 }
 0xd78   : > { %v4088_v56 = vsub.f32 %v4068_v55, %v4084_v27  ;;  %4385 = vst.msk [vmem:[#allocation6] sm:$0xff] %vm2808_vm4, %v4084_v27  ;;  %4102 = vperm.xlu0 %6931, %v4084_v27   ;;  %v4133_v55 = vld [vmem:[#allocation7 + $0x8] sm:$0xff] }
 0xd79   : > { %v4077_v49 = vpop.xlane.xlu0 %4076 }
 0xd7a   : > { %v4092_v57 = vmul.f32 1.442695, %v4088_v56  ;;  %v8552_v50 = vmax.f32 %v8548_v30, %v4077_v49 }
 0xd7c   : > { %6933 = vpow2.f32 %v4092_v57  ;;  %v4089_v18 = vsub.f32 %v8548_v30, %v8552_v50  ;;  %4386 = vst.msk [vmem:[#allocation6 + $0x8] sm:$0xff] %vm2808_vm4, %v8552_v50  ;;  %4107 = vperm.xlu1 %6932, %v8552_v50   ;;  %v4134_v57 = vld [vmem:[#allocation7 + $0x10] sm:$0xff]  ;;  %v4160_v50 = vld [vmem:[#allocation8] sm:$0xff] }
 0xd7d   : > { %v4080_v0 = vpop.xlane.xlu1 %4079 }
 0xd7e   : > { %v4086_v1 = vmax.f32 %v4070_v58, %v4080_v0  ;;  %v4094_v40 = vmul.f32 1.442695, %v4089_v18  ;;  %v4135_v0 = vld [vmem:[#allocation7 + $0x18] sm:$0xff] }
 0xd80   : > { %v4090_v53 = vsub.f32 %v4070_v58, %v4086_v1  ;;  %4387 = vst.msk [vmem:[#allocation6 + $0x10] sm:$0xff] %vm2808_vm4, %v4086_v1  ;;  %4112 = vperm.xlu1 %6932, %v4086_v1  }
 0xd81   : > { %v4083_v32 = vpop.xlane.xlu1 %4082 }
 0xd82   : > { %v8563_v2 = vmax.f32 %v8559_v33, %v4083_v32  ;;  %v4096_v16 = vmul.f32 1.442695, %v4090_v53  ;;  %v4161_v53 = vld [vmem:[#allocation8 + $0x8] sm:$0xff] }
 0xd84   : > { %v4091_v52 = vsub.f32 %v8559_v33, %v8563_v2  ;;  %4388 = vst.msk [vmem:[#allocation6 + $0x18] sm:$0xff] %vm2808_vm4, %v8563_v2  ;;  %4117 = vperm.xlu1 %6932, %v8563_v2  }
 0xd89   : > { %v6934_v10 = vpop.eup %6933 }
 0xd8a   : > { %4166 = vperm.xlu1 %6932, %v6934_v10   ;;  %v4136_v21 = vmul.f32 %v6934_v10, %v4132_v54 }
 0xdf3   : > { %v4103_v12 = vpop.permute.xlu0 %4102 }
 0xdf4   : > { %v4120_v7 = vsub.f32 %v8529_v29, %v4103_v12  ;;  %v4162_v12 = vld [vmem:[#allocation8 + $0x10] sm:$0xff] }
 0xdf6   : > { %v4124_v13 = vmul.f32 1.442695, %v4120_v7 }
 0xdf7   : > { %v4108_v19 = vpop.permute.xlu1 %4107 }
 0xdf8   : > { %6935 = vpow2.f32 %v4124_v13  ;;  %v4121_v20 = vsub.f32 %v8533_v62, %v4108_v19  ;;  %v3877_v62 = vld [vmem:[#allocation3 + $0x1c] sm:$0xf] }
 0xdf9   : > { %v4335_v38 = vsel %vm4195_vm13, %v3877_v62, 0 }
 0xdfa   : > { %v4126_v22 = vmul.f32 1.442695, %v4121_v20 }
 0xdfb   : > { %v4113_v25 = vpop.permute.xlu1 %4112 }
 0xdfc   : > { %6937 = vpow2.f32 %v4126_v22  ;;  %v4122_v60 = vsub.f32 %v4066_v41, %v4113_v25 }
 0xdfe   : > { %v4128_v24 = vmul.f32 1.442695, %v4122_v60 }
 0xdff   : > { %v4118_v63 = vpop.permute.xlu1 %4117 }
 0xe00   : > { %6939 = vpow2.f32 %v4128_v24  ;;  %v4123_v9 = vsub.f32 %v8543_v42, %v4118_v63  ;;  %v4163_v24 = vld [vmem:[#allocation8 + $0x18] sm:$0xff] }
 0xe02   : > { %v4130_v28 = vmul.f32 1.442695, %v4123_v9 }
 0xe04   : > { %6941 = vpow2.f32 %v4130_v28 }
 0xe05   : > { %v6936_v15 = vpop.eup %6935  ;;  %6943 = vpow2.f32 %v4096_v16  ;;  %v4167_v51 = vpop.permute.xlu1 %4166 }
 0xe06   : > { %v4140_v29 = vsel %vm2817_vm5, %v6936_v15, 0.0  ;;  %v4188_v34 = vpack.c.bf16 %v6936_v15, %v6936_v15  ;;  %6945 = vpow2.f32 %v4094_v40  ;;  %v4184_v33 = vmul.f32 %v4167_v51, %v4160_v50 }
 0xe07   : > { %4141 = vadd.xlane.f32.xlu1 %v4140_v29 }
 0xe08   : > { %6516 = vmatmul.mubr.msk.bf16.vlgmr.msra.gmra.mxu0 %vm2817_vm5, %v4188_v34 }
 0xe09   : > { %v6938_v35 = vpop.eup %6937  ;;  %6526 = vmatpush3.bf16.msra.mxu0 %v4289_v17  ;;  %6527 = vmatprep.mubr.msk.bf16.mxu0 %vm7534_vm12, %v7533_v23 }
 0xe0a   : > { %v4143_v31 = vsel %vm2817_vm5, %v6938_v35, 0.0  ;;  %v4189_v36 = vpack.c.bf16 %v6938_v35, %v6938_v35 }
 0xe0b   : > { %4144 = vadd.xlane.f32.xlu0 %v4143_v31 }
 0xe0c   : > { %6522 = vmatmul.mubr.msk.bf16.vlgmr.msra.gmra.mxu1 %vm2817_vm5, %v4189_v36 }
 0xe0d   : > { %v6940_v26 = vpop.eup %6939  ;;  %6532 = vmatpush3.bf16.msra.mxu1 %v4335_v38  ;;  %6533 = vmatprep.mubr.msk.bf16.mxu1 %vm7534_vm12, %v7533_v23  ;;  %v4098_v23 = vmul.f32 1.442695, %v4091_v52 }
 0xe0e   : > { %v4190_v39 = vpack.c.bf16 %v6940_v26, %v6940_v26  ;;  %v4146_v46 = vsel %vm2817_vm5, %v6940_v26, 0.0 }
 0xe0f   : > { %6947 = vpow2.f32 %v4098_v23 }
 0xe10   : > { %6528 = vmatmul.mubr.msk.bf16.vlgmr.msra.gmra.mxu0 %vm2817_vm5, %v4190_v39 }
 0xe11   : > { %v6942_v41 = vpop.eup %6941 }
 0xe12   : > { %v4191_v42 = vpack.c.bf16 %v6942_v41, %v6942_v41  ;;  %v6944_v44 = vpop.eup %6943  ;;  %v4149_v47 = vsel %vm2817_vm5, %v6942_v41, 0.0 }
 0xe13   : > { %v6946_v45 = vpop.eup %6945  ;;  %v4138_v58 = vmul.f32 %v6944_v44, %v4134_v57 }
 0xe14   : > { %6534 = vmatmul.mubr.msk.bf16.vlgmr.msra.gmra.mxu1 %vm2817_vm5, %v4191_v42  ;;  %v4137_v27 = vmul.f32 %v6946_v45, %v4133_v55 }
 0xe18   : > { %4176 = vperm.xlu1 %6932, %v6944_v44  }
 0xe1c   : > { %v6948_v48 = vpop.eup %6947 }
 0xe1d   : > { %v4139_v3 = vmul.f32 %v6948_v48, %v4135_v0 }
 0xe21   : > { %4171 = vperm.xlu0 %6931, %v6946_v45  }
 0xe3c   : > { %4147 = vadd.xlane.f32.xlu1 %v4146_v46 }
 0xe40   : > { %4150 = vadd.xlane.f32.xlu1 %v4149_v47 }
 0xe51   : > { %4181 = vperm.xlu1 %6932, %v6948_v48  }
 0xe90   : > { %v4142_v11 = vpop.xlane.xlu1 %4141 }
 0xe91   : > { %v4152_v59 = vadd.f32 %v4142_v11, %v4136_v21 }
 0xe93   : > { %4156 = vst.msk [vmem:[#allocation7] sm:$0xff] %vm2808_vm4, %v4152_v59 }
 0xe94   : > { %v4145_v30 = vpop.xlane.xlu0 %4144  ;;  %v4177_v49 = vpop.permute.xlu1 %4176 }
 0xe95   : > { %v4153_v56 = vadd.f32 %v4145_v30, %v4137_v27  ;;  %v4186_v25 = vmul.f32 %v4177_v49, %v4162_v12 }
 0xe97   : > { %4157 = vst.msk [vmem:[#allocation7 + $0x8] sm:$0xff] %vm2808_vm4, %v4153_v56 }
 0xe9c   : > { %v4172_v32 = vpop.permute.xlu0 %4171 }
 0xe9d   : > { %v4185_v10 = vmul.f32 %v4172_v32, %v4161_v53 }
 0xec5   : > { %v4148_v18 = vpop.xlane.xlu1 %4147 }
 0xec6   : > { %v4154_v1 = vadd.f32 %v4148_v18, %v4138_v58 }
 0xec8   : > { %4158 = vst.msk [vmem:[#allocation7 + $0x10] sm:$0xff] %vm2808_vm4, %v4154_v1  ;;  %v4233_v2 = vpop.f32.mrf.mxu0 }
 0xec9   : > { %v4377_v52 = vadd.f32 %v4233_v2, %v4184_v33  ;;  %v4151_v4 = vpop.xlane.xlu1 %4150 }
 0xeca   : > { %v4155_v6 = vadd.f32 %v4151_v4, %v4139_v3  ;;  %v6517_v8 = vpop.f32.mrf.mxu0 }
 0xecb   : > { %4381 = vst.msk [vmem:[#allocation8] sm:$0xff] %vm2817_vm5, %v4377_v52 }
 0xecc   : > { %4159 = vst.msk [vmem:[#allocation7 + $0x18] sm:$0xff] %vm2808_vm4, %v4155_v6  ;;  %v4236_v7 = vpop.f32.mrf.mxu0  ;;  %v4279_v13 = vpop.f32.mrf.mxu1 }
 0xecd   : > { %v4378_v19 = vadd.f32 %v4279_v13, %v4185_v10  ;;  %v4182_v60 = vpop.permute.xlu1 %4181 }
 0xece   : > { %v6518_v20 = vpop.f32.mrf.mxu0  ;;  %v6523_v22 = vpop.f32.mrf.mxu1  ;;  %v4187_v16 = vmul.f32 %v4182_v60, %v4163_v24 }
 0xecf   : > { %4382 = vst.msk [vmem:[#allocation8 + $0x8] sm:$0xff] %vm2817_vm5, %v4378_v19 }
 0xed0   : > { %v4282_v63 = vpop.f32.mrf.mxu1  ;;  %v4325_v9 = vpop.f32.mrf.mxu0 }
 0xed1   : > { %v4379_v28 = vadd.f32 %v4325_v9, %v4186_v25 }
 0xed2   : > { %v6524_v14 = vpop.f32.mrf.mxu1  ;;  %v6529_v15 = vpop.f32.mrf.mxu0 }
 0xed3   : > { %4383 = vst.msk [vmem:[#allocation8 + $0x10] sm:$0xff] %vm2817_vm5, %v4379_v28 }
 0xed4   : > { %v4328_v29 = vpop.f32.mrf.mxu0  ;;  %v4371_v34 = vpop.f32.mrf.mxu1 }
 0xed5   : > { %v4380_v17 = vadd.f32 %v4371_v34, %v4187_v16 }
 0xed6   : > { %v6530_v62 = vpop.f32.mrf.mxu0  ;;  %v6535_v35 = vpop.f32.mrf.mxu1 }
 0xed7   : > { %4384 = vst.msk [vmem:[#allocation8 + $0x18] sm:$0xff] %vm2817_vm5, %v4380_v17 }
 0xed8   : > { %v4374_v31 = vpop.f32.mrf.mxu1 }
 0xeda   : > { %v6536_v36 = vpop.f32.mrf.mxu1 }
 0xedb PF: > { %v4395_v38 = vld [vmem:[#allocation7 + $0x10] sm:$0xff]  ;;  %v4393_v26 = vld [vmem:[#allocation7] sm:$0xff]  ;;  %v4396_v39 = vld [vmem:[#allocation7 + $0x18] sm:$0xff]  ;;  %6537 = vmatprep.subr.bf16.mxu1 %v7519_v5  ;;  %6541 = vmatprep.mubr.msk.bf16.mxu1 %vm7521_vm6, %v7519_v5  ;;  %v7536_v40 = vmov 0   ;;  %s8939_s0 = sld [smem:[#allocation58_spill]]  ;;  %s7537_s25 = smov 16  }
 0xedc   : > { %6950 = vset.pattern.permute.xlu1 %v7536_v40  ;;  %6949 = vset.pattern.permute.xlu0 %v7536_v40  ;;  %6975 = vrcp.f32 %v4395_v38  ;;  %v4394_v41 = vld [vmem:[#allocation7 + $0x8] sm:$0xff]  ;;  %v4391_v23 = vld [vmem:[#allocation8 + $0x10] sm:$0xff]  ;;  %v4389_v47 = vld [vmem:[#allocation8] sm:$0xff]  ;;  %s7538_s2 = smov 8   ;;  %s7539_s23 = smov 24   ;;  %vm4574_vm14 = vcmask 130048  }
 0xedd   : > { %6977 = vrcp.f32 %v4393_v26  ;;  %6565 = vmatprep.subr.bf16.mxu0 %v7519_v5  ;;  %6567 = vmatprep.mubr.msk.bf16.mxu0 %vm7521_vm6, %v7519_v5  ;;  %v4390_v55 = vld [vmem:[#allocation8 + $0x8] sm:$0xff]  ;;  %vm4576_vm15 = vcmask 195584   ;;  %s6222_s5 = sshll.u32 %s7481_s6, 1  ;;  %vm5791_vm0 = vcmask 257024   ;;  %s8944_s30 = sld [smem:[#allocation63_spill]] }
 0xede   : > { %6979 = vrcp.f32 %v4396_v39  ;;  %v4392_v11 = vld [vmem:[#allocation8 + $0x18] sm:$0xff]  ;;  %s5805_s27 = sadd.s32 %s7477_s28, %s6222_s5  ;;  %s5794_s28 = scalar_lea.sflag [#allocation11], %s939_s24 }
 0xedf   : > { %6981 = vrcp.f32 %v4394_v41 }
 0xee1   : > { %s8940_s4 = smov %s8939_s0  ;;  %v6951_v53 = vld [vmem:[%s8939_s0 + $0x8] sm:$0xff]   ;;  %s8941_s0 = sld [smem:[#allocation61_spill]] }
 0xee2   : > { %6538 = vmatpush3.bf16.msra.mxu1 %v6951_v53  ;;  %v6952_v12 = vld [vmem:[%s8940_s4] sm:$0xff]  }
 0xee3   : > { %6539 = vmatprep.subr.bf16.mxu1 %v7519_v5 }
 0xee6   : > { %6540 = vmatpush3.bf16.msra.mxu1 %v6952_v12  ;;  %v6956_v12 = vld [vmem:[#allocation4 + $0x10] sm:$0xff]  }
 0xee7   : > { %6545 = vmatprep.subr.bf16.mxu1 %v7519_v5 }
 0xee9   : > { %v6976_v42 = vpop.eup %6975 }
 0xeea   : > { %v6978_v44 = vpop.eup %6977  ;;  %4413 = vperm.xlu1 %6950, %v6976_v42  }
 0xeeb   : > { %v6980_v45 = vpop.eup %6979  ;;  %4403 = vperm.xlu0 %6949, %v6978_v44   ;;  %v6172_v44 = vld [vmem:[#allocation15] ss:$0 sm:$0xff] }
 0xeec   : > { %v6982_v46 = vpop.eup %6981 }
 0xeee   : > { %4418 = vperm.xlu1 %6950, %v6980_v45  }
 0xeef   : > { %4408 = vperm.xlu0 %6949, %v6982_v46  }
 0xf65   : > { %v4414_v48 = vpop.permute.xlu1 %4413 }
 0xf66   : > { %v4404_v51 = vpop.permute.xlu0 %4403  ;;  %v4423_v54 = vmul.f32 %v4414_v48, %v4391_v23 }
 0xf67   : > { %v4421_v21 = vmul.f32 %v4404_v51, %v4389_v47 }
 0xf69   : > { %v4419_v59 = vpop.permute.xlu1 %4418  ;;  %v4425_v56 = vcombine.low %v4421_v21, %v4423_v54  ;;  %v4426_v49 = vcombine.high %v4421_v21, %v4423_v54 }
 0xf6a   : > { %v4424_v27 = vmul.f32 %v4419_v59, %v4392_v11  ;;  %v4409_v30 = vpop.permute.xlu0 %4408 }
 0xf6b   : > { %v4422_v57 = vmul.f32 %v4409_v30, %v4390_v55  ;;  %v4433_v18 = vrot.slane %v4425_v56, %v8256_v37  ;;  %v4440_v0 = vrot.slane %v4426_v49, %v8256_v37  ;;  %v6953_v30 = vld [vmem:[%s8866_s10 + $0x8] sm:$0xff]  }
 0xf6d   : > { %v4441_v50 = vcombine.low %v4422_v57, %v4424_v27  ;;  %v4442_v58 = vcombine.high %v4422_v57, %v4424_v27 }
 0xf6f   : > { %v4449_v1 = vrot.slane %v4441_v50, %v8256_v37  ;;  %v4456_v33 = vrot.slane %v4442_v58, %v8256_v37  ;;  %v6176_v58 = vld [vmem:[#allocation17] ss:$0 sm:$0xff] }
 0xf71   : > { %v4457_v32 = vcombine.low %v4433_v18, %v4449_v1  ;;  %v4458_v2 = vcombine.high %v4433_v18, %v4449_v1  ;;  %v4473_v3 = vcombine.low %v4440_v0, %v4456_v33  ;;  %v4474_v52 = vcombine.high %v4440_v0, %v4456_v33  ;;  %v6177_v0 = vld [vmem:[#allocation18] ss:$0 sm:$0xff] }
 0xf73   : > { %v4465_v4 = vrot.slane %v4457_v32, %v8259_v43  ;;  %v4472_v6 = vrot.slane %v4458_v2, %v8259_v43  ;;  %v4481_v8 = vrot.slane %v4473_v3, %v8259_v43  ;;  %v4488_v10 = vrot.slane %v4474_v52, %v8259_v43  ;;  %v6178_v32 = vld [vmem:[#allocation20] ss:$0 sm:$0xff] }
 0xf75   : > { %v4493_v7 = vcombine.low %v4465_v4, %v4472_v6  ;;  %v6170_v13 = vcombine.high %v4465_v4, %v4472_v6  ;;  %v4509_v19 = vcombine.low %v4481_v8, %v4488_v10  ;;  %v6171_v20 = vcombine.high %v4481_v8, %v4488_v10  ;;  %v6955_v10 = vld [vmem:[#allocation4] sm:$0xff]  }
 0xf77   : > { %v4500_v22 = vrot.slane %v4493_v7, %v8256_v37  ;;  %v4508_v25 = vrot.slane %v6170_v13, %v8256_v37  ;;  %v4516_v60 = vrot.slane %v4509_v19, %v8256_v37  ;;  %v4524_v24 = vrot.slane %v6171_v20, %v8256_v37 }
 0xf78   : > { %v4910_v7 = vsel %vm2817_vm5, %v6955_v10, 0  ;;  %v5012_v13 = vsel %vm2817_vm5, %v6956_v12, 0 }
 0xf79   : > { %v4526_v63 = vcombine.high %v4500_v22, %v4508_v25  ;;  %v4542_v9 = vcombine.high %v4516_v60, %v4524_v24  ;;  %v4525_v28 = vcombine.low %v4500_v22, %v4508_v25  ;;  %v4541_v14 = vcombine.low %v4516_v60, %v4524_v24  ;;  %6566 = vmatpush3.bf16.xpose.msra.mxu0 %v5012_v13 }
 0xf7a   : > { %6577 = vmatprep.subr.bf16.mxu0 %v7519_v5 }
 0xf7b   : > { %v4540_v15 = vrot.slane %v4526_v63, %v8259_v43  ;;  %v4556_v16 = vrot.slane %v4542_v9, %v8259_v43  ;;  %v4533_v29 = vrot.slane %v4525_v28, %v8259_v43  ;;  %v4549_v34 = vrot.slane %v4541_v14, %v8259_v43 }
 0xf7d   : > { %v4559_v17 = vcombine.low %v4540_v15, %v4556_v16  ;;  %v4558_v62 = vcombine.high %v4533_v29, %v4549_v34  ;;  %v4557_v35 = vcombine.low %v4533_v29, %v4549_v34  ;;  %v4560_v31 = vcombine.high %v4540_v15, %v4556_v16 }
 0xf7f   : > { %4566 = vrot.lane.b32.xlu1 %v4559_v17, %s7537_s25  ;;  %4562 = vrot.lane.b32.xlu0 %v4558_v62, %s7538_s2 }
 0xf83   : > { %4570 = vrot.lane.b32.xlu0 %v4560_v31, %s7539_s23 }
 0xff1   : > { %v4563_v36 = vpop.permute.xlu0 %4562  ;;  %v4567_v38 = vpop.permute.xlu1 %4566 }
 0xff2   : > { %v4573_v26 = vsel %vm2817_vm5, %v4557_v35, %v4563_v36 }
 0xff3   : > { %v4575_v39 = vsel %vm4574_vm14, %v4573_v26, %v4567_v38 }
 0xff5   : > { %v4571_v40 = vpop.permute.xlu0 %4570 }
 0xff6   : > { %v4577_v41 = vsel %vm4576_vm15, %v4575_v39, %v4571_v40 }
 0xff7   : > { %v4578_v42 = vpack.c.bf16 %v4577_v41, %v4577_v41 }
 0xff9   : > { %6542 = vmatmul.mubr.msk.bf16.vlgmr.msra.gmra.mxu1 %vm2561_vm3, %v4578_v42 }
 0xffa   : > { %6549 = vmatprep.mubr.msk.bf16.mxu1 %vm7521_vm6, %v7519_v5  ;;  %6546 = vmatpush3.bf16.msra.mxu1 %v6953_v30 }
 0xffb   : > { %6547 = vmatprep.subr.bf16.mxu1 %v7519_v5 }
0x10b9   : > { %v4639_v45 = vpop.f32.mrf.mxu1 }
0x10ba   : > { %v4640_v46 = vadd.f32 %v6172_v44, %v4639_v45 }
0x10bb   : > { %v6543_v23 = vpop.f32.mrf.mxu1 }
0x10bc   : > { %v8642_v47 = vadd.f32 %v4640_v46, %v8212_v61  ;;  %v6954_v61 = vld [vmem:[%s8866_s10] sm:$0xff]  }
0x10bd   : > { %v4642_v48 = vpop.f32.mrf.mxu1  ;;  %6548 = vmatpush3.bf16.msra.mxu1 %v6954_v61 }
0x10be   : > { %v4648_v51 = vsel %vm2561_vm3, %v8642_v47, 0.0  ;;  %6553 = vmatprep.subr.bf16.mxu1 %v7519_v5 }
0x10bf   : > { %4649 = vadd.xlane.f32.xlu1 %v4648_v51  ;;  %v6544_v54 = vpop.f32.mrf.mxu1 }
0x1148   : > { %v4650_v21 = vpop.xlane.xlu1 %4649 }
0x1149   : > { %v4651_v11 = vmul.f32 0.03125, %v4650_v21 }
0x114b   : > { %v4652_v55 = vsub.f32 %v8642_v47, %v4651_v11  ;;  %v6957_v11 = vld [vmem:[#allocation4 + $0x8] sm:$0xff]  }
0x114d   : > { %v4653_v59 = vmul.f32 %v4652_v55, %v4652_v55 }
0x114f   : > { %v4654_v27 = vsel %vm2561_vm3, %v4653_v59, 0.0 }
0x1150   : > { %4655 = vadd.xlane.f32.xlu0 %v4654_v27 }
0x11d9   : > { %v4656_v56 = vpop.xlane.xlu0 %4655 }
0x11da   : > { %v4657_v49 = vmul.f32 0.03125, %v4656_v56  ;;  %v4961_v56 = vsel %vm2817_vm5, %v6957_v11, 0 }
0x11dc   : > { %v4658_v57 = vadd.f32 1e-05, %v4657_v49 }
0x11de   : > { %6983 = vrsqrt.f32 %v4658_v57 }
0x11eb   : > { %v6984_v50 = vpop.eup %6983 }
0x11ec   : > { %v4660_v18 = vmul.f32 %v6984_v50, %v4652_v55  ;;  %v6958_v50 = vld [vmem:[#allocation4 + $0x18] sm:$0xff]  }
0x11ee   : > { %v4667_v1 = vmul.f32 %v6176_v58, %v4660_v18  ;;  %v5063_v18 = vsel %vm2817_vm5, %v6958_v50, 0 }
0x11f0   : > { %v4674_v33 = vadd.f32 %v6177_v0, %v4667_v1 }
0x11f2   : > { %v4675_v53 = vpack.c.bf16 %v4674_v33, %v4674_v33 }
0x11f4   : > { %6550 = vmatmul.mubr.msk.bf16.vlgmr.msra.gmra.mxu1 %vm2561_vm3, %v4675_v53 }
0x11f5   : > { %6555 = vmatprep.mubr.msk.bf16.mxu1 %vm7521_vm6, %v7519_v5  ;;  %6554 = vmatpush3.bf16.xpose.msra.mxu1 %v4910_v7 }
0x11f6   : > { %6559 = vmatprep.subr.bf16.mxu1 %v7519_v5 }
0x12b4   : > { %v4736_v2 = vpop.f32.mrf.mxu1 }
0x12b5   : > { %v4737_v3 = vadd.f32 %v6178_v32, %v4736_v2 }
0x12b6   : > { %v6551_v52 = vpop.f32.mrf.mxu1 }
0x12b7   : > { %v4742_v4 = vmul.f32 0.35355338, %v4737_v3 }
0x12b8   : > { %v4739_v6 = vpop.f32.mrf.mxu1 }
0x12b9   : > { %4747 = vrot.lane.b32.xlu1 %v4742_v4, %s7524_s29  ;;  %4744 = vrot.lane.b32.xlu0 %v4742_v4, %s7523_s8  ;;  %s8942_s29 = sld [smem:[#allocation62_spill]] }
0x12ba   : > { %v6552_v8 = vpop.f32.mrf.mxu1 }
0x12bd   : > { %4750 = vrot.lane.b32.xlu1 %v4742_v4, %s7522_s21  ;;  %s7540_s21 = smov [#allocation32]  }
0x12be   : > { %s7373_s8 = sshll.u32 %s7540_s21, 4  ;;  %s7374_s8 = int_to_ptr.vmem [resolvable:$false] %s7373_s8 }
0x132b   : > { %v4748_v19 = vpop.permute.xlu1 %4747  ;;  %v4745_v25 = vpop.permute.xlu0 %4744 }
0x132c   : > { %v4753_v20 = vcombine.low %v4742_v4, %v4748_v19  ;;  %v4754_v22 = vcombine.high %v4742_v4, %v4748_v19 }
0x132e   : > { %v4761_v9 = vrot.slane %v4753_v20, %v8256_v37  ;;  %v4768_v28 = vrot.slane %v4754_v22, %v8256_v37 }
0x132f   : > { %v4751_v60 = vpop.permute.xlu1 %4750 }
0x1330   : > { %v4769_v24 = vcombine.low %v4745_v25, %v4751_v60  ;;  %v4770_v63 = vcombine.high %v4745_v25, %v4751_v60 }
0x1332   : > { %v4777_v14 = vrot.slane %v4769_v24, %v8256_v37  ;;  %v4784_v15 = vrot.slane %v4770_v63, %v8256_v37 }
0x1334   : > { %v4785_v16 = vcombine.low %v4761_v9, %v4777_v14  ;;  %v4786_v29 = vcombine.high %v4761_v9, %v4777_v14  ;;  %v4801_v34 = vcombine.low %v4768_v28, %v4784_v15  ;;  %v4802_v17 = vcombine.high %v4768_v28, %v4784_v15 }
0x1336   : > { %v4793_v62 = vrot.slane %v4785_v16, %v8259_v43  ;;  %v4800_v35 = vrot.slane %v4786_v29, %v8259_v43  ;;  %v4809_v31 = vrot.slane %v4801_v34, %v8259_v43  ;;  %v4816_v36 = vrot.slane %v4802_v17, %v8259_v43 }
0x1338   : > { %v4821_v38 = vcombine.low %v4793_v62, %v4800_v35  ;;  %v6182_v26 = vcombine.high %v4793_v62, %v4800_v35  ;;  %v4837_v39 = vcombine.low %v4809_v31, %v4816_v36  ;;  %v6183_v40 = vcombine.high %v4809_v31, %v4816_v36 }
0x133a   : > { %v4828_v41 = vrot.slane %v4821_v38, %v8256_v37  ;;  %v4836_v42 = vrot.slane %v6182_v26, %v8256_v37  ;;  %v4844_v44 = vrot.slane %v4837_v39, %v8256_v37  ;;  %v4852_v45 = vrot.slane %v6183_v40, %v8256_v37 }
0x133c   : > { %v4853_v46 = vcombine.low %v4828_v41, %v4836_v42  ;;  %v4869_v23 = vcombine.low %v4844_v44, %v4852_v45  ;;  %v4854_v48 = vcombine.high %v4828_v41, %v4836_v42  ;;  %v4870_v51 = vcombine.high %v4844_v44, %v4852_v45 }
0x133e   : > { %v4861_v54 = vrot.slane %v4853_v46, %v8259_v43  ;;  %v4877_v21 = vrot.slane %v4869_v23, %v8259_v43  ;;  %v4868_v55 = vrot.slane %v4854_v48, %v8259_v43  ;;  %v4884_v59 = vrot.slane %v4870_v51, %v8259_v43  ;;  %v6959_v46 = vld [vmem:[#allocation5] sm:$0xff]   ;;  %v6960_v23 = vld [vmem:[#allocation5 + $0x8] sm:$0xff]  }
0x1340   : > { %v4885_v27 = vcombine.low %v4861_v54, %v4877_v21  ;;  %v4887_v30 = vcombine.low %v4868_v55, %v4884_v59  ;;  %v4886_v57 = vcombine.high %v4861_v54, %v4877_v21  ;;  %v4888_v0 = vcombine.high %v4868_v55, %v4884_v59  ;;  %v6961_v59 = vld [vmem:[#allocation5 + $0x10] sm:$0xff]  }
0x1342   : > { %v4889_v61 = vpack.c.bf16 %v4885_v27, %v4885_v27  ;;  %v4891_v49 = vpack.c.bf16 %v4887_v30, %v4887_v30  ;;  %v4890_v58 = vpack.c.bf16 %v4886_v57, %v4886_v57  ;;  %v4892_v1 = vpack.c.bf16 %v4888_v0, %v4888_v0  ;;  %v6962_v57 = vld [vmem:[#allocation5 + $0x18] sm:$0xff]  }
0x1344   : > { %6556 = vmatmul.mubr.msk.bf16.vlgmr.msra.gmra.mxu1 %vm2817_vm5, %v4889_v61  ;;  %6568 = vmatmul.mubr.msk.bf16.vlgmr.msra.gmra.mxu0 %vm2817_vm5, %v4891_v49 }
0x1345   : > { %6560 = vmatpush3.bf16.xpose.msra.mxu1 %v4961_v56  ;;  %6561 = vmatprep.mubr.msk.bf16.mxu1 %vm7521_vm6, %v7519_v5 }
0x1346   : > { %6571 = vmatprep.subr.bf16.mxu1 %v7519_v5  ;;  %6579 = vmatprep.mubr.msk.bf16.mxu0 %vm7521_vm6, %v7519_v5 }
0x1347   : > { %6578 = vmatpush3.bf16.msra.mxu0 %v6959_v46 }
0x1348   : > { %6589 = vmatprep.subr.bf16.mxu0 %v7519_v5 }
0x134c   : > { %6562 = vmatmul.mubr.msk.bf16.vlgmr.msra.gmra.mxu1 %vm2817_vm5, %v4890_v58 }
0x134d   : > { %6572 = vmatpush3.bf16.xpose.msra.mxu1 %v5063_v18  ;;  %6573 = vmatprep.mubr.msk.bf16.mxu1 %vm7521_vm6, %v7519_v5 }
0x134e   : > { %6583 = vmatprep.subr.bf16.mxu1 %v7519_v5 }
0x1354   : > { %6574 = vmatmul.mubr.msk.bf16.vlgmr.msra.gmra.mxu1 %vm2817_vm5, %v4892_v1 }
0x1355   : > { %6585 = vmatprep.mubr.msk.bf16.mxu1 %vm7521_vm6, %v7519_v5  ;;  %6584 = vmatpush3.bf16.msra.mxu1 %v6960_v23 }
0x1356   : > { %6595 = vmatprep.subr.bf16.mxu1 %v7519_v5 }
0x1404   : > { %v4946_v33 = vpop.f32.mrf.mxu1  ;;  %v5048_v53 = vpop.f32.mrf.mxu0 }
0x1405   : > { %v5105_v32 = vsel %vm4574_vm14, %v4946_v33, -inf  ;;  %v5111_v6 = vsel %vm4574_vm14, %v5048_v53, -inf }
0x1406   : > { %v6569_v2 = vpop.f32.mrf.mxu0  ;;  %5106 = vmax.xlane.f32.xlu0 %v5105_v32  ;;  %v6557_v3 = vpop.f32.mrf.mxu1 }
0x1408   : > { %v4949_v52 = vpop.f32.mrf.mxu1  ;;  %v5051_v4 = vpop.f32.mrf.mxu0 }
0x140a   : > { %v6570_v8 = vpop.f32.mrf.mxu0  ;;  %5112 = vmax.xlane.f32.xlu0 %v5111_v6  ;;  %v6558_v10 = vpop.f32.mrf.mxu1 }
0x140c   : > { %v4997_v12 = vpop.f32.mrf.mxu1 }
0x140d   : > { %v5108_v7 = vsel %vm4574_vm14, %v4997_v12, -inf }
0x140e   : > { %5109 = vmax.xlane.f32.xlu1 %v5108_v7  ;;  %v6563_v13 = vpop.f32.mrf.mxu1 }
0x1410   : > { %v5000_v19 = vpop.f32.mrf.mxu1 }
0x1412   : > { %v6564_v20 = vpop.f32.mrf.mxu1 }
0x1414   : > { %v5099_v22 = vpop.f32.mrf.mxu1 }
0x1415   : > { %v5114_v25 = vsel %vm4574_vm14, %v5099_v22, -inf }
0x1416   : > { %5115 = vmax.xlane.f32.xlu0 %v5114_v25  ;;  %v6575_v60 = vpop.f32.mrf.mxu1 }
0x1418   : > { %v5102_v24 = vpop.f32.mrf.mxu1 }
0x141a   : > { %v6576_v63 = vpop.f32.mrf.mxu1 }
0x148f   : > { %v5107_v9 = vpop.xlane.xlu0 %5106 }
0x1490   : > { %v5117_v28 = vsub.f32 %v4946_v33, %v5107_v9  ;;  %v6963_v33 = vld [vmem:[#allocation26 + $0x8] sm:$0xff]  }
0x1492   : > { %v5121_v14 = vmul.f32 1.442695, %v5117_v28 }
0x1493   : > { %v5113_v15 = vpop.xlane.xlu0 %5112 }
0x1494   : > { %6985 = vpow2.f32 %v5121_v14  ;;  %v5119_v16 = vsub.f32 %v5048_v53, %v5113_v15 }
0x1496   : > { %v5125_v29 = vmul.f32 1.442695, %v5119_v16 }
0x1497   : > { %v5110_v34 = vpop.xlane.xlu1 %5109 }
0x1498   : > { %6987 = vpow2.f32 %v5125_v29  ;;  %v5118_v17 = vsub.f32 %v4997_v12, %v5110_v34 }
0x149a   : > { %v5123_v62 = vmul.f32 1.442695, %v5118_v17 }
0x149c   : > { %6989 = vpow2.f32 %v5123_v62 }
0x149f   : > { %v5116_v35 = vpop.xlane.xlu0 %5115 }
0x14a0   : > { %v5120_v31 = vsub.f32 %v5099_v22, %v5116_v35 }
0x14a1   : > { %v6986_v36 = vpop.eup %6985 }
0x14a2   : > { %v5127_v38 = vmul.f32 1.442695, %v5120_v31  ;;  %v5129_v26 = vsel %vm4574_vm14, %v6986_v36, 0.0 }
0x14a3   : > { %5130 = vadd.xlane.f32.xlu1 %v5129_v26  ;;  %v6964_v26 = vld [vmem:[#allocation26] sm:$0xff]  }
0x14a4   : > { %6991 = vpow2.f32 %v5127_v38 }
0x14a5   : > { %v6988_v39 = vpop.eup %6987 }
0x14a6   : > { %v5135_v40 = vsel %vm4574_vm14, %v6988_v39, 0.0 }
0x14a7   : > { %5136 = vadd.xlane.f32.xlu1 %v5135_v40 }
0x14a9   : > { %v6990_v41 = vpop.eup %6989 }
0x14aa   : > { %v5132_v42 = vsel %vm4574_vm14, %v6990_v41, 0.0 }
0x14ab   : > { %5133 = vadd.xlane.f32.xlu0 %v5132_v42 }
0x14b1   : > { %v6992_v44 = vpop.eup %6991 }
0x14b2   : > { %v5138_v45 = vsel %vm4574_vm14, %v6992_v44, 0.0 }
0x14b3   : > { %5139 = vadd.xlane.f32.xlu0 %v5138_v45 }
0x152c   : > { %v5131_v48 = vpop.xlane.xlu1 %5130 }
0x152d   : > { %6993 = vrcp.f32 %v5131_v48 }
0x1530   : > { %v5137_v51 = vpop.xlane.xlu1 %5136 }
0x1531   : > { %6995 = vrcp.f32 %v5137_v51 }
0x1534   : > { %v5134_v54 = vpop.xlane.xlu0 %5133 }
0x1535   : > { %6997 = vrcp.f32 %v5134_v54 }
0x153a   : > { %v6994_v21 = vpop.eup %6993 }
0x153b   : > { %v5145_v11 = vmul.f32 %v6994_v21, %v6986_v36 }
0x153c   : > { %v5140_v55 = vpop.xlane.xlu0 %5139 }
0x153d   : > { %6999 = vrcp.f32 %v5140_v55  ;;  %v5149_v27 = vpack.c.bf16 %v5145_v11, %v5145_v11 }
0x153e   : > { %v6996_v30 = vpop.eup %6995 }
0x153f   : > { %6580 = vmatmul.mubr.msk.bf16.vlgmr.msra.gmra.mxu0 %vm4574_vm14, %v5149_v27  ;;  %v5147_v61 = vmul.f32 %v6996_v30, %v6988_v39 }
0x1540   : > { %6590 = vmatpush3.bf16.msra.mxu0 %v6961_v59  ;;  %6591 = vmatprep.mubr.msk.bf16.mxu0 %vm7521_vm6, %v7519_v5 }
0x1541   : > { %6601 = vmatprep.subr.bf16.mxu0 %v7519_v5  ;;  %v5151_v58 = vpack.c.bf16 %v5147_v61, %v5147_v61 }
0x1542   : > { %v6998_v56 = vpop.eup %6997 }
0x1543   : > { %v5146_v49 = vmul.f32 %v6998_v56, %v6990_v41 }
0x1545   : > { %v5150_v50 = vpack.c.bf16 %v5146_v49, %v5146_v49 }
0x1547   : > { %6586 = vmatmul.mubr.msk.bf16.vlgmr.msra.gmra.mxu1 %vm4574_vm14, %v5150_v50  ;;  %6592 = vmatmul.mubr.msk.bf16.vlgmr.msra.gmra.mxu0 %vm4574_vm14, %v5151_v58 }
0x1548   : > { %6596 = vmatpush3.bf16.msra.mxu1 %v6962_v57  ;;  %6597 = vmatprep.mubr.msk.bf16.mxu1 %vm7521_vm6, %v7519_v5 }
0x1549   : > { %6605 = vmatprep.mubr.msk.bf16.mxu0 %vm7521_vm6, %v7519_v5  ;;  %6609 = vmatprep.subr.bf16.mxu1 %v7519_v5 }
0x154a   : > { %v7000_v18 = vpop.eup %6999  ;;  %6602 = vmatpush3.bf16.msra.mxu0 %v6963_v33 }
0x154b   : > { %v5148_v0 = vmul.f32 %v7000_v18, %v6992_v44  ;;  %6603 = vmatprep.subr.bf16.mxu0 %v7519_v5 }
0x154d   : > { %v5152_v1 = vpack.c.bf16 %v5148_v0, %v5148_v0 }
0x154e   : > { %6604 = vmatpush3.bf16.msra.mxu0 %v6964_v26 }
0x154f   : > { %6598 = vmatmul.mubr.msk.bf16.vlgmr.msra.gmra.mxu1 %vm4574_vm14, %v5152_v1  ;;  %6617 = vmatprep.subr.bf16.mxu0 %v7519_v5  ;;  %v6202_v1 = vld [vmem:[#allocation27] ss:$0 sm:$0xff] }
0x1550   : > { %6613 = vmatprep.mubr.msk.bf16.mxu1 %vm7521_vm6, %v7519_v5 }
0x15ff   : > { %v5204_v53 = vpop.f32.mrf.mxu0 }
0x1601   : > { %v6581_v32 = vpop.f32.mrf.mxu0 }
0x1603   : > { %v5207_v2 = vpop.f32.mrf.mxu0 }
0x1605   : > { %v6582_v3 = vpop.f32.mrf.mxu0 }
0x1607   : > { %v5253_v52 = vpop.f32.mrf.mxu1  ;;  %v5302_v4 = vpop.f32.mrf.mxu0 }
0x1608   : > { %v5357_v19 = vcombine.low %v5204_v53, %v5302_v4  ;;  %v5358_v20 = vcombine.high %v5204_v53, %v5302_v4 }
0x1609   : > { %v6587_v6 = vpop.f32.mrf.mxu1  ;;  %v6593_v8 = vpop.f32.mrf.mxu0 }
0x160a   : > { %v5365_v63 = vrot.slane %v5357_v19, %v8256_v37  ;;  %v5372_v9 = vrot.slane %v5358_v20, %v8256_v37  ;;  %v6966_v19 = vld [vmem:[#allocation30] sm:$0xff]  }
0x160b   : > { %v5256_v10 = vpop.f32.mrf.mxu1  ;;  %v5305_v12 = vpop.f32.mrf.mxu0  ;;  %v6968_v20 = vld [vmem:[%s8878_s22 + $0x30] sm:$0xff]  }
0x160d   : > { %v6588_v7 = vpop.f32.mrf.mxu1  ;;  %v6594_v13 = vpop.f32.mrf.mxu0 }
0x160e   : > { %v6965_v13 = vld [vmem:[#allocation30 + $0x8] sm:$0xff]  }
0x160f   : > { %v5351_v22 = vpop.f32.mrf.mxu1  ;;  %6610 = vmatpush3.bf16.msra.mxu1 %v6965_v13 }
0x1610   : > { %v5373_v25 = vcombine.low %v5253_v52, %v5351_v22  ;;  %v5374_v60 = vcombine.high %v5253_v52, %v5351_v22  ;;  %6611 = vmatprep.subr.bf16.mxu1 %v7519_v5 }
0x1611   : > { %v6599_v24 = vpop.f32.mrf.mxu1 }
0x1612   : > { %v5381_v28 = vrot.slane %v5373_v25, %v8256_v37  ;;  %v5388_v14 = vrot.slane %v5374_v60, %v8256_v37 }
0x1613   : > { %v5354_v15 = vpop.f32.mrf.mxu1  ;;  %6612 = vmatpush3.bf16.msra.mxu1 %v6966_v19 }
0x1614   : > { %v5389_v16 = vcombine.low %v5365_v63, %v5381_v28  ;;  %v5390_v29 = vcombine.high %v5365_v63, %v5381_v28  ;;  %v5405_v34 = vcombine.low %v5372_v9, %v5388_v14  ;;  %v5406_v17 = vcombine.high %v5372_v9, %v5388_v14  ;;  %v6206_v63 = vld [vmem:[#allocation29] ss:$0 sm:$0xff]  ;;  %v6207_v28 = vld [vmem:[%s8875_s19] ss:$0 sm:$0xff] }
0x1615   : > { %v6600_v62 = vpop.f32.mrf.mxu1 }
0x1616   : > { %v5397_v35 = vrot.slane %v5389_v16, %v8259_v43  ;;  %v5404_v31 = vrot.slane %v5390_v29, %v8259_v43  ;;  %v5413_v36 = vrot.slane %v5405_v34, %v8259_v43  ;;  %v5420_v38 = vrot.slane %v5406_v17, %v8259_v43  ;;  %v6969_v29 = vld [vmem:[%s8878_s22 + $0x28] sm:$0xff]   ;;  %v6970_v34 = vld [vmem:[%s8878_s22 + $0x20] sm:$0xff]   ;;  %v6971_v17 = vld [vmem:[%s8878_s22 + $0x18] sm:$0xff]  }
0x1617   : > { %v6972_v62 = vld [vmem:[%s8878_s22 + $0x10] sm:$0xff]  }
0x1618   : > { %v5425_v39 = vcombine.low %v5397_v35, %v5404_v31  ;;  %v6200_v40 = vcombine.high %v5397_v35, %v5404_v31  ;;  %v5441_v41 = vcombine.low %v5413_v36, %v5420_v38  ;;  %v6201_v42 = vcombine.high %v5413_v36, %v5420_v38  ;;  %v6973_v35 = vld [vmem:[%s8878_s22 + $0x8] sm:$0xff]   ;;  %v6974_v31 = vld [vmem:[%s8878_s22] sm:$0xff]  }
0x1619   : > { %v6208_v36 = vld [vmem:[%s8941_s0] ss:$0 sm:$0xff] }
0x161a   : > { %v5432_v44 = vrot.slane %v5425_v39, %v8256_v37  ;;  %v5440_v45 = vrot.slane %v6200_v40, %v8256_v37  ;;  %v5448_v46 = vrot.slane %v5441_v41, %v8256_v37  ;;  %v5456_v23 = vrot.slane %v6201_v42, %v8256_v37 }
0x161c   : > { %v5458_v48 = vcombine.high %v5432_v44, %v5440_v45  ;;  %v5474_v51 = vcombine.high %v5448_v46, %v5456_v23  ;;  %v5457_v54 = vcombine.low %v5432_v44, %v5440_v45  ;;  %v5473_v21 = vcombine.low %v5448_v46, %v5456_v23 }
0x161e   : > { %v5472_v11 = vrot.slane %v5458_v48, %v8259_v43  ;;  %v5488_v55 = vrot.slane %v5474_v51, %v8259_v43  ;;  %v5465_v59 = vrot.slane %v5457_v54, %v8259_v43  ;;  %v5481_v27 = vrot.slane %v5473_v21, %v8259_v43  ;;  %v6212_v48 = vld [vmem:[%s8942_s29] ss:$0 sm:$0xff]  ;;  %s7375_s29 = scalar_lea.vmem %s7374_s8, 128 }
0x1620   : > { %v5491_v30 = vcombine.low %v5472_v11, %v5488_v55  ;;  %v5490_v61 = vcombine.high %v5465_v59, %v5481_v27  ;;  %v5489_v56 = vcombine.low %v5465_v59, %v5481_v27  ;;  %v5492_v37 = vcombine.high %v5472_v11, %v5488_v55 }
0x1622   : > { %5498 = vrot.lane.b32.xlu0 %v5491_v30, %s7537_s25  ;;  %5494 = vrot.lane.b32.xlu1 %v5490_v61, %s7538_s2  ;;  %s8943_s25 = sld [smem:[#allocation48_spill]]  ;;  %s6223_s2 = sshll.u32 %s5805_s27, 6 }
0x1623   : > { %s8806_s0 = scalar_lea.hbm %s8944_s30, %s6223_s2 }
0x1626   : > { %5502 = vrot.lane.b32.xlu1 %v5492_v37, %s7539_s23  ;;  %s5809_s23 = sshll.u32 %s941_s1, 4  ;;  %s5810_s23 = int_to_ptr.vmem [resolvable:$true] %s5809_s23 }
0x1627   : > { %s7369_s5 = scalar_lea.vmem %s5810_s23, 64  ;;  %p7376_p3 = scmp.lt.s32.totalorder %s5810_s23, %s7374_s8 }
0x1628   : > { %p7370_p2 = scmp.ne.s32.totalorder %s5810_s23, %s7369_s5  ;;  %p8945_p6 = scmp.ne.s32.totalorder %s8943_s25, 0 }
0x1629   : > { %p7377_p7 = scmp.lt.s32.totalorder %s7375_s29, %s7369_s5 }
0x162a   : > { %p7371_p5 = pnand %p7370_p2, %p8945_p6 }
0x162b   : > { %p7378_p12 = por %p7377_p7, %p7376_p3 }
0x162c   : > { %p7372_p8 = pneg %p7371_p5 }
0x162e   : > { %p7379_p11 = pnand %p7378_p12, %p7372_p8 }
0x1694   : > { %v5495_v49 = vpop.permute.xlu1 %5494  ;;  %v5499_v57 = vpop.permute.xlu0 %5498 }
0x1695   : > { %v5505_v50 = vsel %vm2817_vm5, %v5489_v56, %v5495_v49 }
0x1696   : > { %v5506_v58 = vsel %vm4574_vm14, %v5505_v50, %v5499_v57 }
0x1698   : > { %v5503_v18 = vpop.permute.xlu1 %5502 }
0x1699   : > { %v5507_v0 = vsel %vm4576_vm15, %v5506_v58, %v5503_v18 }
0x169a   : > { %v5508_v43 = vpack.c.bf16 %v5507_v0, %v5507_v0 }
0x169c   : > { %6606 = vmatmul.mubr.msk.bf16.vlgmr.msra.gmra.mxu0 %vm2561_vm3, %v5508_v43 }
0x169d   : > { %6633 = vmatprep.mubr.msk.bf16.mxu0 %vm7521_vm6, %v7519_v5 }
0x175c   : > { %v5569_v33 = vpop.f32.mrf.mxu0 }
0x175d   : > { %v5570_v53 = vadd.f32 %v6202_v1, %v5569_v33 }
0x175e   : > { %v6607_v32 = vpop.f32.mrf.mxu0 }
0x175f   : > { %v8750_v2 = vadd.f32 %v5570_v53, %v8642_v47  ;;  %v6967_v47 = vld [vmem:[%s8878_s22 + $0x38] sm:$0xff]  }
0x1760   : > { %v5572_v3 = vpop.f32.mrf.mxu0  ;;  %6618 = vmatpush3.bf16.msra.mxu0 %v6967_v47 }
0x1761   : > { %v5578_v52 = vsel %vm2561_vm3, %v8750_v2, 0.0  ;;  %6619 = vmatprep.subr.bf16.mxu0 %v7519_v5 }
0x1762   : > { %5579 = vadd.xlane.f32.xlu1 %v5578_v52  ;;  %v6608_v4 = vpop.f32.mrf.mxu0 }
0x1764   : > { %6620 = vmatpush3.bf16.msra.mxu0 %v6968_v20 }
0x1765   : > { %6621 = vmatprep.subr.bf16.mxu0 %v7519_v5 }
0x1768   : > { %6622 = vmatpush3.bf16.msra.mxu0 %v6969_v29 }
0x1769   : > { %6623 = vmatprep.subr.bf16.mxu0 %v7519_v5 }
0x176c   : > { %6624 = vmatpush3.bf16.msra.mxu0 %v6970_v34 }
0x176d   : > { %6625 = vmatprep.subr.bf16.mxu0 %v7519_v5 }
0x1770   : > { %6626 = vmatpush3.bf16.msra.mxu0 %v6971_v17 }
0x1771   : > { %6627 = vmatprep.subr.bf16.mxu0 %v7519_v5 }
0x1774   : > { %6628 = vmatpush3.bf16.msra.mxu0 %v6972_v62 }
0x1775   : > { %6629 = vmatprep.subr.bf16.mxu0 %v7519_v5 }
0x1778   : > { %6630 = vmatpush3.bf16.msra.mxu0 %v6973_v35 }
0x1779   : > { %6631 = vmatprep.subr.bf16.mxu0 %v7519_v5 }
0x177c   : > { %6632 = vmatpush3.bf16.msra.mxu0 %v6974_v31 }
0x17eb   : > { %v5580_v6 = vpop.xlane.xlu1 %5579 }
0x17ec   : > { %v5581_v8 = vmul.f32 0.03125, %v5580_v6 }
0x17ee   : > { %v5582_v10 = vsub.f32 %v8750_v2, %v5581_v8 }
0x17f0   : > { %v5583_v12 = vmul.f32 %v5582_v10, %v5582_v10 }
0x17f2   : > { %v5584_v7 = vsel %vm2561_vm3, %v5583_v12, 0.0 }
0x17f3   : > { %5585 = vadd.xlane.f32.xlu0 %v5584_v7 }
0x187c   : > { %v5586_v22 = vpop.xlane.xlu0 %5585 }
0x187d   : > { %v5587_v25 = vmul.f32 0.03125, %v5586_v22 }
0x187f   : > { %v5588_v60 = vadd.f32 1e-05, %v5587_v25 }
0x1881   : > { %7001 = vrsqrt.f32 %v5588_v60 }
0x188e   : > { %v7002_v24 = vpop.eup %7001 }
0x188f   : > { %v5590_v9 = vmul.f32 %v7002_v24, %v5582_v10 }
0x1891   : > { %v5597_v14 = vmul.f32 %v6206_v63, %v5590_v9 }
0x1893   : > { %v5604_v15 = vadd.f32 %v6207_v28, %v5597_v14 }
0x1895   : > { %v5605_v16 = vpack.c.bf16 %v5604_v15, %v5604_v15 }
0x1897   : > { %6614 = vmatmul.mubr.msk.bf16.vlgmr.msra.gmra.mxu1 %vm2561_vm3, %v5605_v16 }
0x1957   : > { %v5666_v38 = vpop.f32.mrf.mxu1 }
0x1958   : > { %v5667_v26 = vadd.f32 %v6208_v36, %v5666_v38 }
0x1959   : > { %v6615_v39 = vpop.f32.mrf.mxu1 }
0x195a   : > { %v5673_v40 = vmul.f32 0.70710677, %v5667_v26  ;;  %v5672_v44 = vmul.f32 0.5, %v5667_v26 }
0x195b   : > { %v5669_v41 = vpop.f32.mrf.mxu1 }
0x195c   : > { %7003 = verf.f32 %v5673_v40 }
0x195d   : > { %v6616_v42 = vpop.f32.mrf.mxu1 }
0x1969   : > { %v7004_v5 = vpop.eup %7003 }
0x196a   : > { %v5675_v45 = vadd.f32 1.0, %v7004_v5 }
0x196c   : > { %v5676_v46 = vmul.f32 %v5675_v45, %v5672_v44 }
0x196e   : > { %v5677_v23 = vpack.c.bf16 %v5676_v46, %v5676_v46 }
0x1970   : > { %6634 = vmatmul.mubr.bf16.vlgmr.msra.gmra.mxu0 %v5677_v23 }
0x1a30   : > { %v5783_v51 = vpop.f32.mrf.mxu0 }
0x1a31   : > { %v5784_v54 = vadd.f32 %v6212_v48, %v5783_v51 }
0x1a32   : > { %v6635_v21 = vpop.f32.mrf.mxu0 }
0x1a33   : > { %v5789_v11 = vadd.f32 %v5784_v54, %v8750_v2 }
0x1a34   : > { %v5786_v55 = vpop.f32.mrf.mxu0 }
0x1a35   : > { %v5790_v59 = vpack.c.bf16 %v5789_v11, %v5789_v11 }
0x1a36   : > { %v6636_v27 = vpop.f32.mrf.mxu0 }
0x1a37   : > { %5792 = vst.msk [vmem:[%s941_s1] sm:$0xf] %vm5791_vm0, %v5790_v59 }
0x1a38   : > { %7382 = shalt.err (!%p7379_p11)
}
0x1a39   : > { %s7383_s3 = scalar_lea.hbm %s8806_s0, 64  ;;  %s7387_s27 = scalar_lea.hbm %s8944_s30, 256 }
0x1a3a   : > { %p7384_p9 = scmp.ne.s32.totalorder %s8806_s0, %s7383_s3  ;;  %p7388_p0 = scmp.lt.s32.totalorder %s8806_s0, %s8944_s30 }
0x1a3b   : > { %p7389_p13 = scmp.lt.s32.totalorder %s7387_s27, %s7383_s3 }
0x1a3c   : > { %p7385_p1 = pnand %p7384_p9, %p8945_p6 }
0x1a3d   : > { %p7390_p4 = por %p7389_p13, %p7388_p0 }
0x1a3e   : > { %p7386_p10 = pneg %p7385_p1 }
0x1a40   : > { %p7391_p2 = pnand %p7390_p4, %p7386_p10 }
0x1a42   : > { %7394 = shalt.err (!%p7391_p2)
}
0x1a43   : > { %6693 = dma.vmem_to_hbm [thread:$0]  (%p8945_p6), %s5810_s23, 64, %s8806_s0, %s5794_s28  }
0x1a44 PF: > { %s8946_s6 = sld [smem:[#allocation46_spill]] }
0x1a45   : > { %s8947_s5 = sld [smem:[#allocation42_spill]] }
0x1a46   : > { %s8948_s21 = sld [smem:[#allocation50_spill]] }
0x1a4a   : > { %p6770_p5 = scmp.ge.s32.totalorder %s8946_s6, 2 }
0x1a4b   : > { %s5821_s8 = sand.u32 1, %s8947_s5  }
0x1a4c   : > { %p8949_p8 = scmp.ne.s32.totalorder %s8948_s21, 0  ;;  %s5822_s29 = scalar_lea.sflag [#allocation11], %s5821_s8 }
0x1a4e   : > { %p6739_p3 = pnand %p6770_p5, %p8949_p8 }
0x1a50   : > { %p6740_p7 = pneg %p6739_p3 }
0x1a52   : > { %7460 = dma.done.wait (%p6740_p7), %s5822_s29, 64  }
0x1a53   : > { %7462 = vsyncadd (%p6740_p7), %s5822_s29, 4294967232  ;;  %s45_s0 = sadd.s32 1, %s8946_s6   ;;  %s8950_s3 = sld [smem:[#allocation43_spill]] }
0x1a54   : > { %p42_p12 = scmp.ge.s32.totalorder %s45_s0, 6   ;;  %s8951_s27 = sld [smem:[#allocation51_spill]] }
0x1a55   : > { %s8952_s28 = sld [smem:[#allocation44_spill]]  ;;  %s8956_s5 = smov %s7469_s26 }
0x1a56   : > { %s8953_s6 = sld [smem:[#allocation45_spill]]  ;;  %44 = sbr.rel (!%p42_p12) target bundleno = 26 (0x1a), region = 228 }
0x1a57   : > { %s8954_s2 = sld [smem:[#allocation47_spill]] }
0x1a58   : > { %s8955_s29 = sld [smem:[#allocation49_spill]] }
0x1a59   : > { %s8957_s26 = smov %s8950_s3 }
0x1a5b   :  { %5827 = vsyncpa [#allocation10], 1 }
0x1a5c   :  { %5829 = vsyncpa [#allocation10 + $0x1], 1 }
0x1a5d   :  { %5830 = vsyncpa [#allocation13], 1 }
0x1a5e   :  { %5831 = vsyncpa [#allocation16], 1 }
0x1a5f   :  { %5832 = vsyncpa [#allocation19], 1 }
0x1a60   :  { %5833 = vsyncpa [#allocation22], 1 }
0x1a61   :  { %5834 = vsyncpa [#allocation25], 1 }
0x1a62   :  { %5835 = vsyncpa [#allocation28], 1 }
0x1a63   :  { %5836 = vsyncpa [#allocation31], 1 }
0x1a64   :  { %5837 = vsyncpa [#allocation11], 1 }
0x1a65   :  { %5839 = vsyncpa [#allocation11 + $0x1], 1 }

</bundles_post_ra>
